<compile_context>
chip_gen: v6e
topology: v6e:2x2x1
jax: 0.10.0
libtpu: 0.0.40
codegen_flags: <defaults>
</compile_context>

<pallas_src>
import jax
import jax.numpy as jnp
from jax.experimental import pallas as pl
from jax.experimental.pallas import tpu as pltpu  # noqa: F401  (kept for TPU-specific extensions)

# ----------------------------- config -------------------------------------
VOCAB = 64
V_PAD = 128          # lane-dense logits (last dim padded to a full 128-lane vreg)
D_MODEL = 32
N_HEADS = 4
D_HEAD = 8           # N_HEADS * D_HEAD == D_MODEL
D_FF = 64
NEG_INF = -1e9
EPS = 1e-6


# ----------------------- in-kernel helper ops ------------------------------
def _rms(x, w):
    """T5 LayerNorm (no mean subtraction, no bias). x: [S, D], w: [1, D]. f32."""
    var = jnp.mean(x * x, axis=-1, keepdims=True)
    return x * jax.lax.rsqrt(var + EPS) * w


def _softmax(s):
    m = jnp.max(s, axis=-1, keepdims=True)
    p = jnp.exp(s - m)
    # approx reciprocal -> EUP slot, frees VALU cycles
    return p * pl.reciprocal(jnp.sum(p, axis=-1, keepdims=True), approx=True)


def _mha(xq, xkv, bias, wq_ref, wk_ref, wv_ref, wo_ref):
    """Multi-head attention with fused QKV / output projections.
    xq: [Sq, D] f32, xkv: [Sk, D] f32, bias broadcastable to [Sq, Sk].
    wq/wk/wv refs: [D, H*Dh] bf16, wo ref: [H*Dh, D] bf16.
    NOTE: T5 attention does NOT scale scores by 1/sqrt(d_head)."""
    xq_b = xq.astype(jnp.bfloat16)
    xkv_b = xkv.astype(jnp.bfloat16)
    q = jnp.dot(xq_b, wq_ref[...], preferred_element_type=jnp.float32)   # [Sq, H*Dh]
    k = jnp.dot(xkv_b, wk_ref[...], preferred_element_type=jnp.float32)  # [Sk, H*Dh]
    v = jnp.dot(xkv_b, wv_ref[...], preferred_element_type=jnp.float32)  # [Sk, H*Dh]
    ctx = []
    for h in range(N_HEADS):                       # static unroll, static lane slices
        sl = slice(h * D_HEAD, (h + 1) * D_HEAD)
        s = jax.lax.dot_general(q[:, sl].astype(jnp.bfloat16),
                                k[:, sl].astype(jnp.bfloat16),
                                (((1,), (1,)), ((), ())),   # q @ k^T, no transpose materialized
                                preferred_element_type=jnp.float32) + bias
        p = _softmax(s)
        ctx.append(jnp.dot(p.astype(jnp.bfloat16),
                           v[:, sl].astype(jnp.bfloat16),
                           preferred_element_type=jnp.float32))           # [Sq, Dh]
    ctx = jnp.concatenate(ctx, axis=-1).astype(jnp.bfloat16)              # [Sq, H*Dh]
    return jnp.dot(ctx, wo_ref[...], preferred_element_type=jnp.float32)  # one O-proj matmul


def _gated_ffn(x, wi0_ref, wi1_ref, wo_ref):
    """mT5 gated-GELU feed forward; gelu kept in f32 (VPU/EUP)."""
    xb = x.astype(jnp.bfloat16)
    g = jax.nn.gelu(jnp.dot(xb, wi0_ref[...], preferred_element_type=jnp.float32),
                    approximate=True)
    l = jnp.dot(xb, wi1_ref[...], preferred_element_type=jnp.float32)
    return jnp.dot((g * l).astype(jnp.bfloat16), wo_ref[...],
                   preferred_element_type=jnp.float32)


# ----------------- fully fused FiD forward kernel ---------------------------
def _make_fid_kernel(src_len):
    def kernel(encx_ref, kmask_ref, decx_ref, onehot_ref,
               e_ln1, e_wq, e_wk, e_wv, e_wo, e_ln2, e_wi0, e_wi1, e_wof, e_lnf,
               d_ln1, d_sq, d_sk, d_sv, d_so,
               d_ln2, d_cq, d_ck, d_cv, d_co,
               d_ln3, d_wi0, d_wi1, d_wof, d_lnf, lm,
               logits_ref, loss_ref):
        kmask = kmask_ref[...]                                   # [1, N] float 0/1
        N = encx_ref.shape[0]
        T = decx_ref.shape[0]

        # ---------- encoder: all passages in one block ----------
        # block-diagonal (same-passage) + key-padding bias built in-kernel
        x = encx_ref[...].astype(jnp.float32)                    # [N, D]
        rows = jax.lax.broadcasted_iota(jnp.int32, (N, N), 0).astype(jnp.float32)
        cols = jax.lax.broadcasted_iota(jnp.int32, (N, N), 1).astype(jnp.float32)
        inv_s = 1.0 / float(src_len)
        same = jnp.floor(rows * inv_s) == jnp.floor(cols * inv_s)
        enc_bias = jnp.where(jnp.logical_and(same, kmask > 0.5), 0.0, NEG_INF)

        h = _rms(x, e_ln1[...])
        x = x + _mha(h, h, enc_bias, e_wq, e_wk, e_wv, e_wo)
        h = _rms(x, e_ln2[...])
        x = x + _gated_ffn(h, e_wi0, e_wi1, e_wof)
        enc = _rms(x, e_lnf[...])                                # [N, D], stays in VMEM/vregs

        # ---------- decoder ----------
        y = decx_ref[...].astype(jnp.float32)                    # [T, D]
        r = jax.lax.broadcasted_iota(jnp.int32, (T, T), 0)
        c = jax.lax.broadcasted_iota(jnp.int32, (T, T), 1)
        causal_bias = jnp.where(r >= c, 0.0, NEG_INF)            # [T, T]
        cross_bias = (1.0 - kmask) * NEG_INF                     # [1, N]

        h = _rms(y, d_ln1[...])
        y = y + _mha(h, h, causal_bias, d_sq, d_sk, d_sv, d_so)
        h = _rms(y, d_ln2[...])
        y = y + _mha(h, enc, cross_bias, d_cq, d_ck, d_cv, d_co)
        h = _rms(y, d_ln3[...])
        y = y + _gated_ffn(h, d_wi0, d_wi1, d_wof)
        y = _rms(y, d_lnf[...])

        # ---------- lm_head (lane-dense, V padded to 128) + fused CE loss ----------
        logits = jnp.dot(y.astype(jnp.bfloat16), lm[...],
                         preferred_element_type=jnp.float32)     # [T, V_PAD]
        logits_ref[...] = logits                                 # unmasked full-width store

        vcols = jax.lax.broadcasted_iota(jnp.int32, (T, V_PAD), 1)
        ll = jnp.where(vcols < VOCAB, logits, NEG_INF)           # padded cols excluded from lse
        m = jnp.max(ll, axis=-1, keepdims=True)
        lse = m + jnp.log(jnp.sum(jnp.exp(ll - m), axis=-1, keepdims=True))
        onehot = onehot_ref[...]                                 # [T, V_PAD]; all-zero row if label == -100
        picked = jnp.sum(logits * onehot, axis=-1, keepdims=True)
        valid = jnp.sum(onehot, axis=-1, keepdims=True)          # 1.0 valid / 0.0 ignored
        total = jnp.sum((lse - picked) * valid, axis=0, keepdims=True)   # [1, 1]
        count = jnp.sum(valid, axis=0, keepdims=True)                    # [1, 1]
        # TODO(synk): if every label is -100 this returns 0, torch CrossEntropyLoss returns NaN.
        loss_ref[...] = total / jnp.maximum(count, 1.0)
    return kernel


def _full(shape):
    """Full-array BlockSpec (no grid -> zero-arg index_map)."""
    zeros = (0,) * len(shape)
    return pl.BlockSpec(shape, lambda zeros=zeros: zeros)


# --------------------------- LegalGenerator --------------------------------
def shift_right(labels, decoder_start_token_id=0, pad_token_id=0):
    """T5 _shift_right."""
    B = labels.shape[0]
    start = jnp.full((B, 1), decoder_start_token_id, labels.dtype)
    shifted = jnp.concatenate([start, labels[:, :-1]], axis=1)
    return jnp.where(shifted == -100, pad_token_id, shifted)


def legal_generator_forward(params, input_ids, attention_mask,
                            decoder_input_ids=None, labels=None,
                            past_key_values=None):
    """Mirrors LegalGenerator.forward -> MyFID.forward. Returns (loss, lm_logits).

    input_ids / attention_mask: [n_passage, src_len], labels: [1, tgt_len]."""
    # TODO(synk): past_key_values / use_cache incremental decoding is not modeled.
    n_passage, src_len = input_ids.shape
    N = n_passage * src_len
    am = attention_mask.astype(jnp.float32)

    if labels is not None and decoder_input_ids is None:
        decoder_input_ids = shift_right(labels)
    T = decoder_input_ids.shape[1]
    lab = labels if labels is not None else jnp.full((1, T), -100, jnp.int32)

    # --- XLA glue: embedding gathers, flattening, lane-dense one-hot labels, bf16 weights ---
    enc_x = params["embed"][input_ids].reshape(N, D_MODEL)          # [N, D]
    dec_x = params["embed"][decoder_input_ids].reshape(T, D_MODEL)  # [T, D]
    kmask = am.reshape(1, N)                                        # fused encoder key mask
    lab_flat = lab.reshape(T).astype(jnp.int32)
    onehot = (lab_flat[:, None] ==
              jnp.arange(V_PAD, dtype=jnp.int32)[None, :]).astype(jnp.float32)  # [T, V_PAD]

    bf = lambda w: w.astype(jnp.bfloat16)
    lm_pad = bf(jnp.pad(params["lm_head"], ((0, 0), (0, V_PAD - VOCAB))))

    args = (
        enc_x, kmask, dec_x, onehot,
        params["enc_ln1"], bf(params["enc_wq"]), bf(params["enc_wk"]),
        bf(params["enc_wv"]), bf(params["enc_wo"]),
        params["enc_ln2"], bf(params["enc_wi0"]), bf(params["enc_wi1"]),
        bf(params["enc_wo_ff"]), params["enc_final_ln"],
        params["dec_ln1"], bf(params["dec_self_wq"]), bf(params["dec_self_wk"]),
        bf(params["dec_self_wv"]), bf(params["dec_self_wo"]),
        params["dec_ln2"], bf(params["dec_cross_wq"]), bf(params["dec_cross_wk"]),
        bf(params["dec_cross_wv"]), bf(params["dec_cross_wo"]),
        params["dec_ln3"], bf(params["dec_wi0"]), bf(params["dec_wi1"]),
        bf(params["dec_wo_ff"]), params["dec_final_ln"], lm_pad,
    )

    logits_pad, loss = pl.pallas_call(
        _make_fid_kernel(src_len),
        out_shape=(jax.ShapeDtypeStruct((T, V_PAD), jnp.float32),
                   jax.ShapeDtypeStruct((1, 1), jnp.float32)),
        in_specs=[_full(a.shape) for a in args],
        out_specs=(_full((T, V_PAD)), _full((1, 1))),
    )(*args)

    logits = logits_pad[:, :VOCAB].reshape(1, T, VOCAB)
    return (loss[0, 0] if labels is not None else None), logits


# ------------------------------ params --------------------------------------
def init_params(key):
    D, F, V = D_MODEL, D_FF, VOCAB
    w_shapes = {
        "embed": (V, D),
        # fused per-attention weights: [D, H*Dh] / [H*Dh, D]  (H*Dh == D)
        "enc_wq": (D, D), "enc_wk": (D, D), "enc_wv": (D, D), "enc_wo": (D, D),
        "enc_wi0": (D, F), "enc_wi1": (D, F), "enc_wo_ff": (F, D),
        "dec_self_wq": (D, D), "dec_self_wk": (D, D),
        "dec_self_wv": (D, D), "dec_self_wo": (D, D),
        "dec_cross_wq": (D, D), "dec_cross_wk": (D, D),
        "dec_cross_wv": (D, D), "dec_cross_wo": (D, D),
        "dec_wi0": (D, F), "dec_wi1": (D, F), "dec_wo_ff": (F, D),
        "lm_head": (D, V),
    }
    ln_names = ["enc_ln1", "enc_ln2", "enc_final_ln",
                "dec_ln1", "dec_ln2", "dec_ln3", "dec_final_ln"]
    params = {}
    keys = jax.random.split(key, len(w_shapes))
    for k, (name, shape) in zip(keys, w_shapes.items()):
        params[name] = (0.05 * jax.random.normal(k, shape)).astype(jnp.float32)
    for name in ln_names:
        params[name] = jnp.ones((1, D), jnp.float32)   # stored [1, D] for lane layout
    return params


# -------------------------------- main --------------------------------------
if __name__ == "__main__":
    key = jax.random.PRNGKey(0)
    kp, ki, kl = jax.random.split(key, 3)

    n_passage, src_len, tgt_len = 4, 16, 8
    params = init_params(kp)

    input_ids = jax.random.randint(ki, (n_passage, src_len), 1, VOCAB, dtype=jnp.int32)
    attention_mask = jnp.concatenate(
        [jnp.ones((n_passage, src_len - 4), jnp.float32),
         jnp.zeros((n_passage, 4), jnp.float32)], axis=1)
    labels = jax.random.randint(kl, (1, tgt_len), 1, VOCAB, dtype=jnp.int32)
    labels = labels.at[0, -2:].set(-100)   # exercise ignore_index path

    # decoder_input_ids=None branch of LegalGenerator.forward
    fwd = jax.jit(legal_generator_forward)
    loss, logits = fwd(params, input_ids, attention_mask, None, labels)

    jax.block_until_ready((loss, logits))
    assert logits.shape == (1, tgt_len, VOCAB)
    assert bool(jnp.isfinite(loss))
    print("KERNEL_OK")
</pallas_src>

<mosaic_0001>
module attributes {stable_mosaic.version = 11 : i64} {
  func.func @kernel(%arg0: memref<64x32xf32, #tpu.memory_space<vmem>>, %arg1: memref<1x64xf32, #tpu.memory_space<vmem>>, %arg2: memref<8x32xf32, #tpu.memory_space<vmem>>, %arg3: memref<8x128xf32, #tpu.memory_space<vmem>>, %arg4: memref<1x32xf32, #tpu.memory_space<vmem>>, %arg5: memref<32x32xbf16, #tpu.memory_space<vmem>>, %arg6: memref<32x32xbf16, #tpu.memory_space<vmem>>, %arg7: memref<32x32xbf16, #tpu.memory_space<vmem>>, %arg8: memref<32x32xbf16, #tpu.memory_space<vmem>>, %arg9: memref<1x32xf32, #tpu.memory_space<vmem>>, %arg10: memref<32x64xbf16, #tpu.memory_space<vmem>>, %arg11: memref<32x64xbf16, #tpu.memory_space<vmem>>, %arg12: memref<64x32xbf16, #tpu.memory_space<vmem>>, %arg13: memref<1x32xf32, #tpu.memory_space<vmem>>, %arg14: memref<1x32xf32, #tpu.memory_space<vmem>>, %arg15: memref<32x32xbf16, #tpu.memory_space<vmem>>, %arg16: memref<32x32xbf16, #tpu.memory_space<vmem>>, %arg17: memref<32x32xbf16, #tpu.memory_space<vmem>>, %arg18: memref<32x32xbf16, #tpu.memory_space<vmem>>, %arg19: memref<1x32xf32, #tpu.memory_space<vmem>>, %arg20: memref<32x32xbf16, #tpu.memory_space<vmem>>, %arg21: memref<32x32xbf16, #tpu.memory_space<vmem>>, %arg22: memref<32x32xbf16, #tpu.memory_space<vmem>>, %arg23: memref<32x32xbf16, #tpu.memory_space<vmem>>, %arg24: memref<1x32xf32, #tpu.memory_space<vmem>>, %arg25: memref<32x64xbf16, #tpu.memory_space<vmem>>, %arg26: memref<32x64xbf16, #tpu.memory_space<vmem>>, %arg27: memref<64x32xbf16, #tpu.memory_space<vmem>>, %arg28: memref<1x32xf32, #tpu.memory_space<vmem>>, %arg29: memref<32x128xbf16, #tpu.memory_space<vmem>>, %arg30: memref<8x128xf32, #tpu.memory_space<vmem>>, %arg31: memref<1x1xf32, #tpu.memory_space<vmem>>) attributes {dimension_semantics = [], scalar_prefetch = 0 : i64, scratch_operands = 0 : i64, tpu.core_type = #tpu.core_type<tc>} {
    %c0 = arith.constant 0 : index
    %c0_0 = arith.constant 0 : index
    %0 = vector.load %arg1[%c0, %c0_0] : memref<1x64xf32, #tpu.memory_space<vmem>>, vector<1x64xf32>
    %c0_1 = arith.constant 0 : index
    %c0_2 = arith.constant 0 : index
    %1 = vector.load %arg0[%c0_1, %c0_2] : memref<64x32xf32, #tpu.memory_space<vmem>>, vector<64x32xf32>
    %2 = tpu.iota {dimensions = array<i32: 0>} : vector<64x64xi32>
    %3 = arith.sitofp %2 : vector<64x64xi32> to vector<64x64xf32>
    %4 = tpu.iota {dimensions = array<i32: 1>} : vector<64x64xi32>
    %5 = arith.sitofp %4 : vector<64x64xi32> to vector<64x64xf32>
    %cst = arith.constant 6.250000e-02 : f32
    %6 = vector.broadcast %cst : f32 to vector<64x64xf32>
    %7 = arith.mulf %3, %6 : vector<64x64xf32>
    %8 = math.floor %7 : vector<64x64xf32>
    %cst_3 = arith.constant 6.250000e-02 : f32
    %9 = vector.broadcast %cst_3 : f32 to vector<64x64xf32>
    %10 = arith.mulf %5, %9 : vector<64x64xf32>
    %11 = math.floor %10 : vector<64x64xf32>
    %12 = arith.cmpf oeq, %8, %11 : vector<64x64xf32>
    %cst_4 = arith.constant 5.000000e-01 : f32
    %13 = vector.broadcast %cst_4 : f32 to vector<1x64xf32>
    %14 = arith.cmpf ogt, %0, %13 : vector<1x64xf32>
    %15 = vector.broadcast %14 : vector<1x64xi1> to vector<64x64xi1>
    %16 = arith.andi %12, %15 : vector<64x64xi1>
    %cst_5 = arith.constant 0.000000e+00 : f32
    %cst_6 = arith.constant -1.000000e+09 : f32
    %17 = vector.broadcast %cst_5 : f32 to vector<64x64xf32>
    %18 = vector.broadcast %cst_6 : f32 to vector<64x64xf32>
    %19 = arith.select %16, %17, %18 : vector<64x64xi1>, vector<64x64xf32>
    %c0_7 = arith.constant 0 : index
    %c0_8 = arith.constant 0 : index
    %20 = vector.load %arg4[%c0_7, %c0_8] : memref<1x32xf32, #tpu.memory_space<vmem>>, vector<1x32xf32>
    %21 = arith.mulf %1, %1 : vector<64x32xf32>
    %cst_9 = arith.constant dense<0.000000e+00> : vector<64xf32>
    %22 = vector.multi_reduction <add>, %21, %cst_9 [1] : vector<64x32xf32> to vector<64xf32>
    %23 = vector.shape_cast %22 : vector<64xf32> to vector<64x1xf32>
    %cst_10 = arith.constant 3.200000e+01 : f32
    %24 = vector.broadcast %cst_10 : f32 to vector<64x1xf32>
    %25 = arith.divf %23, %24 : vector<64x1xf32>
    %cst_11 = arith.constant 9.99999997E-7 : f32
    %26 = vector.broadcast %cst_11 : f32 to vector<64x1xf32>
    %27 = arith.addf %25, %26 : vector<64x1xf32>
    %28 = math.rsqrt %27 : vector<64x1xf32>
    %29 = vector.broadcast %28 : vector<64x1xf32> to vector<64x32xf32>
    %30 = arith.mulf %1, %29 : vector<64x32xf32>
    %31 = vector.broadcast %20 : vector<1x32xf32> to vector<64x32xf32>
    %32 = arith.mulf %30, %31 : vector<64x32xf32>
    %33 = arith.truncf %32 : vector<64x32xf32> to vector<64x32xbf16>
    %34 = arith.truncf %32 : vector<64x32xf32> to vector<64x32xbf16>
    %c0_12 = arith.constant 0 : index
    %c0_13 = arith.constant 0 : index
    %35 = vector.load %arg5[%c0_12, %c0_13] : memref<32x32xbf16, #tpu.memory_space<vmem>>, vector<32x32xbf16>
    %cst_14 = arith.constant dense<0.000000e+00> : vector<64x32xf32>
    %36 = tpu.matmul %33, %35, %cst_14 {dimension_numbers = #tpu.dot_dimension_numbers<[1], [0], [0], [1], [0, 0, 1, 1], [], []>} : vector<64x32xbf16>, vector<32x32xbf16>, vector<64x32xf32> -> vector<64x32xf32>
    %c0_15 = arith.constant 0 : index
    %c0_16 = arith.constant 0 : index
    %37 = vector.load %arg6[%c0_15, %c0_16] : memref<32x32xbf16, #tpu.memory_space<vmem>>, vector<32x32xbf16>
    %cst_17 = arith.constant dense<0.000000e+00> : vector<64x32xf32>
    %38 = tpu.matmul %34, %37, %cst_17 {dimension_numbers = #tpu.dot_dimension_numbers<[1], [0], [0], [1], [0, 0, 1, 1], [], []>} : vector<64x32xbf16>, vector<32x32xbf16>, vector<64x32xf32> -> vector<64x32xf32>
    %c0_18 = arith.constant 0 : index
    %c0_19 = arith.constant 0 : index
    %39 = vector.load %arg7[%c0_18, %c0_19] : memref<32x32xbf16, #tpu.memory_space<vmem>>, vector<32x32xbf16>
    %cst_20 = arith.constant dense<0.000000e+00> : vector<64x32xf32>
    %40 = tpu.matmul %34, %39, %cst_20 {dimension_numbers = #tpu.dot_dimension_numbers<[1], [0], [0], [1], [0, 0, 1, 1], [], []>} : vector<64x32xbf16>, vector<32x32xbf16>, vector<64x32xf32> -> vector<64x32xf32>
    %41 = vector.extract_strided_slice %36 {offsets = [0, 0], sizes = [64, 8], strides = [1, 1]} : vector<64x32xf32> to vector<64x8xf32>
    %42 = arith.truncf %41 : vector<64x8xf32> to vector<64x8xbf16>
    %43 = vector.extract_strided_slice %38 {offsets = [0, 0], sizes = [64, 8], strides = [1, 1]} : vector<64x32xf32> to vector<64x8xf32>
    %44 = arith.truncf %43 : vector<64x8xf32> to vector<64x8xbf16>
    %cst_21 = arith.constant dense<0.000000e+00> : vector<64x64xf32>
    %45 = tpu.matmul %42, %44, %cst_21 {dimension_numbers = #tpu.dot_dimension_numbers<[1], [1], [0], [0], [0, 0, 1, 0], [], []>} : vector<64x8xbf16>, vector<64x8xbf16>, vector<64x64xf32> -> vector<64x64xf32>
    %46 = arith.addf %45, %19 : vector<64x64xf32>
    %cst_22 = arith.constant dense<0xFF800000> : vector<64xf32>
    %47 = vector.multi_reduction <maximumf>, %46, %cst_22 [1] : vector<64x64xf32> to vector<64xf32>
    %48 = vector.shape_cast %47 : vector<64xf32> to vector<64x1xf32>
    %49 = vector.broadcast %48 : vector<64x1xf32> to vector<64x64xf32>
    %50 = arith.subf %46, %49 : vector<64x64xf32>
    %51 = math.exp %50 : vector<64x64xf32>
    %cst_23 = arith.constant dense<0.000000e+00> : vector<64xf32>
    %52 = vector.multi_reduction <add>, %51, %cst_23 [1] : vector<64x64xf32> to vector<64xf32>
    %53 = vector.shape_cast %52 : vector<64xf32> to vector<64x1xf32>
    %54 = tpu.reciprocal %53 {approx = true} : vector<64x1xf32> -> vector<64x1xf32>
    %55 = vector.broadcast %54 : vector<64x1xf32> to vector<64x64xf32>
    %56 = arith.mulf %51, %55 : vector<64x64xf32>
    %57 = arith.truncf %56 : vector<64x64xf32> to vector<64x64xbf16>
    %58 = vector.extract_strided_slice %40 {offsets = [0, 0], sizes = [64, 8], strides = [1, 1]} : vector<64x32xf32> to vector<64x8xf32>
    %59 = arith.truncf %58 : vector<64x8xf32> to vector<64x8xbf16>
    %cst_24 = arith.constant dense<0.000000e+00> : vector<64x8xf32>
    %60 = tpu.matmul %57, %59, %cst_24 {dimension_numbers = #tpu.dot_dimension_numbers<[1], [0], [0], [1], [0, 0, 1, 1], [], []>} : vector<64x64xbf16>, vector<64x8xbf16>, vector<64x8xf32> -> vector<64x8xf32>
    %61 = vector.extract_strided_slice %36 {offsets = [0, 8], sizes = [64, 8], strides = [1, 1]} : vector<64x32xf32> to vector<64x8xf32>
    %62 = arith.truncf %61 : vector<64x8xf32> to vector<64x8xbf16>
    %63 = vector.extract_strided_slice %38 {offsets = [0, 8], sizes = [64, 8], strides = [1, 1]} : vector<64x32xf32> to vector<64x8xf32>
    %64 = arith.truncf %63 : vector<64x8xf32> to vector<64x8xbf16>
    %cst_25 = arith.constant dense<0.000000e+00> : vector<64x64xf32>
    %65 = tpu.matmul %62, %64, %cst_25 {dimension_numbers = #tpu.dot_dimension_numbers<[1], [1], [0], [0], [0, 0, 1, 0], [], []>} : vector<64x8xbf16>, vector<64x8xbf16>, vector<64x64xf32> -> vector<64x64xf32>
    %66 = arith.addf %65, %19 : vector<64x64xf32>
    %cst_26 = arith.constant dense<0xFF800000> : vector<64xf32>
    %67 = vector.multi_reduction <maximumf>, %66, %cst_26 [1] : vector<64x64xf32> to vector<64xf32>
    %68 = vector.shape_cast %67 : vector<64xf32> to vector<64x1xf32>
    %69 = vector.broadcast %68 : vector<64x1xf32> to vector<64x64xf32>
    %70 = arith.subf %66, %69 : vector<64x64xf32>
    %71 = math.exp %70 : vector<64x64xf32>
    %cst_27 = arith.constant dense<0.000000e+00> : vector<64xf32>
    %72 = vector.multi_reduction <add>, %71, %cst_27 [1] : vector<64x64xf32> to vector<64xf32>
    %73 = vector.shape_cast %72 : vector<64xf32> to vector<64x1xf32>
    %74 = tpu.reciprocal %73 {approx = true} : vector<64x1xf32> -> vector<64x1xf32>
    %75 = vector.broadcast %74 : vector<64x1xf32> to vector<64x64xf32>
    %76 = arith.mulf %71, %75 : vector<64x64xf32>
    %77 = arith.truncf %76 : vector<64x64xf32> to vector<64x64xbf16>
    %78 = vector.extract_strided_slice %40 {offsets = [0, 8], sizes = [64, 8], strides = [1, 1]} : vector<64x32xf32> to vector<64x8xf32>
    %79 = arith.truncf %78 : vector<64x8xf32> to vector<64x8xbf16>
    %cst_28 = arith.constant dense<0.000000e+00> : vector<64x8xf32>
    %80 = tpu.matmul %77, %79, %cst_28 {dimension_numbers = #tpu.dot_dimension_numbers<[1], [0], [0], [1], [0, 0, 1, 1], [], []>} : vector<64x64xbf16>, vector<64x8xbf16>, vector<64x8xf32> -> vector<64x8xf32>
    %81 = vector.extract_strided_slice %36 {offsets = [0, 16], sizes = [64, 8], strides = [1, 1]} : vector<64x32xf32> to vector<64x8xf32>
    %82 = arith.truncf %81 : vector<64x8xf32> to vector<64x8xbf16>
    %83 = vector.extract_strided_slice %38 {offsets = [0, 16], sizes = [64, 8], strides = [1, 1]} : vector<64x32xf32> to vector<64x8xf32>
    %84 = arith.truncf %83 : vector<64x8xf32> to vector<64x8xbf16>
    %cst_29 = arith.constant dense<0.000000e+00> : vector<64x64xf32>
    %85 = tpu.matmul %82, %84, %cst_29 {dimension_numbers = #tpu.dot_dimension_numbers<[1], [1], [0], [0], [0, 0, 1, 0], [], []>} : vector<64x8xbf16>, vector<64x8xbf16>, vector<64x64xf32> -> vector<64x64xf32>
    %86 = arith.addf %85, %19 : vector<64x64xf32>
    %cst_30 = arith.constant dense<0xFF800000> : vector<64xf32>
    %87 = vector.multi_reduction <maximumf>, %86, %cst_30 [1] : vector<64x64xf32> to vector<64xf32>
    %88 = vector.shape_cast %87 : vector<64xf32> to vector<64x1xf32>
    %89 = vector.broadcast %88 : vector<64x1xf32> to vector<64x64xf32>
    %90 = arith.subf %86, %89 : vector<64x64xf32>
    %91 = math.exp %90 : vector<64x64xf32>
    %cst_31 = arith.constant dense<0.000000e+00> : vector<64xf32>
    %92 = vector.multi_reduction <add>, %91, %cst_31 [1] : vector<64x64xf32> to vector<64xf32>
    %93 = vector.shape_cast %92 : vector<64xf32> to vector<64x1xf32>
    %94 = tpu.reciprocal %93 {approx = true} : vector<64x1xf32> -> vector<64x1xf32>
    %95 = vector.broadcast %94 : vector<64x1xf32> to vector<64x64xf32>
    %96 = arith.mulf %91, %95 : vector<64x64xf32>
    %97 = arith.truncf %96 : vector<64x64xf32> to vector<64x64xbf16>
    %98 = vector.extract_strided_slice %40 {offsets = [0, 16], sizes = [64, 8], strides = [1, 1]} : vector<64x32xf32> to vector<64x8xf32>
    %99 = arith.truncf %98 : vector<64x8xf32> to vector<64x8xbf16>
    %cst_32 = arith.constant dense<0.000000e+00> : vector<64x8xf32>
    %100 = tpu.matmul %97, %99, %cst_32 {dimension_numbers = #tpu.dot_dimension_numbers<[1], [0], [0], [1], [0, 0, 1, 1], [], []>} : vector<64x64xbf16>, vector<64x8xbf16>, vector<64x8xf32> -> vector<64x8xf32>
    %101 = vector.extract_strided_slice %36 {offsets = [0, 24], sizes = [64, 8], strides = [1, 1]} : vector<64x32xf32> to vector<64x8xf32>
    %102 = arith.truncf %101 : vector<64x8xf32> to vector<64x8xbf16>
    %103 = vector.extract_strided_slice %38 {offsets = [0, 24], sizes = [64, 8], strides = [1, 1]} : vector<64x32xf32> to vector<64x8xf32>
    %104 = arith.truncf %103 : vector<64x8xf32> to vector<64x8xbf16>
    %cst_33 = arith.constant dense<0.000000e+00> : vector<64x64xf32>
    %105 = tpu.matmul %102, %104, %cst_33 {dimension_numbers = #tpu.dot_dimension_numbers<[1], [1], [0], [0], [0, 0, 1, 0], [], []>} : vector<64x8xbf16>, vector<64x8xbf16>, vector<64x64xf32> -> vector<64x64xf32>
    %106 = arith.addf %105, %19 : vector<64x64xf32>
    %cst_34 = arith.constant dense<0xFF800000> : vector<64xf32>
    %107 = vector.multi_reduction <maximumf>, %106, %cst_34 [1] : vector<64x64xf32> to vector<64xf32>
    %108 = vector.shape_cast %107 : vector<64xf32> to vector<64x1xf32>
    %109 = vector.broadcast %108 : vector<64x1xf32> to vector<64x64xf32>
    %110 = arith.subf %106, %109 : vector<64x64xf32>
    %111 = math.exp %110 : vector<64x64xf32>
    %cst_35 = arith.constant dense<0.000000e+00> : vector<64xf32>
    %112 = vector.multi_reduction <add>, %111, %cst_35 [1] : vector<64x64xf32> to vector<64xf32>
    %113 = vector.shape_cast %112 : vector<64xf32> to vector<64x1xf32>
    %114 = tpu.reciprocal %113 {approx = true} : vector<64x1xf32> -> vector<64x1xf32>
    %115 = vector.broadcast %114 : vector<64x1xf32> to vector<64x64xf32>
    %116 = arith.mulf %111, %115 : vector<64x64xf32>
    %117 = arith.truncf %116 : vector<64x64xf32> to vector<64x64xbf16>
    %118 = vector.extract_strided_slice %40 {offsets = [0, 24], sizes = [64, 8], strides = [1, 1]} : vector<64x32xf32> to vector<64x8xf32>
    %119 = arith.truncf %118 : vector<64x8xf32> to vector<64x8xbf16>
    %cst_36 = arith.constant dense<0.000000e+00> : vector<64x8xf32>
    %120 = tpu.matmul %117, %119, %cst_36 {dimension_numbers = #tpu.dot_dimension_numbers<[1], [0], [0], [1], [0, 0, 1, 1], [], []>} : vector<64x64xbf16>, vector<64x8xbf16>, vector<64x8xf32> -> vector<64x8xf32>
    %121 = tpu.concatenate %60, %80, %100, %120 in 1 : vector<64x8xf32>, vector<64x8xf32>, vector<64x8xf32>, vector<64x8xf32> -> vector<64x32xf32>
    %122 = arith.truncf %121 : vector<64x32xf32> to vector<64x32xbf16>
    %c0_37 = arith.constant 0 : index
    %c0_38 = arith.constant 0 : index
    %123 = vector.load %arg8[%c0_37, %c0_38] : memref<32x32xbf16, #tpu.memory_space<vmem>>, vector<32x32xbf16>
    %cst_39 = arith.constant dense<0.000000e+00> : vector<64x32xf32>
    %124 = tpu.matmul %122, %123, %cst_39 {dimension_numbers = #tpu.dot_dimension_numbers<[1], [0], [0], [1], [0, 0, 1, 1], [], []>} : vector<64x32xbf16>, vector<32x32xbf16>, vector<64x32xf32> -> vector<64x32xf32>
    %125 = arith.addf %1, %124 : vector<64x32xf32>
    %c0_40 = arith.constant 0 : index
    %c0_41 = arith.constant 0 : index
    %126 = vector.load %arg9[%c0_40, %c0_41] : memref<1x32xf32, #tpu.memory_space<vmem>>, vector<1x32xf32>
    %127 = arith.mulf %125, %125 : vector<64x32xf32>
    %cst_42 = arith.constant dense<0.000000e+00> : vector<64xf32>
    %128 = vector.multi_reduction <add>, %127, %cst_42 [1] : vector<64x32xf32> to vector<64xf32>
    %129 = vector.shape_cast %128 : vector<64xf32> to vector<64x1xf32>
    %cst_43 = arith.constant 3.200000e+01 : f32
    %130 = vector.broadcast %cst_43 : f32 to vector<64x1xf32>
    %131 = arith.divf %129, %130 : vector<64x1xf32>
    %cst_44 = arith.constant 9.99999997E-7 : f32
    %132 = vector.broadcast %cst_44 : f32 to vector<64x1xf32>
    %133 = arith.addf %131, %132 : vector<64x1xf32>
    %134 = math.rsqrt %133 : vector<64x1xf32>
    %135 = vector.broadcast %134 : vector<64x1xf32> to vector<64x32xf32>
    %136 = arith.mulf %125, %135 : vector<64x32xf32>
    %137 = vector.broadcast %126 : vector<1x32xf32> to vector<64x32xf32>
    %138 = arith.mulf %136, %137 : vector<64x32xf32>
    %139 = arith.truncf %138 : vector<64x32xf32> to vector<64x32xbf16>
    %c0_45 = arith.constant 0 : index
    %c0_46 = arith.constant 0 : index
    %140 = vector.load %arg10[%c0_45, %c0_46] : memref<32x64xbf16, #tpu.memory_space<vmem>>, vector<32x64xbf16>
    %cst_47 = arith.constant dense<0.000000e+00> : vector<64x64xf32>
    %141 = tpu.matmul %139, %140, %cst_47 {dimension_numbers = #tpu.dot_dimension_numbers<[1], [0], [0], [1], [0, 0, 1, 1], [], []>} : vector<64x32xbf16>, vector<32x64xbf16>, vector<64x64xf32> -> vector<64x64xf32>
    %142 = arith.mulf %141, %141 : vector<64x64xf32>
    %143 = arith.mulf %141, %142 : vector<64x64xf32>
    %cst_48 = arith.constant 4.471500e-02 : f32
    %144 = vector.broadcast %cst_48 : f32 to vector<64x64xf32>
    %145 = arith.mulf %144, %143 : vector<64x64xf32>
    %146 = arith.addf %141, %145 : vector<64x64xf32>
    %cst_49 = arith.constant 0.797884583 : f32
    %147 = vector.broadcast %cst_49 : f32 to vector<64x64xf32>
    %148 = arith.mulf %147, %146 : vector<64x64xf32>
    %149 = math.tanh %148 : vector<64x64xf32>
    %cst_50 = arith.constant 1.000000e+00 : f32
    %150 = vector.broadcast %cst_50 : f32 to vector<64x64xf32>
    %151 = arith.addf %150, %149 : vector<64x64xf32>
    %cst_51 = arith.constant 5.000000e-01 : f32
    %152 = vector.broadcast %cst_51 : f32 to vector<64x64xf32>
    %153 = arith.mulf %152, %151 : vector<64x64xf32>
    %154 = arith.mulf %141, %153 : vector<64x64xf32>
    %c0_52 = arith.constant 0 : index
    %c0_53 = arith.constant 0 : index
    %155 = vector.load %arg11[%c0_52, %c0_53] : memref<32x64xbf16, #tpu.memory_space<vmem>>, vector<32x64xbf16>
    %cst_54 = arith.constant dense<0.000000e+00> : vector<64x64xf32>
    %156 = tpu.matmul %139, %155, %cst_54 {dimension_numbers = #tpu.dot_dimension_numbers<[1], [0], [0], [1], [0, 0, 1, 1], [], []>} : vector<64x32xbf16>, vector<32x64xbf16>, vector<64x64xf32> -> vector<64x64xf32>
    %157 = arith.mulf %154, %156 : vector<64x64xf32>
    %158 = arith.truncf %157 : vector<64x64xf32> to vector<64x64xbf16>
    %c0_55 = arith.constant 0 : index
    %c0_56 = arith.constant 0 : index
    %159 = vector.load %arg12[%c0_55, %c0_56] : memref<64x32xbf16, #tpu.memory_space<vmem>>, vector<64x32xbf16>
    %cst_57 = arith.constant dense<0.000000e+00> : vector<64x32xf32>
    %160 = tpu.matmul %158, %159, %cst_57 {dimension_numbers = #tpu.dot_dimension_numbers<[1], [0], [0], [1], [0, 0, 1, 1], [], []>} : vector<64x64xbf16>, vector<64x32xbf16>, vector<64x32xf32> -> vector<64x32xf32>
    %161 = arith.addf %125, %160 : vector<64x32xf32>
    %c0_58 = arith.constant 0 : index
    %c0_59 = arith.constant 0 : index
    %162 = vector.load %arg13[%c0_58, %c0_59] : memref<1x32xf32, #tpu.memory_space<vmem>>, vector<1x32xf32>
    %163 = arith.mulf %161, %161 : vector<64x32xf32>
    %cst_60 = arith.constant dense<0.000000e+00> : vector<64xf32>
    %164 = vector.multi_reduction <add>, %163, %cst_60 [1] : vector<64x32xf32> to vector<64xf32>
    %165 = vector.shape_cast %164 : vector<64xf32> to vector<64x1xf32>
    %cst_61 = arith.constant 3.200000e+01 : f32
    %166 = vector.broadcast %cst_61 : f32 to vector<64x1xf32>
    %167 = arith.divf %165, %166 : vector<64x1xf32>
    %cst_62 = arith.constant 9.99999997E-7 : f32
    %168 = vector.broadcast %cst_62 : f32 to vector<64x1xf32>
    %169 = arith.addf %167, %168 : vector<64x1xf32>
    %170 = math.rsqrt %169 : vector<64x1xf32>
    %171 = vector.broadcast %170 : vector<64x1xf32> to vector<64x32xf32>
    %172 = arith.mulf %161, %171 : vector<64x32xf32>
    %173 = vector.broadcast %162 : vector<1x32xf32> to vector<64x32xf32>
    %174 = arith.mulf %172, %173 : vector<64x32xf32>
    %c0_63 = arith.constant 0 : index
    %c0_64 = arith.constant 0 : index
    %175 = vector.load %arg2[%c0_63, %c0_64] : memref<8x32xf32, #tpu.memory_space<vmem>>, vector<8x32xf32>
    %176 = tpu.iota {dimensions = array<i32: 0>} : vector<8x8xi32>
    %177 = tpu.iota {dimensions = array<i32: 1>} : vector<8x8xi32>
    %178 = arith.cmpi sge, %176, %177 : vector<8x8xi32>
    %cst_65 = arith.constant 0.000000e+00 : f32
    %cst_66 = arith.constant -1.000000e+09 : f32
    %179 = vector.broadcast %cst_65 : f32 to vector<8x8xf32>
    %180 = vector.broadcast %cst_66 : f32 to vector<8x8xf32>
    %181 = arith.select %178, %179, %180 : vector<8x8xi1>, vector<8x8xf32>
    %cst_67 = arith.constant 1.000000e+00 : f32
    %182 = vector.broadcast %cst_67 : f32 to vector<1x64xf32>
    %183 = arith.subf %182, %0 : vector<1x64xf32>
    %cst_68 = arith.constant -1.000000e+09 : f32
    %184 = vector.broadcast %cst_68 : f32 to vector<1x64xf32>
    %185 = arith.mulf %183, %184 : vector<1x64xf32>
    %c0_69 = arith.constant 0 : index
    %c0_70 = arith.constant 0 : index
    %186 = vector.load %arg14[%c0_69, %c0_70] : memref<1x32xf32, #tpu.memory_space<vmem>>, vector<1x32xf32>
    %187 = arith.mulf %175, %175 : vector<8x32xf32>
    %cst_71 = arith.constant dense<0.000000e+00> : vector<8xf32>
    %188 = vector.multi_reduction <add>, %187, %cst_71 [1] : vector<8x32xf32> to vector<8xf32>
    %189 = vector.shape_cast %188 : vector<8xf32> to vector<8x1xf32>
    %cst_72 = arith.constant 3.200000e+01 : f32
    %190 = vector.broadcast %cst_72 : f32 to vector<8x1xf32>
    %191 = arith.divf %189, %190 : vector<8x1xf32>
    %cst_73 = arith.constant 9.99999997E-7 : f32
    %192 = vector.broadcast %cst_73 : f32 to vector<8x1xf32>
    %193 = arith.addf %191, %192 : vector<8x1xf32>
    %194 = math.rsqrt %193 : vector<8x1xf32>
    %195 = vector.broadcast %194 : vector<8x1xf32> to vector<8x32xf32>
    %196 = arith.mulf %175, %195 : vector<8x32xf32>
    %197 = vector.broadcast %186 : vector<1x32xf32> to vector<8x32xf32>
    %198 = arith.mulf %196, %197 : vector<8x32xf32>
    %199 = arith.truncf %198 : vector<8x32xf32> to vector<8x32xbf16>
    %200 = arith.truncf %198 : vector<8x32xf32> to vector<8x32xbf16>
    %c0_74 = arith.constant 0 : index
    %c0_75 = arith.constant 0 : index
    %201 = vector.load %arg15[%c0_74, %c0_75] : memref<32x32xbf16, #tpu.memory_space<vmem>>, vector<32x32xbf16>
    %cst_76 = arith.constant dense<0.000000e+00> : vector<8x32xf32>
    %202 = tpu.matmul %199, %201, %cst_76 {dimension_numbers = #tpu.dot_dimension_numbers<[1], [0], [0], [1], [0, 0, 1, 1], [], []>} : vector<8x32xbf16>, vector<32x32xbf16>, vector<8x32xf32> -> vector<8x32xf32>
    %c0_77 = arith.constant 0 : index
    %c0_78 = arith.constant 0 : index
    %203 = vector.load %arg16[%c0_77, %c0_78] : memref<32x32xbf16, #tpu.memory_space<vmem>>, vector<32x32xbf16>
    %cst_79 = arith.constant dense<0.000000e+00> : vector<8x32xf32>
    %204 = tpu.matmul %200, %203, %cst_79 {dimension_numbers = #tpu.dot_dimension_numbers<[1], [0], [0], [1], [0, 0, 1, 1], [], []>} : vector<8x32xbf16>, vector<32x32xbf16>, vector<8x32xf32> -> vector<8x32xf32>
    %c0_80 = arith.constant 0 : index
    %c0_81 = arith.constant 0 : index
    %205 = vector.load %arg17[%c0_80, %c0_81] : memref<32x32xbf16, #tpu.memory_space<vmem>>, vector<32x32xbf16>
    %cst_82 = arith.constant dense<0.000000e+00> : vector<8x32xf32>
    %206 = tpu.matmul %200, %205, %cst_82 {dimension_numbers = #tpu.dot_dimension_numbers<[1], [0], [0], [1], [0, 0, 1, 1], [], []>} : vector<8x32xbf16>, vector<32x32xbf16>, vector<8x32xf32> -> vector<8x32xf32>
    %207 = vector.extract_strided_slice %202 {offsets = [0, 0], sizes = [8, 8], strides = [1, 1]} : vector<8x32xf32> to vector<8x8xf32>
    %208 = arith.truncf %207 : vector<8x8xf32> to vector<8x8xbf16>
    %209 = vector.extract_strided_slice %204 {offsets = [0, 0], sizes = [8, 8], strides = [1, 1]} : vector<8x32xf32> to vector<8x8xf32>
    %210 = arith.truncf %209 : vector<8x8xf32> to vector<8x8xbf16>
    %cst_83 = arith.constant dense<0.000000e+00> : vector<8x8xf32>
    %211 = tpu.matmul %208, %210, %cst_83 {dimension_numbers = #tpu.dot_dimension_numbers<[1], [1], [0], [0], [0, 0, 1, 0], [], []>} : vector<8x8xbf16>, vector<8x8xbf16>, vector<8x8xf32> -> vector<8x8xf32>
    %212 = arith.addf %211, %181 : vector<8x8xf32>
    %cst_84 = arith.constant dense<0xFF800000> : vector<8xf32>
    %213 = vector.multi_reduction <maximumf>, %212, %cst_84 [1] : vector<8x8xf32> to vector<8xf32>
    %214 = vector.shape_cast %213 : vector<8xf32> to vector<8x1xf32>
    %215 = vector.broadcast %214 : vector<8x1xf32> to vector<8x8xf32>
    %216 = arith.subf %212, %215 : vector<8x8xf32>
    %217 = math.exp %216 : vector<8x8xf32>
    %cst_85 = arith.constant dense<0.000000e+00> : vector<8xf32>
    %218 = vector.multi_reduction <add>, %217, %cst_85 [1] : vector<8x8xf32> to vector<8xf32>
    %219 = vector.shape_cast %218 : vector<8xf32> to vector<8x1xf32>
    %220 = tpu.reciprocal %219 {approx = true} : vector<8x1xf32> -> vector<8x1xf32>
    %221 = vector.broadcast %220 : vector<8x1xf32> to vector<8x8xf32>
    %222 = arith.mulf %217, %221 : vector<8x8xf32>
    %223 = arith.truncf %222 : vector<8x8xf32> to vector<8x8xbf16>
    %224 = vector.extract_strided_slice %206 {offsets = [0, 0], sizes = [8, 8], strides = [1, 1]} : vector<8x32xf32> to vector<8x8xf32>
    %225 = arith.truncf %224 : vector<8x8xf32> to vector<8x8xbf16>
    %cst_86 = arith.constant dense<0.000000e+00> : vector<8x8xf32>
    %226 = tpu.matmul %223, %225, %cst_86 {dimension_numbers = #tpu.dot_dimension_numbers<[1], [0], [0], [1], [0, 0, 1, 1], [], []>} : vector<8x8xbf16>, vector<8x8xbf16>, vector<8x8xf32> -> vector<8x8xf32>
    %227 = vector.extract_strided_slice %202 {offsets = [0, 8], sizes = [8, 8], strides = [1, 1]} : vector<8x32xf32> to vector<8x8xf32>
    %228 = arith.truncf %227 : vector<8x8xf32> to vector<8x8xbf16>
    %229 = vector.extract_strided_slice %204 {offsets = [0, 8], sizes = [8, 8], strides = [1, 1]} : vector<8x32xf32> to vector<8x8xf32>
    %230 = arith.truncf %229 : vector<8x8xf32> to vector<8x8xbf16>
    %cst_87 = arith.constant dense<0.000000e+00> : vector<8x8xf32>
    %231 = tpu.matmul %228, %230, %cst_87 {dimension_numbers = #tpu.dot_dimension_numbers<[1], [1], [0], [0], [0, 0, 1, 0], [], []>} : vector<8x8xbf16>, vector<8x8xbf16>, vector<8x8xf32> -> vector<8x8xf32>
    %232 = arith.addf %231, %181 : vector<8x8xf32>
    %cst_88 = arith.constant dense<0xFF800000> : vector<8xf32>
    %233 = vector.multi_reduction <maximumf>, %232, %cst_88 [1] : vector<8x8xf32> to vector<8xf32>
    %234 = vector.shape_cast %233 : vector<8xf32> to vector<8x1xf32>
    %235 = vector.broadcast %234 : vector<8x1xf32> to vector<8x8xf32>
    %236 = arith.subf %232, %235 : vector<8x8xf32>
    %237 = math.exp %236 : vector<8x8xf32>
    %cst_89 = arith.constant dense<0.000000e+00> : vector<8xf32>
    %238 = vector.multi_reduction <add>, %237, %cst_89 [1] : vector<8x8xf32> to vector<8xf32>
    %239 = vector.shape_cast %238 : vector<8xf32> to vector<8x1xf32>
    %240 = tpu.reciprocal %239 {approx = true} : vector<8x1xf32> -> vector<8x1xf32>
    %241 = vector.broadcast %240 : vector<8x1xf32> to vector<8x8xf32>
    %242 = arith.mulf %237, %241 : vector<8x8xf32>
    %243 = arith.truncf %242 : vector<8x8xf32> to vector<8x8xbf16>
    %244 = vector.extract_strided_slice %206 {offsets = [0, 8], sizes = [8, 8], strides = [1, 1]} : vector<8x32xf32> to vector<8x8xf32>
    %245 = arith.truncf %244 : vector<8x8xf32> to vector<8x8xbf16>
    %cst_90 = arith.constant dense<0.000000e+00> : vector<8x8xf32>
    %246 = tpu.matmul %243, %245, %cst_90 {dimension_numbers = #tpu.dot_dimension_numbers<[1], [0], [0], [1], [0, 0, 1, 1], [], []>} : vector<8x8xbf16>, vector<8x8xbf16>, vector<8x8xf32> -> vector<8x8xf32>
    %247 = vector.extract_strided_slice %202 {offsets = [0, 16], sizes = [8, 8], strides = [1, 1]} : vector<8x32xf32> to vector<8x8xf32>
    %248 = arith.truncf %247 : vector<8x8xf32> to vector<8x8xbf16>
    %249 = vector.extract_strided_slice %204 {offsets = [0, 16], sizes = [8, 8], strides = [1, 1]} : vector<8x32xf32> to vector<8x8xf32>
    %250 = arith.truncf %249 : vector<8x8xf32> to vector<8x8xbf16>
    %cst_91 = arith.constant dense<0.000000e+00> : vector<8x8xf32>
    %251 = tpu.matmul %248, %250, %cst_91 {dimension_numbers = #tpu.dot_dimension_numbers<[1], [1], [0], [0], [0, 0, 1, 0], [], []>} : vector<8x8xbf16>, vector<8x8xbf16>, vector<8x8xf32> -> vector<8x8xf32>
    %252 = arith.addf %251, %181 : vector<8x8xf32>
    %cst_92 = arith.constant dense<0xFF800000> : vector<8xf32>
    %253 = vector.multi_reduction <maximumf>, %252, %cst_92 [1] : vector<8x8xf32> to vector<8xf32>
    %254 = vector.shape_cast %253 : vector<8xf32> to vector<8x1xf32>
    %255 = vector.broadcast %254 : vector<8x1xf32> to vector<8x8xf32>
    %256 = arith.subf %252, %255 : vector<8x8xf32>
    %257 = math.exp %256 : vector<8x8xf32>
    %cst_93 = arith.constant dense<0.000000e+00> : vector<8xf32>
    %258 = vector.multi_reduction <add>, %257, %cst_93 [1] : vector<8x8xf32> to vector<8xf32>
    %259 = vector.shape_cast %258 : vector<8xf32> to vector<8x1xf32>
    %260 = tpu.reciprocal %259 {approx = true} : vector<8x1xf32> -> vector<8x1xf32>
    %261 = vector.broadcast %260 : vector<8x1xf32> to vector<8x8xf32>
    %262 = arith.mulf %257, %261 : vector<8x8xf32>
    %263 = arith.truncf %262 : vector<8x8xf32> to vector<8x8xbf16>
    %264 = vector.extract_strided_slice %206 {offsets = [0, 16], sizes = [8, 8], strides = [1, 1]} : vector<8x32xf32> to vector<8x8xf32>
    %265 = arith.truncf %264 : vector<8x8xf32> to vector<8x8xbf16>
    %cst_94 = arith.constant dense<0.000000e+00> : vector<8x8xf32>
    %266 = tpu.matmul %263, %265, %cst_94 {dimension_numbers = #tpu.dot_dimension_numbers<[1], [0], [0], [1], [0, 0, 1, 1], [], []>} : vector<8x8xbf16>, vector<8x8xbf16>, vector<8x8xf32> -> vector<8x8xf32>
    %267 = vector.extract_strided_slice %202 {offsets = [0, 24], sizes = [8, 8], strides = [1, 1]} : vector<8x32xf32> to vector<8x8xf32>
    %268 = arith.truncf %267 : vector<8x8xf32> to vector<8x8xbf16>
    %269 = vector.extract_strided_slice %204 {offsets = [0, 24], sizes = [8, 8], strides = [1, 1]} : vector<8x32xf32> to vector<8x8xf32>
    %270 = arith.truncf %269 : vector<8x8xf32> to vector<8x8xbf16>
    %cst_95 = arith.constant dense<0.000000e+00> : vector<8x8xf32>
    %271 = tpu.matmul %268, %270, %cst_95 {dimension_numbers = #tpu.dot_dimension_numbers<[1], [1], [0], [0], [0, 0, 1, 0], [], []>} : vector<8x8xbf16>, vector<8x8xbf16>, vector<8x8xf32> -> vector<8x8xf32>
    %272 = arith.addf %271, %181 : vector<8x8xf32>
    %cst_96 = arith.constant dense<0xFF800000> : vector<8xf32>
    %273 = vector.multi_reduction <maximumf>, %272, %cst_96 [1] : vector<8x8xf32> to vector<8xf32>
    %274 = vector.shape_cast %273 : vector<8xf32> to vector<8x1xf32>
    %275 = vector.broadcast %274 : vector<8x1xf32> to vector<8x8xf32>
    %276 = arith.subf %272, %275 : vector<8x8xf32>
    %277 = math.exp %276 : vector<8x8xf32>
    %cst_97 = arith.constant dense<0.000000e+00> : vector<8xf32>
    %278 = vector.multi_reduction <add>, %277, %cst_97 [1] : vector<8x8xf32> to vector<8xf32>
    %279 = vector.shape_cast %278 : vector<8xf32> to vector<8x1xf32>
    %280 = tpu.reciprocal %279 {approx = true} : vector<8x1xf32> -> vector<8x1xf32>
    %281 = vector.broadcast %280 : vector<8x1xf32> to vector<8x8xf32>
    %282 = arith.mulf %277, %281 : vector<8x8xf32>
    %283 = arith.truncf %282 : vector<8x8xf32> to vector<8x8xbf16>
    %284 = vector.extract_strided_slice %206 {offsets = [0, 24], sizes = [8, 8], strides = [1, 1]} : vector<8x32xf32> to vector<8x8xf32>
    %285 = arith.truncf %284 : vector<8x8xf32> to vector<8x8xbf16>
    %cst_98 = arith.constant dense<0.000000e+00> : vector<8x8xf32>
    %286 = tpu.matmul %283, %285, %cst_98 {dimension_numbers = #tpu.dot_dimension_numbers<[1], [0], [0], [1], [0, 0, 1, 1], [], []>} : vector<8x8xbf16>, vector<8x8xbf16>, vector<8x8xf32> -> vector<8x8xf32>
    %287 = tpu.concatenate %226, %246, %266, %286 in 1 : vector<8x8xf32>, vector<8x8xf32>, vector<8x8xf32>, vector<8x8xf32> -> vector<8x32xf32>
    %288 = arith.truncf %287 : vector<8x32xf32> to vector<8x32xbf16>
    %c0_99 = arith.constant 0 : index
    %c0_100 = arith.constant 0 : index
    %289 = vector.load %arg18[%c0_99, %c0_100] : memref<32x32xbf16, #tpu.memory_space<vmem>>, vector<32x32xbf16>
    %cst_101 = arith.constant dense<0.000000e+00> : vector<8x32xf32>
    %290 = tpu.matmul %288, %289, %cst_101 {dimension_numbers = #tpu.dot_dimension_numbers<[1], [0], [0], [1], [0, 0, 1, 1], [], []>} : vector<8x32xbf16>, vector<32x32xbf16>, vector<8x32xf32> -> vector<8x32xf32>
    %291 = arith.addf %175, %290 : vector<8x32xf32>
    %c0_102 = arith.constant 0 : index
    %c0_103 = arith.constant 0 : index
    %292 = vector.load %arg19[%c0_102, %c0_103] : memref<1x32xf32, #tpu.memory_space<vmem>>, vector<1x32xf32>
    %293 = arith.mulf %291, %291 : vector<8x32xf32>
    %cst_104 = arith.constant dense<0.000000e+00> : vector<8xf32>
    %294 = vector.multi_reduction <add>, %293, %cst_104 [1] : vector<8x32xf32> to vector<8xf32>
    %295 = vector.shape_cast %294 : vector<8xf32> to vector<8x1xf32>
    %cst_105 = arith.constant 3.200000e+01 : f32
    %296 = vector.broadcast %cst_105 : f32 to vector<8x1xf32>
    %297 = arith.divf %295, %296 : vector<8x1xf32>
    %cst_106 = arith.constant 9.99999997E-7 : f32
    %298 = vector.broadcast %cst_106 : f32 to vector<8x1xf32>
    %299 = arith.addf %297, %298 : vector<8x1xf32>
    %300 = math.rsqrt %299 : vector<8x1xf32>
    %301 = vector.broadcast %300 : vector<8x1xf32> to vector<8x32xf32>
    %302 = arith.mulf %291, %301 : vector<8x32xf32>
    %303 = vector.broadcast %292 : vector<1x32xf32> to vector<8x32xf32>
    %304 = arith.mulf %302, %303 : vector<8x32xf32>
    %305 = arith.truncf %304 : vector<8x32xf32> to vector<8x32xbf16>
    %306 = arith.truncf %174 : vector<64x32xf32> to vector<64x32xbf16>
    %c0_107 = arith.constant 0 : index
    %c0_108 = arith.constant 0 : index
    %307 = vector.load %arg20[%c0_107, %c0_108] : memref<32x32xbf16, #tpu.memory_space<vmem>>, vector<32x32xbf16>
    %cst_109 = arith.constant dense<0.000000e+00> : vector<8x32xf32>
    %308 = tpu.matmul %305, %307, %cst_109 {dimension_numbers = #tpu.dot_dimension_numbers<[1], [0], [0], [1], [0, 0, 1, 1], [], []>} : vector<8x32xbf16>, vector<32x32xbf16>, vector<8x32xf32> -> vector<8x32xf32>
    %c0_110 = arith.constant 0 : index
    %c0_111 = arith.constant 0 : index
    %309 = vector.load %arg21[%c0_110, %c0_111] : memref<32x32xbf16, #tpu.memory_space<vmem>>, vector<32x32xbf16>
    %cst_112 = arith.constant dense<0.000000e+00> : vector<64x32xf32>
    %310 = tpu.matmul %306, %309, %cst_112 {dimension_numbers = #tpu.dot_dimension_numbers<[1], [0], [0], [1], [0, 0, 1, 1], [], []>} : vector<64x32xbf16>, vector<32x32xbf16>, vector<64x32xf32> -> vector<64x32xf32>
    %c0_113 = arith.constant 0 : index
    %c0_114 = arith.constant 0 : index
    %311 = vector.load %arg22[%c0_113, %c0_114] : memref<32x32xbf16, #tpu.memory_space<vmem>>, vector<32x32xbf16>
    %cst_115 = arith.constant dense<0.000000e+00> : vector<64x32xf32>
    %312 = tpu.matmul %306, %311, %cst_115 {dimension_numbers = #tpu.dot_dimension_numbers<[1], [0], [0], [1], [0, 0, 1, 1], [], []>} : vector<64x32xbf16>, vector<32x32xbf16>, vector<64x32xf32> -> vector<64x32xf32>
    %313 = vector.extract_strided_slice %308 {offsets = [0, 0], sizes = [8, 8], strides = [1, 1]} : vector<8x32xf32> to vector<8x8xf32>
    %314 = arith.truncf %313 : vector<8x8xf32> to vector<8x8xbf16>
    %315 = vector.extract_strided_slice %310 {offsets = [0, 0], sizes = [64, 8], strides = [1, 1]} : vector<64x32xf32> to vector<64x8xf32>
    %316 = arith.truncf %315 : vector<64x8xf32> to vector<64x8xbf16>
    %cst_116 = arith.constant dense<0.000000e+00> : vector<8x64xf32>
    %317 = tpu.matmul %314, %316, %cst_116 {dimension_numbers = #tpu.dot_dimension_numbers<[1], [1], [0], [0], [0, 0, 1, 0], [], []>} : vector<8x8xbf16>, vector<64x8xbf16>, vector<8x64xf32> -> vector<8x64xf32>
    %318 = vector.broadcast %185 : vector<1x64xf32> to vector<8x64xf32>
    %319 = arith.addf %317, %318 : vector<8x64xf32>
    %cst_117 = arith.constant dense<0xFF800000> : vector<8xf32>
    %320 = vector.multi_reduction <maximumf>, %319, %cst_117 [1] : vector<8x64xf32> to vector<8xf32>
    %321 = vector.shape_cast %320 : vector<8xf32> to vector<8x1xf32>
    %322 = vector.broadcast %321 : vector<8x1xf32> to vector<8x64xf32>
    %323 = arith.subf %319, %322 : vector<8x64xf32>
    %324 = math.exp %323 : vector<8x64xf32>
    %cst_118 = arith.constant dense<0.000000e+00> : vector<8xf32>
    %325 = vector.multi_reduction <add>, %324, %cst_118 [1] : vector<8x64xf32> to vector<8xf32>
    %326 = vector.shape_cast %325 : vector<8xf32> to vector<8x1xf32>
    %327 = tpu.reciprocal %326 {approx = true} : vector<8x1xf32> -> vector<8x1xf32>
    %328 = vector.broadcast %327 : vector<8x1xf32> to vector<8x64xf32>
    %329 = arith.mulf %324, %328 : vector<8x64xf32>
    %330 = arith.truncf %329 : vector<8x64xf32> to vector<8x64xbf16>
    %331 = vector.extract_strided_slice %312 {offsets = [0, 0], sizes = [64, 8], strides = [1, 1]} : vector<64x32xf32> to vector<64x8xf32>
    %332 = arith.truncf %331 : vector<64x8xf32> to vector<64x8xbf16>
    %cst_119 = arith.constant dense<0.000000e+00> : vector<8x8xf32>
    %333 = tpu.matmul %330, %332, %cst_119 {dimension_numbers = #tpu.dot_dimension_numbers<[1], [0], [0], [1], [0, 0, 1, 1], [], []>} : vector<8x64xbf16>, vector<64x8xbf16>, vector<8x8xf32> -> vector<8x8xf32>
    %334 = vector.extract_strided_slice %308 {offsets = [0, 8], sizes = [8, 8], strides = [1, 1]} : vector<8x32xf32> to vector<8x8xf32>
    %335 = arith.truncf %334 : vector<8x8xf32> to vector<8x8xbf16>
    %336 = vector.extract_strided_slice %310 {offsets = [0, 8], sizes = [64, 8], strides = [1, 1]} : vector<64x32xf32> to vector<64x8xf32>
    %337 = arith.truncf %336 : vector<64x8xf32> to vector<64x8xbf16>
    %cst_120 = arith.constant dense<0.000000e+00> : vector<8x64xf32>
    %338 = tpu.matmul %335, %337, %cst_120 {dimension_numbers = #tpu.dot_dimension_numbers<[1], [1], [0], [0], [0, 0, 1, 0], [], []>} : vector<8x8xbf16>, vector<64x8xbf16>, vector<8x64xf32> -> vector<8x64xf32>
    %339 = vector.broadcast %185 : vector<1x64xf32> to vector<8x64xf32>
    %340 = arith.addf %338, %339 : vector<8x64xf32>
    %cst_121 = arith.constant dense<0xFF800000> : vector<8xf32>
    %341 = vector.multi_reduction <maximumf>, %340, %cst_121 [1] : vector<8x64xf32> to vector<8xf32>
    %342 = vector.shape_cast %341 : vector<8xf32> to vector<8x1xf32>
    %343 = vector.broadcast %342 : vector<8x1xf32> to vector<8x64xf32>
    %344 = arith.subf %340, %343 : vector<8x64xf32>
    %345 = math.exp %344 : vector<8x64xf32>
    %cst_122 = arith.constant dense<0.000000e+00> : vector<8xf32>
    %346 = vector.multi_reduction <add>, %345, %cst_122 [1] : vector<8x64xf32> to vector<8xf32>
    %347 = vector.shape_cast %346 : vector<8xf32> to vector<8x1xf32>
    %348 = tpu.reciprocal %347 {approx = true} : vector<8x1xf32> -> vector<8x1xf32>
    %349 = vector.broadcast %348 : vector<8x1xf32> to vector<8x64xf32>
    %350 = arith.mulf %345, %349 : vector<8x64xf32>
    %351 = arith.truncf %350 : vector<8x64xf32> to vector<8x64xbf16>
    %352 = vector.extract_strided_slice %312 {offsets = [0, 8], sizes = [64, 8], strides = [1, 1]} : vector<64x32xf32> to vector<64x8xf32>
    %353 = arith.truncf %352 : vector<64x8xf32> to vector<64x8xbf16>
    %cst_123 = arith.constant dense<0.000000e+00> : vector<8x8xf32>
    %354 = tpu.matmul %351, %353, %cst_123 {dimension_numbers = #tpu.dot_dimension_numbers<[1], [0], [0], [1], [0, 0, 1, 1], [], []>} : vector<8x64xbf16>, vector<64x8xbf16>, vector<8x8xf32> -> vector<8x8xf32>
    %355 = vector.extract_strided_slice %308 {offsets = [0, 16], sizes = [8, 8], strides = [1, 1]} : vector<8x32xf32> to vector<8x8xf32>
    %356 = arith.truncf %355 : vector<8x8xf32> to vector<8x8xbf16>
    %357 = vector.extract_strided_slice %310 {offsets = [0, 16], sizes = [64, 8], strides = [1, 1]} : vector<64x32xf32> to vector<64x8xf32>
    %358 = arith.truncf %357 : vector<64x8xf32> to vector<64x8xbf16>
    %cst_124 = arith.constant dense<0.000000e+00> : vector<8x64xf32>
    %359 = tpu.matmul %356, %358, %cst_124 {dimension_numbers = #tpu.dot_dimension_numbers<[1], [1], [0], [0], [0, 0, 1, 0], [], []>} : vector<8x8xbf16>, vector<64x8xbf16>, vector<8x64xf32> -> vector<8x64xf32>
    %360 = vector.broadcast %185 : vector<1x64xf32> to vector<8x64xf32>
    %361 = arith.addf %359, %360 : vector<8x64xf32>
    %cst_125 = arith.constant dense<0xFF800000> : vector<8xf32>
    %362 = vector.multi_reduction <maximumf>, %361, %cst_125 [1] : vector<8x64xf32> to vector<8xf32>
    %363 = vector.shape_cast %362 : vector<8xf32> to vector<8x1xf32>
    %364 = vector.broadcast %363 : vector<8x1xf32> to vector<8x64xf32>
    %365 = arith.subf %361, %364 : vector<8x64xf32>
    %366 = math.exp %365 : vector<8x64xf32>
    %cst_126 = arith.constant dense<0.000000e+00> : vector<8xf32>
    %367 = vector.multi_reduction <add>, %366, %cst_126 [1] : vector<8x64xf32> to vector<8xf32>
    %368 = vector.shape_cast %367 : vector<8xf32> to vector<8x1xf32>
    %369 = tpu.reciprocal %368 {approx = true} : vector<8x1xf32> -> vector<8x1xf32>
    %370 = vector.broadcast %369 : vector<8x1xf32> to vector<8x64xf32>
    %371 = arith.mulf %366, %370 : vector<8x64xf32>
    %372 = arith.truncf %371 : vector<8x64xf32> to vector<8x64xbf16>
    %373 = vector.extract_strided_slice %312 {offsets = [0, 16], sizes = [64, 8], strides = [1, 1]} : vector<64x32xf32> to vector<64x8xf32>
    %374 = arith.truncf %373 : vector<64x8xf32> to vector<64x8xbf16>
    %cst_127 = arith.constant dense<0.000000e+00> : vector<8x8xf32>
    %375 = tpu.matmul %372, %374, %cst_127 {dimension_numbers = #tpu.dot_dimension_numbers<[1], [0], [0], [1], [0, 0, 1, 1], [], []>} : vector<8x64xbf16>, vector<64x8xbf16>, vector<8x8xf32> -> vector<8x8xf32>
    %376 = vector.extract_strided_slice %308 {offsets = [0, 24], sizes = [8, 8], strides = [1, 1]} : vector<8x32xf32> to vector<8x8xf32>
    %377 = arith.truncf %376 : vector<8x8xf32> to vector<8x8xbf16>
    %378 = vector.extract_strided_slice %310 {offsets = [0, 24], sizes = [64, 8], strides = [1, 1]} : vector<64x32xf32> to vector<64x8xf32>
    %379 = arith.truncf %378 : vector<64x8xf32> to vector<64x8xbf16>
    %cst_128 = arith.constant dense<0.000000e+00> : vector<8x64xf32>
    %380 = tpu.matmul %377, %379, %cst_128 {dimension_numbers = #tpu.dot_dimension_numbers<[1], [1], [0], [0], [0, 0, 1, 0], [], []>} : vector<8x8xbf16>, vector<64x8xbf16>, vector<8x64xf32> -> vector<8x64xf32>
    %381 = vector.broadcast %185 : vector<1x64xf32> to vector<8x64xf32>
    %382 = arith.addf %380, %381 : vector<8x64xf32>
    %cst_129 = arith.constant dense<0xFF800000> : vector<8xf32>
    %383 = vector.multi_reduction <maximumf>, %382, %cst_129 [1] : vector<8x64xf32> to vector<8xf32>
    %384 = vector.shape_cast %383 : vector<8xf32> to vector<8x1xf32>
    %385 = vector.broadcast %384 : vector<8x1xf32> to vector<8x64xf32>
    %386 = arith.subf %382, %385 : vector<8x64xf32>
    %387 = math.exp %386 : vector<8x64xf32>
    %cst_130 = arith.constant dense<0.000000e+00> : vector<8xf32>
    %388 = vector.multi_reduction <add>, %387, %cst_130 [1] : vector<8x64xf32> to vector<8xf32>
    %389 = vector.shape_cast %388 : vector<8xf32> to vector<8x1xf32>
    %390 = tpu.reciprocal %389 {approx = true} : vector<8x1xf32> -> vector<8x1xf32>
    %391 = vector.broadcast %390 : vector<8x1xf32> to vector<8x64xf32>
    %392 = arith.mulf %387, %391 : vector<8x64xf32>
    %393 = arith.truncf %392 : vector<8x64xf32> to vector<8x64xbf16>
    %394 = vector.extract_strided_slice %312 {offsets = [0, 24], sizes = [64, 8], strides = [1, 1]} : vector<64x32xf32> to vector<64x8xf32>
    %395 = arith.truncf %394 : vector<64x8xf32> to vector<64x8xbf16>
    %cst_131 = arith.constant dense<0.000000e+00> : vector<8x8xf32>
    %396 = tpu.matmul %393, %395, %cst_131 {dimension_numbers = #tpu.dot_dimension_numbers<[1], [0], [0], [1], [0, 0, 1, 1], [], []>} : vector<8x64xbf16>, vector<64x8xbf16>, vector<8x8xf32> -> vector<8x8xf32>
    %397 = tpu.concatenate %333, %354, %375, %396 in 1 : vector<8x8xf32>, vector<8x8xf32>, vector<8x8xf32>, vector<8x8xf32> -> vector<8x32xf32>
    %398 = arith.truncf %397 : vector<8x32xf32> to vector<8x32xbf16>
    %c0_132 = arith.constant 0 : index
    %c0_133 = arith.constant 0 : index
    %399 = vector.load %arg23[%c0_132, %c0_133] : memref<32x32xbf16, #tpu.memory_space<vmem>>, vector<32x32xbf16>
    %cst_134 = arith.constant dense<0.000000e+00> : vector<8x32xf32>
    %400 = tpu.matmul %398, %399, %cst_134 {dimension_numbers = #tpu.dot_dimension_numbers<[1], [0], [0], [1], [0, 0, 1, 1], [], []>} : vector<8x32xbf16>, vector<32x32xbf16>, vector<8x32xf32> -> vector<8x32xf32>
    %401 = arith.addf %291, %400 : vector<8x32xf32>
    %c0_135 = arith.constant 0 : index
    %c0_136 = arith.constant 0 : index
    %402 = vector.load %arg24[%c0_135, %c0_136] : memref<1x32xf32, #tpu.memory_space<vmem>>, vector<1x32xf32>
    %403 = arith.mulf %401, %401 : vector<8x32xf32>
    %cst_137 = arith.constant dense<0.000000e+00> : vector<8xf32>
    %404 = vector.multi_reduction <add>, %403, %cst_137 [1] : vector<8x32xf32> to vector<8xf32>
    %405 = vector.shape_cast %404 : vector<8xf32> to vector<8x1xf32>
    %cst_138 = arith.constant 3.200000e+01 : f32
    %406 = vector.broadcast %cst_138 : f32 to vector<8x1xf32>
    %407 = arith.divf %405, %406 : vector<8x1xf32>
    %cst_139 = arith.constant 9.99999997E-7 : f32
    %408 = vector.broadcast %cst_139 : f32 to vector<8x1xf32>
    %409 = arith.addf %407, %408 : vector<8x1xf32>
    %410 = math.rsqrt %409 : vector<8x1xf32>
    %411 = vector.broadcast %410 : vector<8x1xf32> to vector<8x32xf32>
    %412 = arith.mulf %401, %411 : vector<8x32xf32>
    %413 = vector.broadcast %402 : vector<1x32xf32> to vector<8x32xf32>
    %414 = arith.mulf %412, %413 : vector<8x32xf32>
    %415 = arith.truncf %414 : vector<8x32xf32> to vector<8x32xbf16>
    %c0_140 = arith.constant 0 : index
    %c0_141 = arith.constant 0 : index
    %416 = vector.load %arg25[%c0_140, %c0_141] : memref<32x64xbf16, #tpu.memory_space<vmem>>, vector<32x64xbf16>
    %cst_142 = arith.constant dense<0.000000e+00> : vector<8x64xf32>
    %417 = tpu.matmul %415, %416, %cst_142 {dimension_numbers = #tpu.dot_dimension_numbers<[1], [0], [0], [1], [0, 0, 1, 1], [], []>} : vector<8x32xbf16>, vector<32x64xbf16>, vector<8x64xf32> -> vector<8x64xf32>
    %418 = arith.mulf %417, %417 : vector<8x64xf32>
    %419 = arith.mulf %417, %418 : vector<8x64xf32>
    %cst_143 = arith.constant 4.471500e-02 : f32
    %420 = vector.broadcast %cst_143 : f32 to vector<8x64xf32>
    %421 = arith.mulf %420, %419 : vector<8x64xf32>
    %422 = arith.addf %417, %421 : vector<8x64xf32>
    %cst_144 = arith.constant 0.797884583 : f32
    %423 = vector.broadcast %cst_144 : f32 to vector<8x64xf32>
    %424 = arith.mulf %423, %422 : vector<8x64xf32>
    %425 = math.tanh %424 : vector<8x64xf32>
    %cst_145 = arith.constant 1.000000e+00 : f32
    %426 = vector.broadcast %cst_145 : f32 to vector<8x64xf32>
    %427 = arith.addf %426, %425 : vector<8x64xf32>
    %cst_146 = arith.constant 5.000000e-01 : f32
    %428 = vector.broadcast %cst_146 : f32 to vector<8x64xf32>
    %429 = arith.mulf %428, %427 : vector<8x64xf32>
    %430 = arith.mulf %417, %429 : vector<8x64xf32>
    %c0_147 = arith.constant 0 : index
    %c0_148 = arith.constant 0 : index
    %431 = vector.load %arg26[%c0_147, %c0_148] : memref<32x64xbf16, #tpu.memory_space<vmem>>, vector<32x64xbf16>
    %cst_149 = arith.constant dense<0.000000e+00> : vector<8x64xf32>
    %432 = tpu.matmul %415, %431, %cst_149 {dimension_numbers = #tpu.dot_dimension_numbers<[1], [0], [0], [1], [0, 0, 1, 1], [], []>} : vector<8x32xbf16>, vector<32x64xbf16>, vector<8x64xf32> -> vector<8x64xf32>
    %433 = arith.mulf %430, %432 : vector<8x64xf32>
    %434 = arith.truncf %433 : vector<8x64xf32> to vector<8x64xbf16>
    %c0_150 = arith.constant 0 : index
    %c0_151 = arith.constant 0 : index
    %435 = vector.load %arg27[%c0_150, %c0_151] : memref<64x32xbf16, #tpu.memory_space<vmem>>, vector<64x32xbf16>
    %cst_152 = arith.constant dense<0.000000e+00> : vector<8x32xf32>
    %436 = tpu.matmul %434, %435, %cst_152 {dimension_numbers = #tpu.dot_dimension_numbers<[1], [0], [0], [1], [0, 0, 1, 1], [], []>} : vector<8x64xbf16>, vector<64x32xbf16>, vector<8x32xf32> -> vector<8x32xf32>
    %437 = arith.addf %401, %436 : vector<8x32xf32>
    %c0_153 = arith.constant 0 : index
    %c0_154 = arith.constant 0 : index
    %438 = vector.load %arg28[%c0_153, %c0_154] : memref<1x32xf32, #tpu.memory_space<vmem>>, vector<1x32xf32>
    %439 = arith.mulf %437, %437 : vector<8x32xf32>
    %cst_155 = arith.constant dense<0.000000e+00> : vector<8xf32>
    %440 = vector.multi_reduction <add>, %439, %cst_155 [1] : vector<8x32xf32> to vector<8xf32>
    %441 = vector.shape_cast %440 : vector<8xf32> to vector<8x1xf32>
    %cst_156 = arith.constant 3.200000e+01 : f32
    %442 = vector.broadcast %cst_156 : f32 to vector<8x1xf32>
    %443 = arith.divf %441, %442 : vector<8x1xf32>
    %cst_157 = arith.constant 9.99999997E-7 : f32
    %444 = vector.broadcast %cst_157 : f32 to vector<8x1xf32>
    %445 = arith.addf %443, %444 : vector<8x1xf32>
    %446 = math.rsqrt %445 : vector<8x1xf32>
    %447 = vector.broadcast %446 : vector<8x1xf32> to vector<8x32xf32>
    %448 = arith.mulf %437, %447 : vector<8x32xf32>
    %449 = vector.broadcast %438 : vector<1x32xf32> to vector<8x32xf32>
    %450 = arith.mulf %448, %449 : vector<8x32xf32>
    %451 = arith.truncf %450 : vector<8x32xf32> to vector<8x32xbf16>
    %c0_158 = arith.constant 0 : index
    %c0_159 = arith.constant 0 : index
    %452 = vector.load %arg29[%c0_158, %c0_159] : memref<32x128xbf16, #tpu.memory_space<vmem>>, vector<32x128xbf16>
    %cst_160 = arith.constant dense<0.000000e+00> : vector<8x128xf32>
    %453 = tpu.matmul %451, %452, %cst_160 {dimension_numbers = #tpu.dot_dimension_numbers<[1], [0], [0], [1], [0, 0, 1, 1], [], []>} : vector<8x32xbf16>, vector<32x128xbf16>, vector<8x128xf32> -> vector<8x128xf32>
    %c0_161 = arith.constant 0 : index
    %c0_162 = arith.constant 0 : index
    %454 = vector.load %arg30[%c0_161, %c0_162] : memref<8x128xf32, #tpu.memory_space<vmem>>, vector<8x128xf32>
    tpu.vector_store %arg30[%c0_161, %c0_162], %453 {strides = array<i32>} : memref<8x128xf32, #tpu.memory_space<vmem>>, vector<8x128xf32>,
    %455 = tpu.iota {dimensions = array<i32: 1>} : vector<8x128xi32>
    %c64_i32 = arith.constant 64 : i32
    %456 = vector.broadcast %c64_i32 : i32 to vector<8x128xi32>
    %457 = arith.cmpi slt, %455, %456 : vector<8x128xi32>
    %cst_163 = arith.constant -1.000000e+09 : f32
    %458 = vector.broadcast %cst_163 : f32 to vector<8x128xf32>
    %459 = arith.select %457, %453, %458 : vector<8x128xi1>, vector<8x128xf32>
    %cst_164 = arith.constant dense<0xFF800000> : vector<8xf32>
    %460 = vector.multi_reduction <maximumf>, %459, %cst_164 [1] : vector<8x128xf32> to vector<8xf32>
    %461 = vector.shape_cast %460 : vector<8xf32> to vector<8x1xf32>
    %462 = vector.broadcast %461 : vector<8x1xf32> to vector<8x128xf32>
    %463 = arith.subf %459, %462 : vector<8x128xf32>
    %464 = math.exp %463 : vector<8x128xf32>
    %cst_165 = arith.constant dense<0.000000e+00> : vector<8xf32>
    %465 = vector.multi_reduction <add>, %464, %cst_165 [1] : vector<8x128xf32> to vector<8xf32>
    %466 = vector.shape_cast %465 : vector<8xf32> to vector<8x1xf32>
    %467 = math.log %466 : vector<8x1xf32>
    %468 = arith.addf %461, %467 : vector<8x1xf32>
    %c0_166 = arith.constant 0 : index
    %c0_167 = arith.constant 0 : index
    %469 = vector.load %arg3[%c0_166, %c0_167] : memref<8x128xf32, #tpu.memory_space<vmem>>, vector<8x128xf32>
    %470 = arith.mulf %453, %469 : vector<8x128xf32>
    %cst_168 = arith.constant dense<0.000000e+00> : vector<8xf32>
    %471 = vector.multi_reduction <add>, %470, %cst_168 [1] : vector<8x128xf32> to vector<8xf32>
    %472 = vector.shape_cast %471 : vector<8xf32> to vector<8x1xf32>
    %cst_169 = arith.constant dense<0.000000e+00> : vector<8xf32>
    %473 = vector.multi_reduction <add>, %469, %cst_169 [1] : vector<8x128xf32> to vector<8xf32>
    %474 = vector.shape_cast %473 : vector<8xf32> to vector<8x1xf32>
    %475 = arith.subf %468, %472 : vector<8x1xf32>
    %476 = arith.mulf %475, %474 : vector<8x1xf32>
    %cst_170 = arith.constant dense<0.000000e+00> : vector<1xf32>
    %477 = vector.multi_reduction <add>, %476, %cst_170 [0] : vector<8x1xf32> to vector<1xf32>
    %478 = vector.shape_cast %477 : vector<1xf32> to vector<1x1xf32>
    %cst_171 = arith.constant dense<0.000000e+00> : vector<1xf32>
    %479 = vector.multi_reduction <add>, %474, %cst_171 [0] : vector<8x1xf32> to vector<1xf32>
    %480 = vector.shape_cast %479 : vector<1xf32> to vector<1x1xf32>
    %cst_172 = arith.constant 1.000000e+00 : f32
    %481 = vector.broadcast %cst_172 : f32 to vector<1x1xf32>
    %482 = arith.maximumf %480, %481 : vector<1x1xf32>
    %483 = arith.divf %478, %482 : vector<1x1xf32>
    %c0_173 = arith.constant 0 : index
    %c0_174 = arith.constant 0 : index
    %484 = vector.load %arg31[%c0_173, %c0_174] : memref<1x1xf32, #tpu.memory_space<vmem>>, vector<1x1xf32>
    tpu.vector_store %arg31[%c0_173, %c0_174], %483 {strides = array<i32>} : memref<1x1xf32, #tpu.memory_space<vmem>>, vector<1x1xf32>,
    return
  }
}

</mosaic_0001>

<bundles_post_ra>
// kernel: legal_generator_forward.1
= control target key start
LH: loop header
LB: loop body
LE: loop exit
PB: predicated region body
PF: predicated region fallthrough
CT: control target
= control target key end

     0   :  { %s5658_s6 = smov 1   ;;  %s5659_s10 = smov 2   ;;  %s7071_s0 = inlined_call_operand.smem [shape: u32[32], index: -1, kind: input, shape index: {}] }
   0x1   :  { %s5708_s5 = sld [smem:[%s7071_s0]]   ;;  %s5660_s14 = smov 3  }
   0x2   :  { %s5713_s9 = sld [smem:[%s7071_s0 + %s5658_s6]]   ;;  %s5661_s18 = smov 4  }
   0x3   :  { %s5718_s13 = sld [smem:[%s7071_s0 + %s5659_s10]]   ;;  %s5662_s22 = smov 5  }
   0x4   :  { %s5723_s17 = sld [smem:[%s7071_s0 + %s5660_s14]]   ;;  %s5663_s26 = smov 6  }
   0x5   :  { %s5728_s21 = sld [smem:[%s7071_s0 + %s5661_s18]]   ;;  %s5664_s30 = smov 7  }
   0x6   :  { %s5733_s25 = sld [smem:[%s7071_s0 + %s5662_s22]]   ;;  %s5665_s4 = smov 8  }
   0x7   :  { %s5738_s29 = sld [smem:[%s7071_s0 + %s5663_s26]]   ;;  %s5666_s10 = smov 9  }
   0x8   :  { %s5743_s3 = sld [smem:[%s7071_s0 + %s5664_s30]]   ;;  %s5667_s15 = smov 10  }
   0x9   :  { %s5748_s8 = sld [smem:[%s7071_s0 + %s5665_s4]]   ;;  %s5668_s20 = smov 11  }
   0xa   :  { %7084 = sst [smem:[#allocation5_spill]] %s5723_s17  ;;  %s5669_s26 = smov 12  }
   0xb   :  { %s5753_s14 = sld [smem:[%s7071_s0 + %s5666_s10]]   ;;  %s5670_s1 = smov 13  }
   0xc   :  { %s5758_s19 = sld [smem:[%s7071_s0 + %s5667_s15]]   ;;  %s5671_s7 = smov 14  }
   0xd   :  { %s5763_s24 = sld [smem:[%s7071_s0 + %s5668_s20]]   ;;  %s5672_s15 = smov 15  }
   0xe   :  { %s5768_s30 = sld [smem:[%s7071_s0 + %s5669_s26]]   ;;  %s5673_s22 = smov 16  }
   0xf   :  { %s5773_s6 = sld [smem:[%s7071_s0 + %s5670_s1]]   ;;  %s5674_s28 = smov 17  }
  0x10   :  { %s5778_s12 = sld [smem:[%s7071_s0 + %s5671_s7]]   ;;  %s5675_s7 = smov 18  }
  0x11   :  { %s5783_s20 = sld [smem:[%s7071_s0 + %s5672_s15]]   ;;  %s5676_s15 = smov 19  }
  0x12   :  { %s5788_s27 = sld [smem:[%s7071_s0 + %s5673_s22]]   ;;  %s5677_s22 = smov 20  }
  0x13   :  { %s5793_s4 = sld [smem:[%s7071_s0 + %s5674_s28]]   ;;  %s5678_s28 = smov 21  }
  0x14   :  { %7085 = sst [smem:[#allocation6_spill]] %s5768_s30 }
  0x15   :  { %7086 = sst [smem:[#allocation7_spill]] %s5773_s6 }
  0x16   :  { %s5798_s17 = sld [smem:[%s7071_s0 + %s5675_s7]]   ;;  %s5679_s7 = smov 22  }
  0x17   :  { %s5803_s6 = sld [smem:[%s7071_s0 + %s5676_s15]]   ;;  %s5680_s15 = smov 23  }
  0x18   :  { %s5808_s30 = sld [smem:[%s7071_s0 + %s5677_s22]]   ;;  %s5681_s22 = smov 24  }
  0x19   :  { %7087 = sst [smem:[#allocation8_spill]] %s5793_s4 }
  0x1a   :  { %s5813_s4 = sld [smem:[%s7071_s0 + %s5678_s28]]   ;;  %s5682_s28 = smov 25  }
  0x1c   :  { %7088 = sst [smem:[#allocation9_spill]] %s5798_s17 }
  0x1d   :  { %7089 = sst [smem:[#allocation10_spill]] %s5803_s6 }
  0x1e   :  { %7090 = sst [smem:[#allocation11_spill]] %s5808_s30 }
  0x1f   :  { %s5818_s17 = sld [smem:[%s7071_s0 + %s5679_s7]]   ;;  %s5683_s7 = smov 26  }
  0x20   :  { %7091 = sst [smem:[#allocation12_spill]] %s5813_s4 }
  0x21   :  { %s5823_s6 = sld [smem:[%s7071_s0 + %s5680_s15]]   ;;  %s5684_s15 = smov 27  }
  0x22   :  { %s5828_s30 = sld [smem:[%s7071_s0 + %s5681_s22]]   ;;  %s5685_s22 = smov 28  }
  0x23   :  { %s5833_s4 = sld [smem:[%s7071_s0 + %s5682_s28]]   ;;  %s5686_s28 = smov 29  }
  0x25   :  { %7092 = sst [smem:[#allocation13_spill]] %s5818_s17 }
  0x26   :  { %s5838_s17 = sld [smem:[%s7071_s0 + %s5683_s7]]   ;;  %s5687_s7 = smov 30  }
  0x27   :  { %7093 = sst [smem:[#allocation14_spill]] %s5823_s6 }
  0x28   :  { %7094 = sst [smem:[#allocation15_spill]] %s5828_s30 }
  0x29   :  { %7095 = sst [smem:[#allocation16_spill]] %s5833_s4 }
  0x2a   :  { %s5843_s6 = sld [smem:[%s7071_s0 + %s5684_s15]]   ;;  %s5688_s15 = smov 31  }
  0x2b   :  { %s5848_s30 = sld [smem:[%s7071_s0 + %s5685_s22]]  }
  0x2c   :  { %7096 = sst [smem:[#allocation17_spill]] %s5838_s17 }
  0x2d   :  { %s5853_s4 = sld [smem:[%s7071_s0 + %s5686_s28]]  }
  0x2e   :  { %s5858_s17 = sld [smem:[%s7071_s0 + %s5687_s7]]  }
  0x30   :  { %7097 = sst [smem:[#allocation18_spill]] %s5843_s6 }
  0x31   :  { %s5863_s6 = sld [smem:[%s7071_s0 + %s5688_s15]]  }
  0x32   :  { %v5866_v0 = vld [vmem:[%s5708_s5 + $0x10] sm:$0xff]  ;;  %vm218_vm0 = vcmask 261120   ;;  %v5869_v1 = vld [vmem:[%s5708_s5] sm:$0xff]  ;;  %v5872_v2 = vld [vmem:[%s5708_s5 + $0x18] sm:$0xff] }
  0x33   :  { %v212_v3 = vmul.f32 %v5866_v0, %v5866_v0  ;;  %v210_v4 = vmul.f32 %v5869_v1, %v5869_v1  ;;  %v213_v5 = vmul.f32 %v5872_v2, %v5872_v2  ;;  %v5881_v6 = vld [vmem:[%s5708_s5 + $0x8] sm:$0xff]  ;;  %v5887_v8 = vld [vmem:[%s5708_s5 + $0x20] sm:$0xff]  ;;  %v5896_v12 = vld [vmem:[%s5708_s5 + $0x38] sm:$0xff] }
  0x34   :  { %v5884_v7 = vld [vmem:[%s5708_s5 + $0x28] sm:$0xff]  ;;  %v211_v9 = vmul.f32 %v5881_v6, %v5881_v6  ;;  %v214_v11 = vmul.f32 %v5887_v8, %v5887_v8  ;;  %v5899_v13 = vld [vmem:[%s5708_s5 + $0x30] sm:$0xff]  ;;  %v217_v16 = vmul.f32 %v5896_v12, %v5896_v12  ;;  %v5346_v26 = vld [vmem:[%s5733_s25] sm:$0xff]  }
  0x35   :  { %v215_v10 = vmul.f32 %v5884_v7, %v5884_v7  ;;  %v225_v14 = vsel %vm218_vm0, %v212_v3, 0.0  ;;  %v219_v15 = vsel %vm218_vm0, %v210_v4, 0.0  ;;  %v228_v17 = vsel %vm218_vm0, %v213_v5, 0.0  ;;  %v5344_v24 = vld [vmem:[%s5733_s25 + $0x8] sm:$0xff]   ;;  %v5347_v27 = vld [vmem:[%s5738_s29] sm:$0xff]  }
  0x36   :  { %226 = vadd.xlane.f32.xlu1 %v225_v14  ;;  %220 = vadd.xlane.f32.xlu0 %v219_v15  ;;  %v222_v18 = vsel %vm218_vm0, %v211_v9, 0.0  ;;  %v216_v19 = vmul.f32 %v5899_v13, %v5899_v13  ;;  %v231_v21 = vsel %vm218_vm0, %v214_v11, 0.0  ;;  %v240_v22 = vsel %vm218_vm0, %v217_v16, 0.0  ;;  %v5345_v25 = vld [vmem:[%s5738_s29 + $0x8] sm:$0xff]  }
  0x37   :  { %v234_v20 = vsel %vm218_vm0, %v215_v10, 0.0  ;;  %4758 = vmatprep.subr.bf16.mxu0 %v5344_v24  ;;  %4770 = vmatprep.subr.bf16.mxu1 %v5345_v25 }
  0x38   :  { %v237_v23 = vsel %vm218_vm0, %v216_v19, 0.0  ;;  %4759 = vmatpush3.bf16.msra.mxu0 %v5344_v24  ;;  %4771 = vmatpush3.bf16.msra.mxu1 %v5345_v25 }
  0x3a   :  { %229 = vadd.xlane.f32.xlu1 %v228_v17  ;;  %223 = vadd.xlane.f32.xlu0 %v222_v18 }
  0x3e   :  { %235 = vadd.xlane.f32.xlu1 %v234_v20  ;;  %232 = vadd.xlane.f32.xlu0 %v231_v21 }
  0x42   :  { %241 = vadd.xlane.f32.xlu1 %v240_v22  ;;  %238 = vadd.xlane.f32.xlu0 %v237_v23 }
  0x43   :  { %69 = vsyncpa [#allocation3], 0  ;;  %4760 = vmatprep.subr.bf16.mxu0 %v5346_v26  ;;  %4772 = vmatprep.subr.bf16.mxu1 %v5347_v27  ;;  %v5918_v28 = vld [vmem:[%s5743_s3 + $0x8] sm:$0xff]   ;;  %v4407_v57 = vld [vmem:[%s5728_s21] ss:$0 sm:$0xff]  ;;  %vm557_vm1 = vcmask 64512  }
  0x44   :  { %4761 = vmatpush3.bf16.msra.mxu0 %v5346_v26  ;;  %4773 = vmatpush3.bf16.msra.mxu1 %v5347_v27  ;;  %v5349_v16 = vld [vmem:[%s5743_s3] sm:$0xff]   ;;  %vm647_vm13 = vcmask 523264   ;;  %s5691_s0 = smov 120   ;;  %s5692_s21 = smov 112  }
  0x45   :  { %4782 = vmatprep.subr.bf16.mxu0 %v5918_v28  ;;  %s5693_s25 = smov 104   ;;  %s5694_s29 = smov 8  }
  0x46   :  { %s5695_s3 = smov 16   ;;  %s5696_s22 = smov 24  }
  0x47   :  { %s7114_s23 = sld [smem:[#allocation17_spill]] }
  0x48   :  { %s7115_s26 = sld [smem:[#allocation15_spill]] }
  0x49   :  { %s7116_s28 = sld [smem:[#allocation18_spill]] }
  0x4a   :  { %s7117_s1 = sld [smem:[#allocation5_spill]] }
  0xbf   :  { %v227_v29 = vpop.xlane.xlu1 %226  ;;  %v221_v30 = vpop.xlane.xlu0 %220 }
  0xc0   :  { %v246_v31 = vmul.f32 0.03125, %v227_v29  ;;  %v244_v32 = vmul.f32 0.03125, %v221_v30 }
  0xc2   :  { %v254_v33 = vadd.f32 1e-06, %v246_v31  ;;  %v252_v34 = vadd.f32 1e-06, %v244_v32 }
  0xc3   :  { %v230_v35 = vpop.xlane.xlu1 %229  ;;  %v224_v36 = vpop.xlane.xlu0 %223 }
  0xc4   :  { %5386 = vrsqrt.f32 %v254_v33  ;;  %v247_v37 = vmul.f32 0.03125, %v230_v35  ;;  %v245_v38 = vmul.f32 0.03125, %v224_v36 }
  0xc5   :  { %5388 = vrsqrt.f32 %v252_v34 }
  0xc6   :  { %v255_v39 = vadd.f32 1e-06, %v247_v37  ;;  %v253_v40 = vadd.f32 1e-06, %v245_v38 }
  0xc7   :  { %v236_v41 = vpop.xlane.xlu1 %235  ;;  %v233_v42 = vpop.xlane.xlu0 %232 }
  0xc8   :  { %5390 = vrsqrt.f32 %v255_v39  ;;  %v249_v43 = vmul.f32 0.03125, %v236_v41  ;;  %v248_v44 = vmul.f32 0.03125, %v233_v42 }
  0xc9   :  { %5392 = vrsqrt.f32 %v253_v40 }
  0xca   :  { %v257_v45 = vadd.f32 1e-06, %v249_v43  ;;  %v256_v46 = vadd.f32 1e-06, %v248_v44 }
  0xcb   :  { %v242_v47 = vpop.xlane.xlu1 %241  ;;  %v239_v48 = vpop.xlane.xlu0 %238 }
  0xcc   :  { %5394 = vrsqrt.f32 %v257_v45  ;;  %v251_v49 = vmul.f32 0.03125, %v242_v47  ;;  %v250_v50 = vmul.f32 0.03125, %v239_v48 }
  0xcd   :  { %5396 = vrsqrt.f32 %v256_v46 }
  0xce   :  { %v259_v51 = vadd.f32 1e-06, %v251_v49  ;;  %v258_v52 = vadd.f32 1e-06, %v250_v50 }
  0xd0   :  { %5398 = vrsqrt.f32 %v259_v51 }
  0xd1   :  { %v5387_v53 = vpop.eup %5386  ;;  %5400 = vrsqrt.f32 %v258_v52 }
  0xd2   :  { %v5389_v54 = vpop.eup %5388  ;;  %v270_v55 = vmul.f32 %v5387_v53, %v5866_v0 }
  0xd3   :  { %v268_v58 = vmul.f32 %v5389_v54, %v5869_v1 }
  0xd4   :  { %v284_v62 = vmul.f32 %v4407_v57, %v270_v55 }
  0xd5   :  { %v5391_v56 = vpop.eup %5390  ;;  %v282_v4 = vmul.f32 %v4407_v57, %v268_v58 }
  0xd6   :  { %v5393_v59 = vpop.eup %5392  ;;  %v271_v60 = vmul.f32 %v5391_v56, %v5872_v2 }
  0xd7   :  { %v269_v61 = vmul.f32 %v5393_v59, %v5881_v6  ;;  %v140_v59 = vlaneseq }
  0xd8   :  { %v285_v63 = vmul.f32 %v4407_v57, %v271_v60 }
  0xd9   :  { %v5395_v3 = vpop.eup %5394  ;;  %v283_v5 = vmul.f32 %v4407_v57, %v269_v61  ;;  %v6000_v60 = vshrl.u32 %v140_v59, 7  ;;  %v6002_v61 = vand.u32 127, %v140_v59 }
  0xda   :  { %v5397_v9 = vpop.eup %5396  ;;  %v291_v10 = vpack.c.bf16 %v285_v63, %v284_v62  ;;  %v273_v11 = vmul.f32 %v5395_v3, %v5884_v7  ;;  %v131_v63 = vld [vmem:[%s5713_s9] sm:$0x1] }
  0xdb   :  { %v290_v0 = vpack.c.bf16 %v283_v5, %v282_v4  ;;  %v272_v14 = vmul.f32 %v5397_v9, %v5887_v8  ;;  %v143_v62 = vadd.s32 16, %v6000_v60  ;;  %v149_v3 = vcvt.s32.f32 %v6000_v60 }
  0xdc   :  { %v287_v15 = vmul.f32 %v4407_v57, %v273_v11  ;;  %v142_v4 = vadd.s32 8, %v6000_v60  ;;  %v159_v5 = vcvt.s32.f32 %v6002_v61  ;;  %vm186_vm2 = vcmp.gt.f32.partialorder %v131_v63, 0.5 }
  0xdd   :  { %v5399_v1 = vpop.eup %5398  ;;  %4762 = vmatprep.mubr.msk.bf16.mxu0 %vm218_vm0, %v290_v0  ;;  %4774 = vmatprep.mubr.msk.bf16.mxu1 %vm218_vm0, %v290_v0  ;;  %v286_v2 = vmul.f32 %v4407_v57, %v272_v14  ;;  %v151_v9 = vcvt.s32.f32 %v143_v62  ;;  %v160_v11 = vmul.f32 0.0625, %v149_v3  ;;  %v145_v14 = vadd.s32 32, %v6000_v60 }
  0xde   :  { %v5401_v6 = vpop.eup %5400  ;;  %4763 = vmatmul.mubr.msk.bf16.vlgmr.msra.gmra.mxu0 %vm218_vm0, %v291_v10  ;;  %4775 = vmatmul.mubr.msk.bf16.vlgmr.msra.gmra.mxu1 %vm218_vm0, %v291_v10  ;;  %v275_v17 = vmul.f32 %v5399_v1, %v5896_v12 }
  0xdf   :  { %v292_v18 = vpack.c.bf16 %v287_v15, %v286_v2  ;;  %v274_v7 = vmul.f32 %v5401_v6, %v5899_v13  ;;  %4783 = vmatpush3.bf16.msra.mxu0 %v5918_v28  ;;  %v176_v15 = vmul.f32 0.0625, %v159_v5  ;;  %v162_v1 = vmul.f32 0.0625, %v151_v9 }
  0xe0   :  { %v289_v8 = vmul.f32 %v4407_v57, %v275_v17  ;;  %4784 = vmatprep.subr.bf16.mxu0 %v5349_v16  ;;  %v5689_v2 = vmov 0  }
  0xe1   :  { %4766 = vmatprep.mubr.msk.bf16.mxu0 %vm218_vm0, %v292_v18  ;;  %4778 = vmatprep.mubr.msk.bf16.mxu1 %vm218_vm0, %v292_v18  ;;  %v288_v19 = vmul.f32 %v4407_v57, %v274_v7  ;;  %v187_v6 = vsel %vm186_vm2, 1, %v5689_v2  ;;  %v168_v7 = vfloor.f32 %v160_v11 }
  0xe3   :  { %v293_v20 = vpack.c.bf16 %v289_v8, %v288_v19  ;;  %4785 = vmatpush3.bf16.msra.mxu0 %v5349_v16  ;;  %v7082_v16 = vsub.s32 0, %v6000_v60  ;;  %v153_v19 = vcvt.s32.f32 %v145_v14 }
  0xe6   :  { %4767 = vmatmul.mubr.msk.bf16.gmra.mxu0 %vm218_vm0, %v293_v20  ;;  %4779 = vmatmul.mubr.msk.bf16.gmra.mxu1 %vm218_vm0, %v293_v20 }
  0xe7   :  { %4786 = vmatprep.mubr.msk.bf16.mxu0 %vm218_vm0, %v290_v0  ;;  %v150_v0 = vcvt.s32.f32 %v142_v4 }
  0xe9   :  { %v161_v8 = vmul.f32 0.0625, %v150_v0 }
  0xee   :  { %4787 = vmatmul.mubr.msk.bf16.vlgmr.msra.gmra.mxu0 %vm218_vm0, %v291_v10  ;;  %v144_v10 = vadd.s32 24, %v6000_v60 }
  0xef   :  { %4790 = vmatprep.mubr.msk.bf16.mxu0 %vm218_vm0, %v292_v18  ;;  %v147_v18 = vadd.s32 48, %v6000_v60 }
  0xf0   :  { %v152_v17 = vcvt.s32.f32 %v144_v10 }
  0xf6   :  { %4791 = vmatmul.mubr.msk.bf16.gmra.mxu0 %vm218_vm0, %v293_v20  ;;  %v146_v20 = vadd.s32 40, %v6000_v60 }
 0x19e   :  { %v4764_v12 = vpop.f32.mrf.mxu0  ;;  %v4776_v13 = vpop.f32.mrf.mxu1 }
 0x1a0   :  { %v356_v21 = vpop.f32.mrf.mxu0  ;;  %v437_v22 = vpop.f32.mrf.mxu1 }
 0x1a2   :  { %v4765_v23 = vpop.f32.mrf.mxu0  ;;  %v4777_v24 = vpop.f32.mrf.mxu1 }
 0x1a3   :  { %v5958_v43 = vpack.c.bf16 %v4777_v24, %v4776_v13  ;;  %v5988_v56 = vpack.c.bf16 %v4765_v23, %v4764_v12  ;;  %v177_v12 = vfloor.f32 %v176_v15  ;;  %v191_v13 = vrot.slane %v187_v6, %v7082_v16 }
 0x1a4   :  { %v359_v25 = vpop.f32.mrf.mxu0  ;;  %v440_v26 = vpop.f32.mrf.mxu1  ;;  %v155_v23 = vcvt.s32.f32 %v147_v18  ;;  %v148_v24 = vadd.s32 56, %v6000_v60 }
 0x1a5   :  { %v5944_v27 = vpack.c.bf16 %v359_v25, %v356_v21  ;;  %v5966_v50 = vpack.c.bf16 %v440_v26, %v437_v22  ;;  %v574_v52 = vsel %vm557_vm1, %v5958_v43, 0  ;;  %v170_v21 = vfloor.f32 %v162_v1 }
 0x1a6   :  { %v4768_v28 = vpop.f32.mrf.mxu0  ;;  %v4780_v29 = vpop.f32.mrf.mxu1  ;;  %v163_v22 = vmul.f32 0.0625, %v152_v17  ;;  %vm178_vm3 = vcmp.eq.f32.partialorder %v168_v7, %v177_v12  ;;  %v169_v25 = vfloor.f32 %v161_v8  ;;  %v164_v26 = vmul.f32 0.0625, %v153_v19 }
 0x1a7   :  { %4802 = vmatprep.mubr.msk.bf16.mxu1 %vm557_vm1, %v5944_v27  ;;  %v571_v55 = vsel %vm557_vm1, %v5966_v50, 0  ;;  %vm192_vm4 = vcmp.eq.s32.totalorder %v191_v13, 1  ;;  %vm180_vm5 = vcmp.eq.f32.partialorder %v170_v21, %v177_v12 }
 0x1a8   :  { %v372_v30 = vpop.f32.mrf.mxu0  ;;  %v453_v31 = vpop.f32.mrf.mxu1  ;;  %vm193_vm6 = vmand %vm178_vm3, %vm192_vm4  ;;  %vm179_vm7 = vcmp.eq.f32.partialorder %v169_v25, %v177_v12 }
 0x1a9   :  { %vm195_vm8 = vmand %vm180_vm5, %vm192_vm4 }
 0x1aa   :  { %v4769_v32 = vpop.f32.mrf.mxu0  ;;  %v4781_v33 = vpop.f32.mrf.mxu1  ;;  %vm194_vm10 = vmand %vm179_vm7, %vm192_vm4 }
 0x1ab   :  { %v5948_v34 = vpack.c.bf16 %v4781_v33, %v4780_v29  ;;  %v5996_v58 = vpack.c.bf16 %v4769_v32, %v4768_v28  ;;  %v154_v28 = vcvt.s32.f32 %v146_v20  ;;  %v171_v29 = vfloor.f32 %v163_v22 }
 0x1ac   :  { %v375_v35 = vpop.f32.mrf.mxu0  ;;  %v456_v36 = vpop.f32.mrf.mxu1  ;;  %v172_v32 = vfloor.f32 %v164_v26 }
 0x1ad   :  { %v5950_v37 = vpack.c.bf16 %v456_v36, %v453_v31  ;;  %5226 = vmatprep.subr.msk.bf16.mxu1 %vm557_vm1, %v5948_v34  ;;  %v580_v38 = vsel %vm557_vm1, %v5948_v34, 0  ;;  %v5990_v57 = vpack.c.bf16 %v375_v35, %v372_v30  ;;  %v166_v30 = vmul.f32 0.0625, %v155_v23 }
 0x1ae   :  { %v4788_v39 = vpop.f32.mrf.mxu0  ;;  %4795 = vmatpush3.bf16.xpose.msra.mxu1 %v580_v38  ;;  %v156_v31 = vcvt.s32.f32 %v148_v24  ;;  %v165_v33 = vmul.f32 0.0625, %v154_v28  ;;  %v7083_v36 = vmov -1e+09   ;;  %vm181_vm9 = vcmp.eq.f32.partialorder %v171_v29, %v177_v12 }
 0x1af   :  { %5227 = vmatprep.subr.msk.bf16.mxu1 %vm557_vm1, %v5950_v37  ;;  %v577_v44 = vsel %vm557_vm1, %v5950_v37, 0  ;;  %v6020_v38 = vsel %vm193_vm6, 0.0, %v7083_v36  ;;  %vm182_vm11 = vcmp.eq.f32.partialorder %v172_v32, %v177_v12  ;;  %vm196_vm12 = vmand %vm181_vm9, %vm192_vm4  ;;  %vm5698_vm9 = vmmov 0  }
 0x1b0   :  { %v518_v40 = vpop.f32.mrf.mxu0  ;;  %vm197_vm15 = vmand %vm182_vm11, %vm192_vm4  ;;  %v6035_v59 = vsel %vm196_vm12, 0.0, %v7083_v36  ;;  %vm2712_vm11 = vcmask 1043456  }
 0x1b1   :  { %v6040_v4 = vsel %vm197_vm15, 0.0, %v7083_v36 }
 0x1b2   :  { %v4789_v41 = vpop.f32.mrf.mxu0 }
 0x1b3   :  { %v5977_v53 = vpack.c.bf16 %v4789_v41, %v4788_v39  ;;  %v174_v39 = vfloor.f32 %v166_v30  ;;  %v6024_v41 = vsel %vm195_vm8, 0.0, %v7083_v36  ;;  %vm1804_vm8 = vcmask 195584  }
 0x1b4   :  { %v521_v42 = vpop.f32.mrf.mxu0 }
 0x1b5   :  { %v5981_v54 = vpack.c.bf16 %v521_v42, %v518_v40  ;;  %v167_v40 = vmul.f32 0.0625, %v156_v31  ;;  %vm184_vm14 = vcmp.eq.f32.partialorder %v174_v39, %v177_v12 }
 0x1b6   :  { %v4792_v45 = vpop.f32.mrf.mxu0  ;;  %4797 = vmatpush3.bf16.xpose.msra.mxu1 %v577_v44  ;;  %v173_v44 = vfloor.f32 %v165_v33  ;;  %vm199_vm3 = vmand %vm184_vm14, %vm192_vm4 }
 0x1b7   :  { %5228 = vmatprep.subr.msk.bf16.mxu1 %vm557_vm1, %v5958_v43  ;;  %v6047_v11 = vsel %vm199_vm3, 0.0, %v7083_v36 }
 0x1b8   :  { %v534_v46 = vpop.f32.mrf.mxu0  ;;  %vm183_vm2 = vcmp.eq.f32.partialorder %v173_v44, %v177_v12 }
 0x1b9   :  { %vm198_vm6 = vmand %vm183_vm2, %vm192_vm4 }
 0x1ba   :  { %v4793_v47 = vpop.f32.mrf.mxu0  ;;  %v6052_v1 = vsel %vm198_vm6, 0.0, %v7083_v36 }
 0x1bb   :  { %v5964_v48 = vpack.c.bf16 %v4793_v47, %v4792_v45  ;;  %v6029_v47 = vsel %vm194_vm10, 0.0, %v7083_v36  ;;  %vm2456_vm10 = vcmp.ge.s32.totalorder %v6000_v60, %v6002_v61 }
 0x1bc   :  { %v537_v49 = vpop.f32.mrf.mxu0 }
 0x1bd   :  { %v5968_v51 = vpack.c.bf16 %v537_v49, %v534_v46  ;;  %4810 = vmatprep.subr.bf16.mxu0 %v5964_v48  ;;  %v175_v49 = vfloor.f32 %v167_v40 }
 0x1be   :  { %4799 = vmatpush3.bf16.xpose.msra.mxu1 %v574_v52  ;;  %4811 = vmatpush3.bf16.msra.mxu0 %v5964_v48 }
 0x1bf   :  { %5229 = vmatprep.subr.msk.bf16.mxu1 %vm557_vm1, %v5966_v50  ;;  %4812 = vmatprep.subr.bf16.mxu0 %v5968_v51  ;;  %vm185_vm5 = vcmp.eq.f32.partialorder %v175_v49, %v177_v12 }
 0x1c0   :  { %vm200_vm7 = vmand %vm185_vm5, %vm192_vm4  ;;  %vm1795_vm4 = vcmask 130048  }
 0x1c1   :  { %v6058_v18 = vsel %vm200_vm7, 0.0, %v7083_v36 }
 0x1c2   :  { %4813 = vmatpush3.bf16.msra.mxu0 %v5968_v51 }
 0x1c3   :  { %4814 = vmatprep.subr.bf16.mxu0 %v5977_v53 }
 0x1c6   :  { %4801 = vmatpush3.bf16.xpose.msra.mxu1 %v571_v55  ;;  %4815 = vmatpush3.bf16.msra.mxu0 %v5977_v53 }
 0x1c7   :  { %4816 = vmatprep.subr.bf16.mxu0 %v5981_v54 }
 0x1ca   :  { %4817 = vmatpush3.bf16.msra.mxu0 %v5981_v54 }
 0x1cd   :  { %4803 = vmatmul.mubr.msk.bf16.vlgmr.msra.gmra.mxu1 %vm557_vm1, %v5988_v56 }
 0x1ce   :  { %4806 = vmatprep.mubr.msk.bf16.mxu1 %vm557_vm1, %v5990_v57 }
 0x1d5   :  { %4807 = vmatmul.mubr.msk.bf16.gmra.mxu1 %vm557_vm1, %v5996_v58 }
 0x28d   :  { %v4804_v35 = vpop.f32.mrf.mxu1 }
 0x28e   :  { %v625_v52 = vadd.f32 %v4804_v35, %v6024_v41 }
 0x28f   :  { %v616_v42 = vpop.f32.mrf.mxu1 }
 0x290   :  { %v617_v45 = vadd.f32 %v616_v42, %v6020_v38  ;;  %v654_v10 = vsel %vm647_vm13, %v625_v52, -inf }
 0x291   :  { %v4805_v46 = vpop.f32.mrf.mxu1 }
 0x292   :  { %v648_v55 = vsel %vm647_vm13, %v617_v45, -inf  ;;  %v628_v5 = vadd.f32 %v4805_v46, %v6035_v59 }
 0x293   :  { %v619_v62 = vpop.f32.mrf.mxu1  ;;  %649 = vmax.xlane.f32.xlu0 %v648_v55 }
 0x294   :  { %v620_v63 = vadd.f32 %v619_v62, %v6029_v47  ;;  %v657_v6 = vsel %vm647_vm13, %v628_v5, -inf }
 0x295   :  { %v4808_v3 = vpop.f32.mrf.mxu1 }
 0x296   :  { %v651_v9 = vsel %vm647_vm13, %v620_v63, -inf  ;;  %v641_v2 = vadd.f32 %v4808_v3, %v6047_v11 }
 0x297   :  { %v632_v0 = vpop.f32.mrf.mxu1  ;;  %652 = vmax.xlane.f32.xlu1 %v651_v9  ;;  %655 = vmax.xlane.f32.xlu0 %v654_v10 }
 0x298   :  { %v633_v14 = vadd.f32 %v632_v0, %v6040_v4  ;;  %v666_v12 = vsel %vm647_vm13, %v641_v2, -inf }
 0x299   :  { %v4809_v15 = vpop.f32.mrf.mxu1 }
 0x29a   :  { %v660_v17 = vsel %vm647_vm13, %v633_v14, -inf  ;;  %v644_v19 = vadd.f32 %v4809_v15, %v6058_v18 }
 0x29b   :  { %v635_v7 = vpop.f32.mrf.mxu1  ;;  %658 = vmax.xlane.f32.xlu1 %v657_v6  ;;  %661 = vmax.xlane.f32.xlu0 %v660_v17 }
 0x29c   :  { %v636_v8 = vadd.f32 %v635_v7, %v6052_v1  ;;  %v669_v13 = vsel %vm647_vm13, %v644_v19, -inf }
 0x29e   :  { %v663_v20 = vsel %vm647_vm13, %v636_v8, -inf }
 0x29f   :  { %664 = vmax.xlane.f32.xlu1 %v663_v20  ;;  %667 = vmax.xlane.f32.xlu0 %v666_v12 }
 0x2a3   :  { %670 = vmax.xlane.f32.xlu1 %v669_v13 }
 0x31c   :  { %v650_v21 = vpop.xlane.xlu0 %649 }
 0x31d   :  { %v672_v22 = vsub.f32 %v617_v45, %v650_v21 }
 0x31f   :  { %v680_v29 = vmul.f32 1.442695, %v672_v22 }
 0x320   :  { %v653_v23 = vpop.xlane.xlu1 %652  ;;  %v656_v24 = vpop.xlane.xlu0 %655 }
 0x321   :  { %v674_v25 = vsub.f32 %v625_v52, %v656_v24  ;;  %v673_v26 = vsub.f32 %v620_v63, %v653_v23 }
 0x323   :  { %v684_v28 = vmul.f32 1.442695, %v674_v25  ;;  %v682_v33 = vmul.f32 1.442695, %v673_v26 }
 0x324   :  { %v659_v30 = vpop.xlane.xlu1 %658  ;;  %v662_v31 = vpop.xlane.xlu0 %661 }
 0x325   :  { %v675_v32 = vsub.f32 %v628_v5, %v659_v30  ;;  %5402 = vpow2.f32 %v684_v28  ;;  %v676_v39 = vsub.f32 %v633_v14, %v662_v31 }
 0x326   :  { %5404 = vpow2.f32 %v680_v29 }
 0x327   :  { %v686_v35 = vmul.f32 1.442695, %v675_v32  ;;  %v688_v45 = vmul.f32 1.442695, %v676_v39 }
 0x328   :  { %v668_v40 = vpop.xlane.xlu0 %667  ;;  %v665_v15 = vpop.xlane.xlu1 %664 }
 0x329   :  { %5406 = vpow2.f32 %v686_v35  ;;  %v678_v42 = vsub.f32 %v641_v2, %v668_v40  ;;  %v677_v17 = vsub.f32 %v636_v8, %v665_v15 }
 0x32a   :  { %5408 = vpow2.f32 %v682_v33 }
 0x32b   :  { %v692_v44 = vmul.f32 1.442695, %v678_v42  ;;  %v690_v20 = vmul.f32 1.442695, %v677_v17 }
 0x32c   :  { %v671_v2 = vpop.xlane.xlu1 %670 }
 0x32d   :  { %5410 = vpow2.f32 %v692_v44  ;;  %v679_v6 = vsub.f32 %v644_v19, %v671_v2 }
 0x32e   :  { %5412 = vpow2.f32 %v688_v45 }
 0x32f   :  { %v694_v7 = vmul.f32 1.442695, %v679_v6 }
 0x331   :  { %5414 = vpow2.f32 %v694_v7 }
 0x332   :  { %v5403_v46 = vpop.eup %5402  ;;  %5416 = vpow2.f32 %v690_v20 }
 0x333   :  { %v702_v49 = vsel %vm647_vm13, %v5403_v46, 0.0  ;;  %v5405_v52 = vpop.eup %5404 }
 0x334   :  { %703 = vadd.xlane.f32.xlu0 %v702_v49  ;;  %v696_v3 = vsel %vm647_vm13, %v5405_v52, 0.0 }
 0x336   :  { %v5407_v55 = vpop.eup %5406 }
 0x337   :  { %v705_v62 = vsel %vm647_vm13, %v5407_v55, 0.0  ;;  %v5409_v63 = vpop.eup %5408 }
 0x338   :  { %706 = vadd.xlane.f32.xlu1 %v705_v62  ;;  %697 = vadd.xlane.f32.xlu0 %v696_v3  ;;  %v699_v9 = vsel %vm647_vm13, %v5409_v63, 0.0 }
 0x33a   :  { %v6068_v5 = vpop.eup %5410 }
 0x33b   :  { %v714_v10 = vsel %vm647_vm13, %v6068_v5, 0.0  ;;  %v6073_v0 = vpop.eup %5412 }
 0x33c   :  { %700 = vadd.xlane.f32.xlu1 %v699_v9  ;;  %715 = vadd.xlane.f32.xlu0 %v714_v10  ;;  %v708_v14 = vsel %vm647_vm13, %v6073_v0, 0.0 }
 0x33e   :  { %v5415_v12 = vpop.eup %5414 }
 0x33f   :  { %v717_v13 = vsel %vm647_vm13, %v5415_v12, 0.0  ;;  %v5417_v21 = vpop.eup %5416 }
 0x340   :  { %709 = vadd.xlane.f32.xlu0 %v708_v14  ;;  %v711_v22 = vsel %vm647_vm13, %v5417_v21, 0.0 }
 0x34d   :  { %841 = vrot.lane.b32.xlu1 %v5950_v37, %s5691_s0 }
 0x351   :  { %839 = vrot.lane.b32.xlu1 %v5958_v43, %s5691_s0 }
 0x356   :  { %843 = vrot.lane.b32.xlu0 %v5948_v34, %s5691_s0 }
 0x35a   :  { %825 = vrot.lane.b32.xlu0 %v5944_v27, %s5691_s0 }
 0x35e   :  { %829 = vrot.lane.b32.xlu0 %v5990_v57, %s5691_s0 }
 0x375   :  { %718 = vadd.xlane.f32.xlu1 %v717_v13 }
 0x379   :  { %712 = vadd.xlane.f32.xlu1 %v711_v22 }
 0x38a   :  { %837 = vrot.lane.b32.xlu1 %v5966_v50, %s5691_s0 }
 0x38e   :  { %827 = vrot.lane.b32.xlu1 %v5988_v56, %s5691_s0 }
 0x392   :  { %831 = vrot.lane.b32.xlu1 %v5996_v58, %s5691_s0 }
 0x3bd   :  { %v704_v8 = vpop.xlane.xlu0 %703 }
 0x3c1   :  { %v707_v19 = vpop.xlane.xlu1 %706  ;;  %v698_v23 = vpop.xlane.xlu0 %697 }
 0x3c2   :  { %5418 = vrcp.f32 %v707_v19 }
 0x3c3   :  { %5420 = vrcp.f32 %v698_v23 }
 0x3c4   :  { %5422 = vrcp.f32 %v704_v8 }
 0x3c5   :  { %v701_v24 = vpop.xlane.xlu1 %700  ;;  %v716_v25 = vpop.xlane.xlu0 %715 }
 0x3c6   :  { %5424 = vrcp.f32 %v701_v24 }
 0x3c9   :  { %v710_v26 = vpop.xlane.xlu0 %709  ;;  %v842_v49 = vpop.permute.xlu1 %841 }
 0x3ca   :  { %v864_v62 = vsel %vm557_vm1, %v842_v49, 0 }
 0x3cd   :  { %v844_v28 = vpop.permute.xlu0 %843  ;;  %v840_v3 = vpop.permute.xlu1 %839 }
 0x3ce   :  { %5230 = vmatprep.subr.msk.bf16.mxu0 %vm557_vm1, %v844_v28  ;;  %v867_v45 = vsel %vm557_vm1, %v844_v28, 0 }
 0x3cf   :  { %v5419_v29 = vpop.eup %5418 }
 0x3d0   :  { %v5421_v30 = vpop.eup %5420  ;;  %v731_v33 = vmul.f32 %v5419_v29, %v5407_v55 }
 0x3d1   :  { %v5423_v31 = vpop.eup %5422  ;;  %v728_v35 = vmul.f32 %v5421_v30, %v5405_v52  ;;  %v826_v8 = vpop.permute.xlu0 %825 }
 0x3d2   :  { %v730_v40 = vmul.f32 %v5423_v31, %v5403_v46  ;;  %v861_v46 = vsel %vm557_vm1, %v840_v3, 0 }
 0x3d3   :  { %v5425_v32 = vpop.eup %5424 }
 0x3d4   :  { %v729_v39 = vmul.f32 %v5425_v32, %v5409_v63  ;;  %v737_v44 = vpack.c.bf16 %v731_v33, %v730_v40 }
 0x3d5   :  { %v830_v23 = vpop.permute.xlu0 %829 }
 0x3d6   :  { %v736_v42 = vpack.c.bf16 %v729_v39, %v728_v35 }
 0x3d8   :  { %4818 = vmatprep.mubr.msk.bf16.mxu0 %vm647_vm13, %v736_v42 }
 0x3d9   :  { %4819 = vmatmul.mubr.msk.bf16.vlgmr.msra.gmra.mxu0 %vm647_vm13, %v737_v44 }
 0x3da   :  { %4827 = vmatpush3.bf16.xpose.msra.mxu0 %v867_v45 }
 0x3db   :  { %5231 = vmatprep.subr.msk.bf16.mxu0 %vm557_vm1, %v842_v49 }
 0x3e2   :  { %4829 = vmatpush3.bf16.xpose.msra.mxu0 %v864_v62 }
 0x3e3   :  { %5232 = vmatprep.subr.msk.bf16.mxu0 %vm557_vm1, %v840_v3 }
 0x3ea   :  { %4831 = vmatpush3.bf16.xpose.msra.mxu0 %v861_v46 }
 0x3fe   :  { %v719_v52 = vpop.xlane.xlu1 %718 }
 0x3ff   :  { %5426 = vrcp.f32 %v719_v52 }
 0x400   :  { %5428 = vrcp.f32 %v710_v26 }
 0x401   :  { %5430 = vrcp.f32 %v716_v25 }
 0x402   :  { %v713_v55 = vpop.xlane.xlu1 %712 }
 0x403   :  { %5432 = vrcp.f32 %v713_v55 }
 0x406   :  { %v838_v63 = vpop.permute.xlu1 %837 }
 0x407   :  { %5233 = vmatprep.subr.msk.bf16.mxu0 %vm557_vm1, %v838_v63  ;;  %v858_v9 = vsel %vm557_vm1, %v838_v63, 0 }
 0x408   :  { %4833 = vmatpush3.bf16.xpose.msra.mxu0 %v858_v9 }
 0x40a   :  { %v828_v19 = vpop.permute.xlu1 %827 }
 0x40c   :  { %v5427_v10 = vpop.eup %5426 }
 0x40d   :  { %v5429_v14 = vpop.eup %5428  ;;  %v735_v6 = vmul.f32 %v5427_v10, %v5415_v12 }
 0x40e   :  { %v5431_v15 = vpop.eup %5430  ;;  %v732_v17 = vmul.f32 %v5429_v14, %v6073_v0  ;;  %v832_v12 = vpop.permute.xlu1 %831 }
 0x40f   :  { %v734_v20 = vmul.f32 %v5431_v15, %v6068_v5 }
 0x410   :  { %v5433_v2 = vpop.eup %5432 }
 0x411   :  { %v733_v7 = vmul.f32 %v5433_v2, %v5417_v21  ;;  %v739_v22 = vpack.c.bf16 %v735_v6, %v734_v20 }
 0x413   :  { %v738_v13 = vpack.c.bf16 %v733_v7, %v732_v17 }
 0x415   :  { %4822 = vmatprep.mubr.msk.bf16.mxu0 %vm647_vm13, %v738_v13 }
 0x416   :  { %4823 = vmatmul.mubr.msk.bf16.gmra.mxu0 %vm647_vm13, %v739_v22 }
 0x417   :  { %4834 = vmatprep.mubr.msk.bf16.mxu0 %vm557_vm1, %v826_v8 }
 0x41e   :  { %4835 = vmatmul.mubr.msk.bf16.vlgmr.msra.gmra.mxu0 %vm557_vm1, %v828_v19 }
 0x41f   :  { %4838 = vmatprep.mubr.msk.bf16.mxu0 %vm557_vm1, %v830_v23 }
 0x426   :  { %4839 = vmatmul.mubr.msk.bf16.gmra.mxu0 %vm557_vm1, %v832_v12 }
 0x499   :  { %v6113_v0 = vpop.f32.mrf.mxu0 }
 0x49b   :  { %v6115_v5 = vpop.f32.mrf.mxu0 }
 0x49d   :  { %v6117_v21 = vpop.f32.mrf.mxu0 }
 0x49f   :  { %v6119_v24 = vpop.f32.mrf.mxu0 }
 0x4d6   :  { %v6121_v25 = vpop.f32.mrf.mxu0 }
 0x4d8   :  { %v6123_v26 = vpop.f32.mrf.mxu0 }
 0x4da   :  { %v6125_v28 = vpop.f32.mrf.mxu0 }
 0x4dc   :  { %v6127_v29 = vpop.f32.mrf.mxu0 }
 0x4de   :  { %v4836_v30 = vpop.f32.mrf.mxu0 }
 0x4df   :  { %v912_v35 = vadd.f32 %v4836_v30, %v6024_v41 }
 0x4e0   :  { %v903_v31 = vpop.f32.mrf.mxu0 }
 0x4e1   :  { %v904_v32 = vadd.f32 %v903_v31, %v6020_v38  ;;  %v940_v62 = vsel %vm647_vm13, %v912_v35, -inf }
 0x4e2   :  { %v4837_v33 = vpop.f32.mrf.mxu0 }
 0x4e3   :  { %v934_v39 = vsel %vm647_vm13, %v904_v32, -inf  ;;  %v915_v45 = vadd.f32 %v4837_v33, %v6035_v59 }
 0x4e4   :  { %v906_v40 = vpop.f32.mrf.mxu0  ;;  %935 = vmax.xlane.f32.xlu0 %v934_v39 }
 0x4e5   :  { %v907_v42 = vadd.f32 %v906_v40, %v6029_v47  ;;  %v943_v63 = vsel %vm647_vm13, %v915_v45, -inf }
 0x4e6   :  { %v4840_v44 = vpop.f32.mrf.mxu0 }
 0x4e7   :  { %v937_v49 = vsel %vm647_vm13, %v907_v42, -inf  ;;  %v928_v52 = vadd.f32 %v4840_v44, %v6047_v11 }
 0x4e8   :  { %938 = vmax.xlane.f32.xlu1 %v937_v49  ;;  %941 = vmax.xlane.f32.xlu0 %v940_v62  ;;  %v919_v3 = vpop.f32.mrf.mxu0 }
 0x4e9   :  { %v920_v15 = vadd.f32 %v919_v3, %v6040_v4  ;;  %v952_v2 = vsel %vm647_vm13, %v928_v52, -inf }
 0x4ea   :  { %v4841_v46 = vpop.f32.mrf.mxu0 }
 0x4eb   :  { %v931_v55 = vadd.f32 %v4841_v46, %v6058_v18  ;;  %v946_v17 = vsel %vm647_vm13, %v920_v15, -inf }
 0x4ec   :  { %944 = vmax.xlane.f32.xlu0 %v943_v63  ;;  %v922_v9 = vpop.f32.mrf.mxu0 }
 0x4ed   :  { %v923_v10 = vadd.f32 %v922_v9, %v6052_v1  ;;  %v955_v14 = vsel %vm647_vm13, %v931_v55, -inf }
 0x4ee   :  { %956 = vmax.xlane.f32.xlu1 %v955_v14 }
 0x4ef   :  { %v949_v6 = vsel %vm647_vm13, %v923_v10, -inf }
 0x4f0   :  { %953 = vmax.xlane.f32.xlu0 %v952_v2 }
 0x4f2   :  { %950 = vmax.xlane.f32.xlu1 %v949_v6 }
 0x4f4   :  { %947 = vmax.xlane.f32.xlu0 %v946_v17 }
 0x503   :  { %1034 = vrot.lane.b32.xlu1 %v5968_v51, %s5691_s0 }
 0x507   :  { %1032 = vrot.lane.b32.xlu1 %v5977_v53, %s5691_s0 }
 0x50a   :  { %1036 = vrot.lane.b32.xlu0 %v5964_v48, %s5691_s0 }
 0x50b   :  { %1030 = vrot.lane.b32.xlu1 %v5981_v54, %s5691_s0 }
 0x56d   :  { %v936_v7 = vpop.xlane.xlu0 %935 }
 0x56e   :  { %v958_v20 = vsub.f32 %v904_v32, %v936_v7 }
 0x570   :  { %v966_v12 = vmul.f32 1.442695, %v958_v20 }
 0x571   :  { %v939_v13 = vpop.xlane.xlu1 %938  ;;  %v942_v22 = vpop.xlane.xlu0 %941 }
 0x572   :  { %v960_v8 = vsub.f32 %v912_v35, %v942_v22  ;;  %v959_v19 = vsub.f32 %v907_v42, %v939_v13 }
 0x574   :  { %v970_v23 = vmul.f32 1.442695, %v960_v8  ;;  %v968_v39 = vmul.f32 1.442695, %v959_v19 }
 0x575   :  { %v945_v30 = vpop.xlane.xlu0 %944 }
 0x576   :  { %v961_v31 = vsub.f32 %v915_v45, %v945_v30  ;;  %5434 = vpow2.f32 %v970_v23 }
 0x577   :  { %v957_v33 = vpop.xlane.xlu1 %956  ;;  %5436 = vpow2.f32 %v966_v12 }
 0x578   :  { %v972_v40 = vmul.f32 1.442695, %v961_v31  ;;  %v965_v44 = vsub.f32 %v931_v55, %v957_v33 }
 0x579   :  { %v954_v49 = vpop.xlane.xlu0 %953 }
 0x57a   :  { %5438 = vpow2.f32 %v972_v40  ;;  %v964_v62 = vsub.f32 %v928_v52, %v954_v49  ;;  %v980_v46 = vmul.f32 1.442695, %v965_v44 }
 0x57b   :  { %v951_v3 = vpop.xlane.xlu1 %950  ;;  %5440 = vpow2.f32 %v968_v39 }
 0x57c   :  { %v978_v32 = vmul.f32 1.442695, %v964_v62  ;;  %v963_v63 = vsub.f32 %v923_v10, %v951_v3 }
 0x57d   :  { %v948_v35 = vpop.xlane.xlu0 %947 }
 0x57e   :  { %5442 = vpow2.f32 %v978_v32  ;;  %v962_v42 = vsub.f32 %v920_v15, %v948_v35  ;;  %v976_v45 = vmul.f32 1.442695, %v963_v63 }
 0x57f   :  { %v1035_v9 = vpop.permute.xlu1 %1034  ;;  %5444 = vpow2.f32 %v980_v46 }
 0x580   :  { %v974_v14 = vmul.f32 1.442695, %v962_v42 }
 0x581   :  { %v1037_v2 = vpop.permute.xlu0 %1036 }
 0x582   :  { %5446 = vpow2.f32 %v974_v14  ;;  %4842 = vmatprep.subr.bf16.mxu1 %v1037_v2 }
 0x583   :  { %4843 = vmatpush3.bf16.msra.mxu1 %v1037_v2  ;;  %v6153_v55 = vpop.eup %5434  ;;  %5448 = vpow2.f32 %v976_v45  ;;  %v1033_v52 = vpop.permute.xlu1 %1032 }
 0x584   :  { %4844 = vmatprep.subr.bf16.mxu1 %v1035_v9  ;;  %v988_v6 = vsel %vm647_vm13, %v6153_v55, 0.0  ;;  %v5437_v10 = vpop.eup %5436 }
 0x585   :  { %989 = vadd.xlane.f32.xlu0 %v988_v6  ;;  %v982_v20 = vsel %vm647_vm13, %v5437_v10, 0.0 }
 0x587   :  { %v5439_v17 = vpop.eup %5438  ;;  %4845 = vmatpush3.bf16.msra.mxu1 %v1035_v9  ;;  %v1031_v22 = vpop.permute.xlu1 %1030 }
 0x588   :  { %4846 = vmatprep.subr.bf16.mxu1 %v1033_v52  ;;  %v991_v15 = vsel %vm647_vm13, %v5439_v17, 0.0  ;;  %v5441_v7 = vpop.eup %5440 }
 0x589   :  { %992 = vadd.xlane.f32.xlu1 %v991_v15  ;;  %983 = vadd.xlane.f32.xlu0 %v982_v20  ;;  %v985_v8 = vsel %vm647_vm13, %v5441_v7, 0.0 }
 0x58b   :  { %v6159_v13 = vpop.eup %5442  ;;  %4847 = vmatpush3.bf16.msra.mxu1 %v1033_v52 }
 0x58c   :  { %4848 = vmatprep.subr.bf16.mxu1 %v1031_v22  ;;  %v1000_v19 = vsel %vm647_vm13, %v6159_v13, 0.0  ;;  %v5445_v23 = vpop.eup %5444 }
 0x58d   :  { %986 = vadd.xlane.f32.xlu1 %v985_v8  ;;  %1001 = vadd.xlane.f32.xlu0 %v1000_v19  ;;  %v1003_v31 = vsel %vm647_vm13, %v5445_v23, 0.0 }
 0x58f   :  { %v5447_v12 = vpop.eup %5446  ;;  %4849 = vmatpush3.bf16.msra.mxu1 %v1031_v22 }
 0x590   :  { %v994_v30 = vsel %vm647_vm13, %v5447_v12, 0.0  ;;  %v5449_v33 = vpop.eup %5448 }
 0x591   :  { %995 = vadd.xlane.f32.xlu1 %v994_v30  ;;  %1004 = vadd.xlane.f32.xlu0 %v1003_v31  ;;  %v997_v39 = vsel %vm647_vm13, %v5449_v33, 0.0 }
 0x595   :  { %998 = vadd.xlane.f32.xlu0 %v997_v39 }
 0x5a2   :  { %1131 = vrot.lane.b32.xlu1 %v5950_v37, %s5692_s21 }
 0x5a6   :  { %1129 = vrot.lane.b32.xlu1 %v5958_v43, %s5692_s21 }
 0x5aa   :  { %1127 = vrot.lane.b32.xlu1 %v5966_v50, %s5692_s21 }
 0x5ab   :  { %1133 = vrot.lane.b32.xlu0 %v5948_v34, %s5692_s21 }
 0x5ae   :  { %1121 = vrot.lane.b32.xlu1 %v5988_v56, %s5692_s21 }
 0x5af   :  { %1119 = vrot.lane.b32.xlu0 %v5944_v27, %s5692_s21 }
 0x5b2   :  { %1125 = vrot.lane.b32.xlu1 %v5996_v58, %s5692_s21 }
 0x5b3   :  { %1123 = vrot.lane.b32.xlu0 %v5990_v57, %s5692_s21 }
 0x60e   :  { %v990_v40 = vpop.xlane.xlu0 %989 }
 0x612   :  { %v993_v44 = vpop.xlane.xlu1 %992  ;;  %v984_v49 = vpop.xlane.xlu0 %983 }
 0x613   :  { %5450 = vrcp.f32 %v993_v44 }
 0x614   :  { %5452 = vrcp.f32 %v984_v49 }
 0x615   :  { %5454 = vrcp.f32 %v990_v40 }
 0x616   :  { %v987_v62 = vpop.xlane.xlu1 %986  ;;  %v1002_v3 = vpop.xlane.xlu0 %1001 }
 0x617   :  { %5456 = vrcp.f32 %v987_v62 }
 0x61a   :  { %v996_v32 = vpop.xlane.xlu1 %995  ;;  %v1005_v46 = vpop.xlane.xlu0 %1004 }
 0x61b   :  { %5458 = vrcp.f32 %v1005_v46 }
 0x61c   :  { %5460 = vrcp.f32 %v996_v32 }
 0x61d   :  { %5462 = vrcp.f32 %v1002_v3 }
 0x61e   :  { %v999_v63 = vpop.xlane.xlu0 %998  ;;  %v1132_v31 = vpop.permute.xlu1 %1131 }
 0x61f   :  { %5464 = vrcp.f32 %v999_v63  ;;  %v1154_v3 = vsel %vm557_vm1, %v1132_v31, 0 }
 0x620   :  { %v5451_v35 = vpop.eup %5450 }
 0x621   :  { %v5453_v42 = vpop.eup %5452  ;;  %v1017_v2 = vmul.f32 %v5451_v35, %v5439_v17 }
 0x622   :  { %v5455_v9 = vpop.eup %5454  ;;  %v1134_v14 = vpop.permute.xlu0 %1133  ;;  %v1014_v52 = vmul.f32 %v5453_v42, %v5437_v10 }
 0x623   :  { %5234 = vmatprep.subr.msk.bf16.mxu1 %vm557_vm1, %v1134_v14  ;;  %v1016_v15 = vmul.f32 %v5455_v9, %v6153_v55  ;;  %v1157_v19 = vsel %vm557_vm1, %v1134_v14, 0  ;;  %v1130_v32 = vpop.permute.xlu1 %1129 }
 0x624   :  { %v5457_v45 = vpop.eup %5456 }
 0x625   :  { %v1015_v6 = vmul.f32 %v5457_v45, %v5441_v7  ;;  %v1023_v22 = vpack.c.bf16 %v1017_v2, %v1016_v15 }
 0x626   :  { %v1120_v62 = vpop.permute.xlu0 %1119 }
 0x627   :  { %v1022_v20 = vpack.c.bf16 %v1015_v6, %v1014_v52 }
 0x628   :  { %v5459_v8 = vpop.eup %5458 }
 0x629   :  { %4850 = vmatprep.mubr.msk.bf16.mxu1 %vm647_vm13, %v1022_v20  ;;  %v5461_v30 = vpop.eup %5460  ;;  %v1021_v10 = vmul.f32 %v5459_v8, %v5445_v23  ;;  %v1151_v23 = vsel %vm557_vm1, %v1130_v32, 0 }
 0x62a   :  { %4851 = vmatmul.mubr.msk.bf16.vlgmr.msra.gmra.mxu1 %vm647_vm13, %v1023_v22  ;;  %v5463_v39 = vpop.eup %5462  ;;  %v1018_v7 = vmul.f32 %v5461_v30, %v5447_v12  ;;  %v1128_v12 = vpop.permute.xlu1 %1127 }
 0x62b   :  { %4859 = vmatpush3.bf16.xpose.msra.mxu1 %v1157_v19  ;;  %v1020_v55 = vmul.f32 %v5463_v39, %v6159_v13  ;;  %v1148_v13 = vsel %vm557_vm1, %v1128_v12, 0  ;;  %v1124_v46 = vpop.permute.xlu0 %1123 }
 0x62c   :  { %5235 = vmatprep.subr.msk.bf16.mxu1 %vm557_vm1, %v1132_v31  ;;  %v5465_v17 = vpop.eup %5464 }
 0x62d   :  { %v1019_v40 = vmul.f32 %v5465_v17, %v5449_v33  ;;  %v1025_v49 = vpack.c.bf16 %v1021_v10, %v1020_v55 }
 0x62e   :  { %v1122_v33 = vpop.permute.xlu1 %1121 }
 0x62f   :  { %v1024_v44 = vpack.c.bf16 %v1019_v40, %v1018_v7 }
 0x631   :  { %4854 = vmatprep.mubr.msk.bf16.mxu1 %vm647_vm13, %v1024_v44 }
 0x632   :  { %4855 = vmatmul.mubr.msk.bf16.gmra.mxu1 %vm647_vm13, %v1025_v49  ;;  %v1126_v63 = vpop.permute.xlu1 %1125 }
 0x633   :  { %4861 = vmatpush3.bf16.xpose.msra.mxu1 %v1154_v3  ;;  %4866 = vmatprep.mubr.msk.bf16.mxu1 %vm557_vm1, %v1120_v62 }
 0x634   :  { %5236 = vmatprep.subr.msk.bf16.mxu1 %vm557_vm1, %v1130_v32 }
 0x63b   :  { %4863 = vmatpush3.bf16.xpose.msra.mxu1 %v1151_v23 }
 0x63c   :  { %5237 = vmatprep.subr.msk.bf16.mxu1 %vm557_vm1, %v1128_v12 }
 0x643   :  { %4865 = vmatpush3.bf16.xpose.msra.mxu1 %v1148_v13 }
 0x64a   :  { %4867 = vmatmul.mubr.msk.bf16.vlgmr.msra.gmra.mxu1 %vm557_vm1, %v1122_v33 }
 0x64b   :  { %4870 = vmatprep.mubr.msk.bf16.mxu1 %vm557_vm1, %v1124_v46 }
 0x652   :  { %4871 = vmatmul.mubr.msk.bf16.gmra.mxu1 %vm557_vm1, %v1126_v63 }
 0x6ea   :  { %v6201_v35 = vpop.f32.mrf.mxu1 }
 0x6ec   :  { %v6203_v42 = vpop.f32.mrf.mxu1 }
 0x6ee   :  { %v6205_v9 = vpop.f32.mrf.mxu1 }
 0x6f0   :  { %v6209_v45 = vpop.f32.mrf.mxu1 }
 0x6f2   :  { %v6213_v52 = vpop.f32.mrf.mxu1 }
 0x6f4   :  { %v6215_v6 = vpop.f32.mrf.mxu1 }
 0x6f6   :  { %v6217_v15 = vpop.f32.mrf.mxu1 }
 0x6f8   :  { %v6221_v22 = vpop.f32.mrf.mxu1 }
 0x70a   :  { %v4868_v19 = vpop.f32.mrf.mxu1 }
 0x70b   :  { %v1202_v17 = vadd.f32 %v4868_v19, %v6024_v41 }
 0x70c   :  { %v1193_v30 = vpop.f32.mrf.mxu1 }
 0x70d   :  { %v1194_v31 = vadd.f32 %v1193_v30, %v6020_v38  ;;  %v1230_v62 = vsel %vm647_vm13, %v1202_v17, -inf }
 0x70e   :  { %v4869_v39 = vpop.f32.mrf.mxu1 }
 0x70f   :  { %v1224_v10 = vsel %vm647_vm13, %v1194_v31, -inf  ;;  %v1205_v44 = vadd.f32 %v4869_v39, %v6035_v59 }
 0x710   :  { %v1196_v7 = vpop.f32.mrf.mxu1  ;;  %1225 = vmax.xlane.f32.xlu0 %v1224_v10 }
 0x711   :  { %v1197_v40 = vadd.f32 %v1196_v7, %v6029_v47  ;;  %v1233_v13 = vsel %vm647_vm13, %v1205_v44, -inf }
 0x712   :  { %v4872_v55 = vpop.f32.mrf.mxu1 }
 0x713   :  { %v1227_v49 = vsel %vm647_vm13, %v1197_v40, -inf  ;;  %v1218_v23 = vadd.f32 %v4872_v55, %v6047_v11 }
 0x714   :  { %1228 = vmax.xlane.f32.xlu1 %v1227_v49  ;;  %1231 = vmax.xlane.f32.xlu0 %v1230_v62  ;;  %v1209_v3 = vpop.f32.mrf.mxu1 }
 0x715   :  { %v1210_v19 = vadd.f32 %v1209_v3, %v6040_v4  ;;  %v1242_v30 = vsel %vm647_vm13, %v1218_v23, -inf }
 0x716   :  { %v4873_v32 = vpop.f32.mrf.mxu1 }
 0x717   :  { %v1221_v12 = vadd.f32 %v4873_v32, %v6058_v18  ;;  %v1236_v10 = vsel %vm647_vm13, %v1210_v19, -inf }
 0x718   :  { %1234 = vmax.xlane.f32.xlu0 %v1233_v13  ;;  %v1212_v33 = vpop.f32.mrf.mxu1 }
 0x719   :  { %v1213_v46 = vadd.f32 %v1212_v33, %v6052_v1  ;;  %v1245_v63 = vsel %vm647_vm13, %v1221_v12, -inf }
 0x71a   :  { %1246 = vmax.xlane.f32.xlu1 %v1245_v63 }
 0x71b   :  { %v1239_v39 = vsel %vm647_vm13, %v1213_v46, -inf }
 0x71c   :  { %1243 = vmax.xlane.f32.xlu0 %v1242_v30 }
 0x71e   :  { %1240 = vmax.xlane.f32.xlu1 %v1239_v39 }
 0x720   :  { %1237 = vmax.xlane.f32.xlu0 %v1236_v10 }
 0x72f   :  { %1320 = vrot.lane.b32.xlu1 %v5968_v51, %s5692_s21 }
 0x733   :  { %1318 = vrot.lane.b32.xlu1 %v5977_v53, %s5692_s21 }
 0x736   :  { %1322 = vrot.lane.b32.xlu0 %v5964_v48, %s5692_s21 }
 0x737   :  { %1316 = vrot.lane.b32.xlu1 %v5981_v54, %s5692_s21 }
 0x799   :  { %v1226_v7 = vpop.xlane.xlu0 %1225 }
 0x79a   :  { %v1248_v55 = vsub.f32 %v1194_v31, %v1226_v7 }
 0x79c   :  { %v1256_v33 = vmul.f32 1.442695, %v1248_v55 }
 0x79d   :  { %v1229_v49 = vpop.xlane.xlu1 %1228  ;;  %v1232_v62 = vpop.xlane.xlu0 %1231 }
 0x79e   :  { %v1250_v3 = vsub.f32 %v1202_v17, %v1232_v62  ;;  %v1249_v32 = vsub.f32 %v1197_v40, %v1229_v49 }
 0x7a0   :  { %v1260_v13 = vmul.f32 1.442695, %v1250_v3  ;;  %v1258_v10 = vmul.f32 1.442695, %v1249_v32 }
 0x7a1   :  { %v1235_v63 = vpop.xlane.xlu0 %1234 }
 0x7a2   :  { %v1251_v30 = vsub.f32 %v1205_v44, %v1235_v63  ;;  %5466 = vpow2.f32 %v1260_v13 }
 0x7a3   :  { %v1247_v39 = vpop.xlane.xlu1 %1246  ;;  %5468 = vpow2.f32 %v1256_v33 }
 0x7a4   :  { %v1262_v16 = vmul.f32 1.442695, %v1251_v30  ;;  %v1255_v36 = vsub.f32 %v1221_v12, %v1247_v39 }
 0x7a5   :  { %v1244_v20 = vpop.xlane.xlu0 %1243 }
 0x7a6   :  { %5470 = vpow2.f32 %v1262_v16  ;;  %v1254_v14 = vsub.f32 %v1218_v23, %v1244_v20  ;;  %v1270_v7 = vmul.f32 1.442695, %v1255_v36 }
 0x7a7   :  { %v1241_v8 = vpop.xlane.xlu1 %1240  ;;  %5472 = vpow2.f32 %v1258_v10 }
 0x7a8   :  { %v1268_v31 = vmul.f32 1.442695, %v1254_v14  ;;  %v1253_v2 = vsub.f32 %v1213_v46, %v1241_v8 }
 0x7a9   :  { %v1238_v17 = vpop.xlane.xlu0 %1237 }
 0x7aa   :  { %5474 = vpow2.f32 %v1268_v31  ;;  %v1252_v40 = vsub.f32 %v1210_v19, %v1238_v17  ;;  %v1266_v44 = vmul.f32 1.442695, %v1253_v2 }
 0x7ab   :  { %v1321_v55 = vpop.permute.xlu1 %1320  ;;  %5476 = vpow2.f32 %v1270_v7 }
 0x7ac   :  { %v1264_v49 = vmul.f32 1.442695, %v1252_v40 }
 0x7ad   :  { %v1323_v62 = vpop.permute.xlu0 %1322 }
 0x7ae   :  { %5478 = vpow2.f32 %v1264_v49  ;;  %4874 = vmatprep.subr.bf16.mxu0 %v1323_v62 }
 0x7af   :  { %4875 = vmatpush3.bf16.msra.mxu0 %v1323_v62  ;;  %v6249_v12 = vpop.eup %5466  ;;  %5480 = vpow2.f32 %v1266_v44  ;;  %v1319_v16 = vpop.permute.xlu1 %1318 }
 0x7b0   :  { %4876 = vmatprep.subr.bf16.mxu0 %v1321_v55  ;;  %v1278_v36 = vsel %vm647_vm13, %v6249_v12, 0.0  ;;  %v5469_v14 = vpop.eup %5468 }
 0x7b1   :  { %1279 = vadd.xlane.f32.xlu0 %v1278_v36  ;;  %v1272_v23 = vsel %vm647_vm13, %v5469_v14, 0.0 }
 0x7b3   :  { %v5471_v20 = vpop.eup %5470  ;;  %4877 = vmatpush3.bf16.msra.mxu0 %v1321_v55  ;;  %v1317_v19 = vpop.permute.xlu1 %1316 }
 0x7b4   :  { %4878 = vmatprep.subr.bf16.mxu0 %v1319_v16  ;;  %v1281_v8 = vsel %vm647_vm13, %v5471_v20, 0.0  ;;  %v5473_v2 = vpop.eup %5472 }
 0x7b5   :  { %1282 = vadd.xlane.f32.xlu1 %v1281_v8  ;;  %1273 = vadd.xlane.f32.xlu0 %v1272_v23  ;;  %v1275_v3 = vsel %vm647_vm13, %v5473_v2, 0.0 }
 0x7b7   :  { %v6255_v46 = vpop.eup %5474  ;;  %4879 = vmatpush3.bf16.msra.mxu0 %v1319_v16 }
 0x7b8   :  { %4880 = vmatprep.subr.bf16.mxu0 %v1317_v19  ;;  %v1290_v32 = vsel %vm647_vm13, %v6255_v46, 0.0  ;;  %v5477_v13 = vpop.eup %5476 }
 0x7b9   :  { %1276 = vadd.xlane.f32.xlu1 %v1275_v3  ;;  %1291 = vadd.xlane.f32.xlu0 %v1290_v32  ;;  %v1293_v30 = vsel %vm647_vm13, %v5477_v13, 0.0 }
 0x7bb   :  { %v5479_v33 = vpop.eup %5478  ;;  %4881 = vmatpush3.bf16.msra.mxu0 %v1317_v19 }
 0x7bc   :  { %v1284_v63 = vsel %vm647_vm13, %v5479_v33, 0.0  ;;  %v5481_v39 = vpop.eup %5480 }
 0x7bd   :  { %1285 = vadd.xlane.f32.xlu1 %v1284_v63  ;;  %1294 = vadd.xlane.f32.xlu0 %v1293_v30  ;;  %v1287_v10 = vsel %vm647_vm13, %v5481_v39, 0.0 }
 0x7c1   :  { %1288 = vadd.xlane.f32.xlu0 %v1287_v10 }
 0x7ce   :  { %1417 = vrot.lane.b32.xlu1 %v5950_v37, %s5693_s25 }
 0x7d2   :  { %1415 = vrot.lane.b32.xlu1 %v5958_v43, %s5693_s25 }
 0x7d6   :  { %1413 = vrot.lane.b32.xlu1 %v5966_v50, %s5693_s25 }
 0x7d7   :  { %1419 = vrot.lane.b32.xlu0 %v5948_v34, %s5693_s25 }
 0x7da   :  { %1407 = vrot.lane.b32.xlu1 %v5988_v56, %s5693_s25 }
 0x7db   :  { %1405 = vrot.lane.b32.xlu0 %v5944_v27, %s5693_s25 }
 0x7de   :  { %1411 = vrot.lane.b32.xlu1 %v5996_v58, %s5693_s25 }
 0x7df   :  { %1409 = vrot.lane.b32.xlu0 %v5990_v57, %s5693_s25 }
 0x83a   :  { %v1280_v37 = vpop.xlane.xlu0 %1279 }
 0x83e   :  { %v1283_v43 = vpop.xlane.xlu1 %1282  ;;  %v1274_v31 = vpop.xlane.xlu0 %1273 }
 0x83f   :  { %5482 = vrcp.f32 %v1283_v43 }
 0x840   :  { %5484 = vrcp.f32 %v1274_v31 }
 0x841   :  { %5486 = vrcp.f32 %v1280_v37 }
 0x842   :  { %v1277_v50 = vpop.xlane.xlu1 %1276  ;;  %v1292_v34 = vpop.xlane.xlu0 %1291 }
 0x843   :  { %5488 = vrcp.f32 %v1277_v50 }
 0x846   :  { %v1286_v7 = vpop.xlane.xlu1 %1285  ;;  %v1295_v56 = vpop.xlane.xlu0 %1294 }
 0x847   :  { %5490 = vrcp.f32 %v1295_v56 }
 0x848   :  { %5492 = vrcp.f32 %v1286_v7 }
 0x849   :  { %5494 = vrcp.f32 %v1292_v34 }
 0x84a   :  { %v1289_v27 = vpop.xlane.xlu0 %1288  ;;  %v1418_v32 = vpop.permute.xlu1 %1417 }
 0x84b   :  { %5496 = vrcp.f32 %v1289_v27  ;;  %v1440_v31 = vsel %vm557_vm1, %v1418_v32, 0 }
 0x84c   :  { %v5483_v58 = vpop.eup %5482 }
 0x84d   :  { %v5485_v17 = vpop.eup %5484  ;;  %v1307_v49 = vmul.f32 %v5483_v58, %v5471_v20 }
 0x84e   :  { %v5487_v40 = vpop.eup %5486  ;;  %v1420_v57 = vpop.permute.xlu0 %1419  ;;  %v1304_v44 = vmul.f32 %v5485_v17, %v5469_v14 }
 0x84f   :  { %5238 = vmatprep.subr.msk.bf16.mxu0 %vm557_vm1, %v1420_v57  ;;  %v1306_v16 = vmul.f32 %v5487_v40, %v6249_v12  ;;  %v1443_v19 = vsel %vm557_vm1, %v1420_v57, 0  ;;  %v1416_v50 = vpop.permute.xlu1 %1415 }
 0x850   :  { %v5489_v55 = vpop.eup %5488 }
 0x851   :  { %v1305_v62 = vmul.f32 %v5489_v55, %v5473_v2  ;;  %v1313_v8 = vpack.c.bf16 %v1307_v49, %v1306_v16 }
 0x852   :  { %v1406_v43 = vpop.permute.xlu0 %1405 }
 0x853   :  { %v1312_v36 = vpack.c.bf16 %v1305_v62, %v1304_v44 }
 0x854   :  { %v5491_v23 = vpop.eup %5490 }
 0x855   :  { %4882 = vmatprep.mubr.msk.bf16.mxu0 %vm647_vm13, %v1312_v36  ;;  %v5493_v3 = vpop.eup %5492  ;;  %v1311_v14 = vmul.f32 %v5491_v23, %v5477_v13  ;;  %v1437_v13 = vsel %vm557_vm1, %v1416_v50, 0 }
 0x856   :  { %4883 = vmatmul.mubr.msk.bf16.vlgmr.msra.gmra.mxu0 %vm647_vm13, %v1313_v8  ;;  %v5495_v63 = vpop.eup %5494  ;;  %v1308_v2 = vmul.f32 %v5493_v3, %v5479_v33  ;;  %v1414_v33 = vpop.permute.xlu1 %1413 }
 0x857   :  { %4891 = vmatpush3.bf16.xpose.msra.mxu0 %v1443_v19  ;;  %v1310_v12 = vmul.f32 %v5495_v63, %v6255_v46  ;;  %v1434_v46 = vsel %vm557_vm1, %v1414_v33, 0  ;;  %v1410_v34 = vpop.permute.xlu0 %1409 }
 0x858   :  { %5239 = vmatprep.subr.msk.bf16.mxu0 %vm557_vm1, %v1418_v32  ;;  %v5497_v20 = vpop.eup %5496 }
 0x859   :  { %v1309_v30 = vmul.f32 %v5497_v20, %v5481_v39  ;;  %v1315_v37 = vpack.c.bf16 %v1311_v14, %v1310_v12 }
 0x85a   :  { %v1408_v39 = vpop.permute.xlu1 %1407 }
 0x85b   :  { %v1314_v10 = vpack.c.bf16 %v1309_v30, %v1308_v2 }
 0x85d   :  { %4886 = vmatprep.mubr.msk.bf16.mxu0 %vm647_vm13, %v1314_v10 }
 0x85e   :  { %4887 = vmatmul.mubr.msk.bf16.gmra.mxu0 %vm647_vm13, %v1315_v37  ;;  %v1412_v7 = vpop.permute.xlu1 %1411 }
 0x85f   :  { %4893 = vmatpush3.bf16.xpose.msra.mxu0 %v1440_v31  ;;  %4898 = vmatprep.mubr.msk.bf16.mxu0 %vm557_vm1, %v1406_v43 }
 0x860   :  { %5240 = vmatprep.subr.msk.bf16.mxu0 %vm557_vm1, %v1416_v50 }
 0x867   :  { %4895 = vmatpush3.bf16.xpose.msra.mxu0 %v1437_v13 }
 0x868   :  { %5241 = vmatprep.subr.msk.bf16.mxu0 %vm557_vm1, %v1414_v33 }
 0x86f   :  { %4897 = vmatpush3.bf16.xpose.msra.mxu0 %v1434_v46 }
 0x876   :  { %4899 = vmatmul.mubr.msk.bf16.vlgmr.msra.gmra.mxu0 %vm557_vm1, %v1408_v39 }
 0x877   :  { %4902 = vmatprep.mubr.msk.bf16.mxu0 %vm557_vm1, %v1410_v34 }
 0x87e   :  { %4903 = vmatmul.mubr.msk.bf16.gmra.mxu0 %vm557_vm1, %v1412_v7 }
 0x916   :  { %v6297_v56 = vpop.f32.mrf.mxu0 }
 0x918   :  { %v6299_v27 = vpop.f32.mrf.mxu0 }
 0x91a   :  { %v6301_v58 = vpop.f32.mrf.mxu0 }
 0x91b   :  { %v5299_v17 = vpack.i.bf16 %v6301_v58, %v6297_v56 }
 0x91c   :  { %v6305_v40 = vpop.f32.mrf.mxu0 }
 0x91d   :  { %v5294_v57 = vpack.i.bf16 %v6305_v40, %v6299_v27  ;;  %v7100_v27 = vpack.i.bf16 %v6205_v9, %v6201_v35 }
 0x91e   :  { %v6309_v55 = vpop.f32.mrf.mxu0 }
 0x920   :  { %v6311_v49 = vpop.f32.mrf.mxu0 }
 0x922   :  { %v6313_v44 = vpop.f32.mrf.mxu0 }
 0x923   :  { %v5329_v62 = vpack.i.bf16 %v6313_v44, %v6309_v55 }
 0x924   :  { %v6317_v16 = vpop.f32.mrf.mxu0 }
 0x925   :  { %v5324_v36 = vpack.i.bf16 %v6317_v16, %v6311_v49 }
 0x936   :  { %v4900_v8 = vpop.f32.mrf.mxu0 }
 0x937   :  { %v1488_v32 = vadd.f32 %v4900_v8, %v6024_v41 }
 0x938   :  { %v1479_v23 = vpop.f32.mrf.mxu0 }
 0x939   :  { %v1480_v19 = vadd.f32 %v1479_v23, %v6020_v38  ;;  %v1516_v10 = vsel %vm647_vm13, %v1488_v32, -inf }
 0x93a   :  { %v4901_v3 = vpop.f32.mrf.mxu0 }
 0x93b   :  { %v1510_v63 = vsel %vm647_vm13, %v1480_v19, -inf  ;;  %v1491_v30 = vadd.f32 %v4901_v3, %v6035_v59 }
 0x93c   :  { %v1482_v20 = vpop.f32.mrf.mxu0  ;;  %1511 = vmax.xlane.f32.xlu0 %v1510_v63 }
 0x93d   :  { %v1483_v14 = vadd.f32 %v1482_v20, %v6029_v47  ;;  %v1519_v41 = vsel %vm647_vm13, %v1491_v30, -inf }
 0x93e   :  { %v4904_v2 = vpop.f32.mrf.mxu0 }
 0x93f   :  { %v1513_v12 = vsel %vm647_vm13, %v1483_v14, -inf  ;;  %v1504_v47 = vadd.f32 %v4904_v2, %v6047_v11 }
 0x940   :  { %1514 = vmax.xlane.f32.xlu1 %v1513_v12  ;;  %1517 = vmax.xlane.f32.xlu0 %v1516_v10  ;;  %v1495_v37 = vpop.f32.mrf.mxu0 }
 0x941   :  { %v1496_v43 = vadd.f32 %v1495_v37, %v6040_v4  ;;  %v1528_v46 = vsel %vm647_vm13, %v1504_v47, -inf }
 0x942   :  { %v4905_v38 = vpop.f32.mrf.mxu0 }
 0x943   :  { %v1507_v59 = vadd.f32 %v4905_v38, %v6058_v18  ;;  %v1522_v33 = vsel %vm647_vm13, %v1496_v43, -inf }
 0x944   :  { %1520 = vmax.xlane.f32.xlu0 %v1519_v41  ;;  %v1498_v31 = vpop.f32.mrf.mxu0 }
 0x945   :  { %v6331_v50 = vadd.f32 %v1498_v31, %v6052_v1  ;;  %v1531_v4 = vsel %vm647_vm13, %v1507_v59, -inf }
 0x947   :  { %v1525_v13 = vsel %vm647_vm13, %v6331_v50, -inf }
 0x948   :  { %1526 = vmax.xlane.f32.xlu1 %v1525_v13  ;;  %1523 = vmax.xlane.f32.xlu0 %v1522_v33 }
 0x94c   :  { %1532 = vmax.xlane.f32.xlu1 %v1531_v4  ;;  %1529 = vmax.xlane.f32.xlu0 %v1528_v46 }
 0x9c5   :  { %v1512_v39 = vpop.xlane.xlu0 %1511 }
 0x9c6   :  { %v1534_v1 = vsub.f32 %v1480_v19, %v1512_v39 }
 0x9c8   :  { %v1542_v23 = vmul.f32 1.442695, %v1534_v1 }
 0x9c9   :  { %v1515_v34 = vpop.xlane.xlu1 %1514  ;;  %v1518_v7 = vpop.xlane.xlu0 %1517 }
 0x9ca   :  { %v1536_v11 = vsub.f32 %v1488_v32, %v1518_v7  ;;  %v1535_v8 = vsub.f32 %v1483_v14, %v1515_v34 }
 0x9cc   :  { %v1546_v18 = vmul.f32 1.442695, %v1536_v11  ;;  %v1544_v20 = vmul.f32 1.442695, %v1535_v8  ;;  %v7098_v8 = vpack.i.bf16 %v6209_v45, %v6203_v42 }
 0x9cd   :  { %v1521_v3 = vpop.xlane.xlu0 %1520 }
 0x9ce   :  { %v1537_v63 = vsub.f32 %v1491_v30, %v1521_v3  ;;  %5498 = vpow2.f32 %v1546_v18 }
 0x9cf   :  { %5500 = vpow2.f32 %v1542_v23 }
 0x9d0   :  { %v1548_v2 = vmul.f32 1.442695, %v1537_v63 }
 0x9d1   :  { %v1524_v12 = vpop.xlane.xlu0 %1523  ;;  %v1527_v34 = vpop.xlane.xlu1 %1526 }
 0x9d2   :  { %5502 = vpow2.f32 %v1548_v2  ;;  %v1538_v10 = vsub.f32 %v1496_v43, %v1524_v12  ;;  %v1539_v18 = vsub.f32 %v6331_v50, %v1527_v34 }
 0x9d3   :  { %5504 = vpow2.f32 %v1544_v20 }
 0x9d4   :  { %v1550_v19 = vmul.f32 1.442695, %v1538_v10 }
 0x9d5   :  { %v1530_v37 = vpop.xlane.xlu0 %1529  ;;  %v1533_v7 = vpop.xlane.xlu1 %1532 }
 0x9d6   :  { %v1540_v38 = vsub.f32 %v1504_v47, %v1530_v37  ;;  %v1541_v11 = vsub.f32 %v1507_v59, %v1533_v7  ;;  %v5351_v7 = vld [vmem:[%s5748_s8] sm:$0xff]  }
 0x9d8   :  { %v1554_v41 = vmul.f32 1.442695, %v1540_v38  ;;  %v1556_v23 = vmul.f32 1.442695, %v1541_v11 }
 0x9da   :  { %5506 = vpow2.f32 %v1554_v41 }
 0x9db   :  { %v6340_v31 = vpop.eup %5498  ;;  %5508 = vpow2.f32 %v1550_v19 }
 0x9dc   :  { %v1564_v32 = vsel %vm647_vm13, %v6340_v31, 0.0  ;;  %v5501_v14 = vpop.eup %5500  ;;  %5510 = vpow2.f32 %v1556_v23 }
 0x9dd   :  { %1565 = vadd.xlane.f32.xlu0 %v1564_v32  ;;  %v1558_v43 = vsel %vm647_vm13, %v5501_v14, 0.0 }
 0x9df   :  { %v6344_v30 = vpop.eup %5502 }
 0x9e0   :  { %v1567_v13 = vsel %vm647_vm13, %v6344_v30, 0.0  ;;  %v5505_v33 = vpop.eup %5504 }
 0x9e1   :  { %1568 = vadd.xlane.f32.xlu1 %v1567_v13  ;;  %1559 = vadd.xlane.f32.xlu0 %v1558_v43  ;;  %v1561_v47 = vsel %vm647_vm13, %v5505_v33, 0.0 }
 0x9e5   :  { %1562 = vadd.xlane.f32.xlu1 %v1561_v47 }
 0x9e7   :  { %v6350_v4 = vpop.eup %5506 }
 0x9e8   :  { %v1576_v46 = vsel %vm647_vm13, %v6350_v4, 0.0  ;;  %v6354_v39 = vpop.eup %5508 }
 0x9e9   :  { %1577 = vadd.xlane.f32.xlu0 %v1576_v46  ;;  %v1570_v1 = vsel %vm647_vm13, %v6354_v39, 0.0 }
 0x9ed   :  { %1571 = vadd.xlane.f32.xlu0 %v1570_v1 }
 0x9f6   :  { %1606 = vrot.lane.b32.xlu1 %v5968_v51, %s5693_s25  ;;  %v1552_v51 = vmul.f32 1.442695, %v1539_v18 }
 0x9f8   :  { %5512 = vpow2.f32 %v1552_v51 }
 0x9fa   :  { %1604 = vrot.lane.b32.xlu1 %v5977_v53, %s5693_s25  ;;  %v5511_v53 = vpop.eup %5510 }
 0x9fb   :  { %v1579_v42 = vsel %vm647_vm13, %v5511_v53, 0.0 }
 0xa03   :  { %1608 = vrot.lane.b32.xlu0 %v5964_v48, %s5693_s25  ;;  %v7099_v48 = vpack.i.bf16 %v6221_v22, %v6215_v6  ;;  %v7101_v6 = vpack.i.bf16 %v6217_v15, %v6213_v52 }
 0xa05   :  { %v5513_v45 = vpop.eup %5512 }
 0xa06   :  { %v1573_v50 = vsel %vm647_vm13, %v5513_v45, 0.0 }
 0xa07   :  { %5285 = vrot.lane.b32.xlu0 %v7098_v8, %s5694_s29 }
 0xa0b   :  { %5295 = vrot.lane.b32.xlu0 %v5294_v57, %s5695_s3 }
 0xa0f   :  { %5305 = vrot.lane.b32.xlu0 %v7099_v48, %s5694_s29 }
 0xa1e   :  { %1580 = vadd.xlane.f32.xlu1 %v1579_v42 }
 0xa22   :  { %1574 = vadd.xlane.f32.xlu1 %v1573_v50 }
 0xa33   :  { %1602 = vrot.lane.b32.xlu1 %v5981_v54, %s5693_s25 }
 0xa37   :  { %5290 = vrot.lane.b32.xlu1 %v7100_v27, %s5694_s29 }
 0xa3b   :  { %5300 = vrot.lane.b32.xlu1 %v5299_v17, %s5695_s3 }
 0xa3f   :  { %5310 = vrot.lane.b32.xlu1 %v7101_v6, %s5694_s29 }
 0xa66   :  { %v1566_v22 = vpop.xlane.xlu0 %1565 }
 0xa6a   :  { %v1569_v40 = vpop.xlane.xlu1 %1568  ;;  %v1560_v57 = vpop.xlane.xlu0 %1559 }
 0xa6b   :  { %5514 = vrcp.f32 %v1560_v57 }
 0xa6e   :  { %v1563_v54 = vpop.xlane.xlu1 %1562 }
 0xa6f   :  { %5516 = vrcp.f32 %v1563_v54 }
 0xa70   :  { %5518 = vrcp.f32 %v1569_v40 }
 0xa71   :  { %5520 = vrcp.f32 %v1566_v22 }
 0xa72   :  { %v1578_v59 = vpop.xlane.xlu0 %1577  ;;  %v1607_v9 = vpop.permute.xlu1 %1606 }
 0xa76   :  { %v1572_v3 = vpop.xlane.xlu0 %1571  ;;  %v1605_v52 = vpop.permute.xlu1 %1604 }
 0xa78   :  { %v5515_v35 = vpop.eup %5514 }
 0xa79   :  { %v1590_v56 = vmul.f32 %v5515_v35, %v5501_v14 }
 0xa7a   :  { %v1609_v63 = vpop.permute.xlu0 %1608 }
 0xa7b   :  { %4906 = vmatprep.subr.bf16.mxu1 %v1609_v63 }
 0xa7c   :  { %v5517_v20 = vpop.eup %5516  ;;  %4907 = vmatpush3.bf16.msra.mxu1 %v1609_v63 }
 0xa7d   :  { %v1591_v58 = vmul.f32 %v5517_v20, %v5505_v33  ;;  %4908 = vmatprep.subr.bf16.mxu1 %v1607_v9  ;;  %v5519_v2 = vpop.eup %5518 }
 0xa7e   :  { %v5521_v10 = vpop.eup %5520  ;;  %v1593_v37 = vmul.f32 %v5519_v2, %v6344_v30  ;;  %v5286_v6 = vpop.permute.xlu0 %5285 }
 0xa7f   :  { %v1598_v17 = vpack.c.bf16 %v1591_v58, %v1590_v56  ;;  %v1592_v41 = vmul.f32 %v5521_v10, %v6340_v31  ;;  %v5350_v31 = vld [vmem:[%s5748_s8 + $0x8] sm:$0xff]   ;;  %v5287_v40 = vunpack.i.l.bf16 %v5286_v6  ;;  %s7103_s8 = sld [smem:[#allocation8_spill]] }
 0xa80   :  { %4909 = vmatpush3.bf16.msra.mxu1 %v1607_v9 }
 0xa81   :  { %4914 = vmatprep.mubr.msk.bf16.mxu1 %vm647_vm13, %v1598_v17  ;;  %4910 = vmatprep.subr.bf16.mxu1 %v1605_v52  ;;  %v1599_v19 = vpack.c.bf16 %v1593_v37, %v1592_v41  ;;  %v1787_v56 = vsel %vm557_vm1, %v6115_v5, %v5287_v40  ;;  %v5627_v40 = vld [vmem:[%s5708_s5] sm:$0xff] }
 0xa82   :  { %v5296_v55 = vpop.permute.xlu0 %5295 }
 0xa84   :  { %4911 = vmatpush3.bf16.msra.mxu1 %v1605_v52 }
 0xa86   :  { %v5306_v57 = vpop.permute.xlu0 %5305 }
 0xaa7   :  { %v1581_v15 = vpop.xlane.xlu1 %1580 }
 0xaa8   :  { %5522 = vrcp.f32 %v1581_v15 }
 0xaa9   :  { %5524 = vrcp.f32 %v1572_v3  ;;  %v5297_v3 = vunpack.i.l.bf16 %v5296_v55 }
 0xaaa   :  { %5526 = vrcp.f32 %v1578_v59  ;;  %v5298_v59 = vunpack.i.h.bf16 %v5296_v55 }
 0xaab   :  { %v1575_v12 = vpop.xlane.xlu1 %1574  ;;  %v1796_v37 = vsel %vm1795_vm4, %v1787_v56, %v5297_v3  ;;  %v5629_v3 = vld [vmem:[%s5708_s5 + $0x8] sm:$0xff] }
 0xaac   :  { %5528 = vrcp.f32 %v1575_v12 }
 0xaaf   :  { %v1603_v38 = vpop.permute.xlu1 %1602 }
 0xab0   :  { %4912 = vmatprep.subr.bf16.mxu1 %v1603_v38 }
 0xab1   :  { %4913 = vmatpush3.bf16.msra.mxu1 %v1603_v38 }
 0xab2   :  { %4922 = vmatprep.subr.bf16.mxu1 %v5350_v31 }
 0xab3   :  { %v5291_v27 = vpop.permute.xlu1 %5290 }
 0xab4   :  { %4915 = vmatmul.mubr.msk.bf16.vlgmr.msra.gmra.mxu1 %vm647_vm13, %v1599_v19  ;;  %v5293_v54 = vunpack.i.h.bf16 %v5291_v27  ;;  %v5292_v49 = vunpack.i.l.bf16 %v5291_v27 }
 0xab5   :  { %v5523_v32 = vpop.eup %5522  ;;  %4923 = vmatpush3.bf16.msra.mxu1 %v5350_v31 }
 0xab6   :  { %v5525_v14 = vpop.eup %5524  ;;  %v1597_v43 = vmul.f32 %v5523_v32, %v5511_v53  ;;  %4924 = vmatprep.subr.bf16.mxu1 %v5351_v7  ;;  %v1790_v58 = vsel %vm557_vm1, %v6117_v21, %v5293_v54  ;;  %v1789_v17 = vsel %vm557_vm1, %v6113_v0, %v5292_v49 }
 0xab7   :  { %v5527_v13 = vpop.eup %5526  ;;  %v1594_v47 = vmul.f32 %v5525_v14, %v6354_v39  ;;  %v5301_v22 = vpop.permute.xlu1 %5300 }
 0xab8   :  { %v1596_v30 = vmul.f32 %v5527_v13, %v6350_v4  ;;  %v5303_v16 = vunpack.i.h.bf16 %v5301_v22  ;;  %v5308_v13 = vunpack.i.h.bf16 %v5306_v57 }
 0xab9   :  { %v5529_v33 = vpop.eup %5528  ;;  %4925 = vmatpush3.bf16.msra.mxu1 %v5351_v7 }
 0xaba   :  { %v1595_v46 = vmul.f32 %v5529_v33, %v5513_v45  ;;  %v1601_v34 = vpack.c.bf16 %v1597_v43, %v1596_v30  ;;  %v1799_v2 = vsel %vm1795_vm4, %v1790_v58, %v5303_v16  ;;  %v5307_v33 = vunpack.i.l.bf16 %v5306_v57 }
 0xabb   :  { %v5311_v44 = vpop.permute.xlu1 %5310 }
 0xabc   :  { %v1600_v1 = vpack.c.bf16 %v1595_v46, %v1594_v47  ;;  %v5313_v43 = vunpack.i.h.bf16 %v5311_v44  ;;  %v5312_v47 = vunpack.i.l.bf16 %v5311_v44  ;;  %v5626_v44 = vld [vmem:[%s5708_s5 + $0x10] sm:$0xff] }
 0xabe   :  { %4918 = vmatprep.mubr.msk.bf16.mxu1 %vm647_vm13, %v1600_v1 }
 0xabf   :  { %4919 = vmatmul.mubr.msk.bf16.gmra.mxu1 %vm647_vm13, %v1601_v34 }
 0xb74   :  { %v4916_v11 = vpop.f32.mrf.mxu1 }
 0xb76   :  { %v1660_v8 = vpop.f32.mrf.mxu1 }
 0xb78   :  { %v4917_v18 = vpop.f32.mrf.mxu1 }
 0xb79   :  { %v5314_v23 = vpack.i.bf16 %v4917_v18, %v4916_v11  ;;  %v1791_v18 = vsel %vm557_vm1, %v6123_v26, %v5307_v33 }
 0xb7a   :  { %v1663_v39 = vpop.f32.mrf.mxu1 }
 0xb7b   :  { %v5319_v51 = vpack.i.bf16 %v1663_v39, %v1660_v8  ;;  %5315 = vrot.lane.b32.xlu1 %v5314_v23, %s5696_s22  ;;  %v1792_v8 = vsel %vm557_vm1, %v6127_v29, %v5308_v13  ;;  %v1794_v23 = vsel %vm557_vm1, %v6125_v28, %v5313_v43  ;;  %v1793_v39 = vsel %vm557_vm1, %v6121_v25, %v5312_v47  ;;  %v6491_v13 = vld [vmem:[%s5718_s13] sm:$0xff] }
 0xb7c   :  { %v2461_v47 = vmul.f32 %v6491_v13, %v6491_v13 }
 0xb7d   :  { %5320 = vrot.lane.b32.xlu0 %v5319_v51, %s5696_s22 }
 0xb7f   :  { %5330 = vrot.lane.b32.xlu1 %v5329_v62, %s5695_s3  ;;  %v4920_v4 = vpop.f32.mrf.mxu1  ;;  %v5288_v62 = vunpack.i.h.bf16 %v5286_v6 }
 0xb81   :  { %5325 = vrot.lane.b32.xlu0 %v5324_v36, %s5695_s3  ;;  %v1676_v48 = vpop.f32.mrf.mxu1  ;;  %v5302_v36 = vunpack.i.l.bf16 %v5301_v22  ;;  %v1788_v20 = vsel %vm557_vm1, %v6119_v24, %v5288_v62 }
 0xb82   :  { %v1797_v24 = vsel %vm1795_vm4, %v1788_v20, %v5298_v59 }
 0xb83   :  { %v4921_v53 = vpop.f32.mrf.mxu1  ;;  %v1798_v15 = vsel %vm1795_vm4, %v1789_v17, %v5302_v36  ;;  %v5628_v36 = vld [vmem:[%s5708_s5 + $0x18] sm:$0xff] }
 0xb84   :  { %v5339_v42 = vpack.i.bf16 %v4921_v53, %v4920_v4 }
 0xb85   :  { %v1679_v45 = vpop.f32.mrf.mxu1 }
 0xb86   :  { %v5334_v50 = vpack.i.bf16 %v1679_v45, %v1676_v48  ;;  %5340 = vrot.lane.b32.xlu1 %v5339_v42, %s5696_s22 }
 0xb88   :  { %5335 = vrot.lane.b32.xlu0 %v5334_v50, %s5696_s22 }
 0xbed   :  { %v5316_v35 = vpop.permute.xlu1 %5315 }
 0xbee   :  { %v5318_v9 = vunpack.i.h.bf16 %v5316_v35  ;;  %v5317_v63 = vunpack.i.l.bf16 %v5316_v35 }
 0xbef   :  { %v5321_v52 = vpop.permute.xlu0 %5320 }
 0xbf0   :  { %v5323_v12 = vunpack.i.h.bf16 %v5321_v52  ;;  %v5322_v10 = vunpack.i.l.bf16 %v5321_v52  ;;  %v1808_v38 = vsel %vm1804_vm8, %v1799_v2, %v5318_v9  ;;  %v1807_v5 = vsel %vm1804_vm8, %v1798_v15, %v5317_v63  ;;  %v5630_v2 = vld [vmem:[%s5708_s5 + $0x20] sm:$0xff] }
 0xbf1   :  { %v1814_v19 = vpack.c.bf16 %v1808_v38, %v1807_v5  ;;  %v5331_v32 = vpop.permute.xlu1 %5330 }
 0xbf2   :  { %v1805_v21 = vsel %vm1804_vm8, %v1796_v37, %v5322_v10  ;;  %v1806_v41 = vsel %vm1804_vm8, %v1797_v24, %v5323_v12  ;;  %v5333_v46 = vunpack.i.h.bf16 %v5331_v32  ;;  %v5332_v30 = vunpack.i.l.bf16 %v5331_v32  ;;  %v5631_v10 = vld [vmem:[%s5708_s5 + $0x30] sm:$0xff] }
 0xbf3   :  { %v1813_v0 = vpack.c.bf16 %v1806_v41, %v1805_v21  ;;  %v5326_v14 = vpop.permute.xlu0 %5325  ;;  %v5632_v41 = vld [vmem:[%s5708_s5 + $0x38] sm:$0xff] }
 0xbf4   :  { %v5328_v1 = vunpack.i.h.bf16 %v5326_v14  ;;  %v5327_v34 = vunpack.i.l.bf16 %v5326_v14  ;;  %v1803_v4 = vsel %vm1795_vm4, %v1794_v23, %v5333_v46  ;;  %v1802_v48 = vsel %vm1795_vm4, %v1793_v39, %v5332_v30 }
 0xbf5   :  { %4926 = vmatprep.mubr.msk.bf16.mxu1 %vm218_vm0, %v1813_v0  ;;  %v5697_v23 = vmov 0.0  }
 0xbf6   :  { %4927 = vmatmul.mubr.msk.bf16.vlgmr.msra.gmra.mxu1 %vm218_vm0, %v1814_v19  ;;  %v1800_v29 = vsel %vm1795_vm4, %v1791_v18, %v5327_v34  ;;  %v1801_v45 = vsel %vm1795_vm4, %v1792_v8, %v5328_v1  ;;  %v5633_v19 = vld [vmem:[%s5708_s5 + $0x28] sm:$0xff]  ;;  %v2462_v34 = vsel %vm218_vm0, %v2461_v47, 0.0  ;;  %v5354_v8 = vld [vmem:[%s5758_s19] sm:$0xff]   ;;  %s7102_s5 = sld [smem:[#allocation6_spill]] }
 0xbf7   :  { %v5355_v18 = vld [vmem:[%s5763_s24] sm:$0xff]   ;;  %v5356_v47 = vld [vmem:[%s5783_s20 + $0x8] sm:$0xff]  }
 0xbf8   :  { %v5341_v31 = vpop.permute.xlu1 %5340 }
 0xbf9   :  { %v5343_v7 = vunpack.i.h.bf16 %v5341_v31  ;;  %v5342_v11 = vunpack.i.l.bf16 %v5341_v31 }
 0xbfa   :  { %v5336_v51 = vpop.permute.xlu0 %5335 }
 0xbfb   :  { %v5338_v53 = vunpack.i.h.bf16 %v5336_v51  ;;  %v5337_v42 = vunpack.i.l.bf16 %v5336_v51  ;;  %v1812_v26 = vsel %vm1804_vm8, %v1803_v4, %v5343_v7  ;;  %v1811_v28 = vsel %vm1804_vm8, %v1802_v48, %v5342_v11  ;;  %v5352_v7 = vld [vmem:[%s5763_s24 + $0x8] sm:$0xff]   ;;  %s7107_s24 = sld [smem:[#allocation7_spill]] }
 0xbfc   :  { %v1816_v6 = vpack.c.bf16 %v1812_v26, %v1811_v28  ;;  %v5353_v11 = vld [vmem:[%s5758_s19 + $0x8] sm:$0xff]   ;;  %4946 = vmatprep.subr.bf16.mxu1 %v5352_v7  ;;  %s7106_s19 = sld [smem:[#allocation12_spill]] }
 0xbfd   :  { %v1809_v25 = vsel %vm1804_vm8, %v1800_v29, %v5337_v42  ;;  %v1810_v50 = vsel %vm1804_vm8, %v1801_v45, %v5338_v53  ;;  %4934 = vmatprep.subr.bf16.mxu0 %v5353_v11  ;;  %4947 = vmatpush3.bf16.msra.mxu1 %v5352_v7  ;;  %v5357_v7 = vld [vmem:[%s5783_s20] sm:$0xff]   ;;  %s7109_s20 = sld [smem:[#allocation13_spill]] }
 0xbfe   :  { %v1815_v27 = vpack.c.bf16 %v1810_v50, %v1809_v25  ;;  %4935 = vmatpush3.bf16.msra.mxu0 %v5353_v11  ;;  %4948 = vmatprep.subr.bf16.mxu1 %v5355_v18 }
 0xbff   :  { %4936 = vmatprep.subr.bf16.mxu0 %v5354_v8 }
 0xc00   :  { %4930 = vmatprep.mubr.msk.bf16.mxu1 %vm218_vm0, %v1815_v27 }
 0xc01   :  { %4931 = vmatmul.mubr.msk.bf16.gmra.mxu1 %vm218_vm0, %v1816_v6 }
 0xc02   :  { %4937 = vmatpush3.bf16.msra.mxu0 %v5354_v8  ;;  %4949 = vmatpush3.bf16.msra.mxu1 %v5355_v18 }
 0xc03   :  { %4974 = vmatprep.subr.bf16.mxu1 %v5697_v23 }
 0xcb6   :  { %v4928_v22 = vpop.f32.mrf.mxu1 }
 0xcb7   :  { %v6452_v62 = vadd.f32 %v5626_v44, %v4928_v22 }
 0xcb8   :  { %v1879_v55 = vpop.f32.mrf.mxu1 }
 0xcb9   :  { %v6455_v57 = vadd.f32 %v5627_v40, %v1879_v55  ;;  %v1921_v63 = vmul.f32 %v6452_v62, %v6452_v62 }
 0xcba   :  { %v4929_v54 = vpop.f32.mrf.mxu1 }
 0xcbb   :  { %v1919_v49 = vmul.f32 %v6455_v57, %v6455_v57  ;;  %v6460_v59 = vadd.f32 %v5628_v36, %v4929_v54  ;;  %v1933_v58 = vsel %vm218_vm0, %v1921_v63, 0.0 }
 0xcbc   :  { %v1882_v16 = vpop.f32.mrf.mxu1 }
 0xcbd   :  { %v6463_v35 = vadd.f32 %v5629_v3, %v1882_v16  ;;  %v1927_v9 = vsel %vm218_vm0, %v1919_v49, 0.0  ;;  %v1922_v52 = vmul.f32 %v6460_v59, %v6460_v59 }
 0xcbe   :  { %1928 = vadd.xlane.f32.xlu0 %v1927_v9 }
 0xcbf   :  { %v1920_v20 = vmul.f32 %v6463_v35, %v6463_v35  ;;  %v1936_v38 = vsel %vm218_vm0, %v1922_v52, 0.0 }
 0xcc1   :  { %v4932_v56 = vpop.f32.mrf.mxu1  ;;  %v1930_v17 = vsel %vm218_vm0, %v1920_v20, 0.0 }
 0xcc2   :  { %1934 = vadd.xlane.f32.xlu0 %v1933_v58  ;;  %1931 = vadd.xlane.f32.xlu1 %v1930_v17  ;;  %v6478_v37 = vadd.f32 %v5631_v10, %v4932_v56 }
 0xcc3   :  { %v1895_v15 = vpop.f32.mrf.mxu1 }
 0xcc4   :  { %v6475_v12 = vadd.f32 %v5630_v2, %v1895_v15  ;;  %v1925_v33 = vmul.f32 %v6478_v37, %v6478_v37  ;;  %v4464_v15 = vld [vmem:[%s5753_s14] ss:$0 sm:$0xff]  ;;  %s7105_s14 = sld [smem:[#allocation9_spill]] }
 0xcc5   :  { %v4933_v24 = vpop.f32.mrf.mxu1 }
 0xcc6   :  { %1937 = vadd.xlane.f32.xlu0 %v1936_v38  ;;  %v1923_v5 = vmul.f32 %v6475_v12, %v6475_v12  ;;  %v6484_v0 = vadd.f32 %v5632_v41, %v4933_v24  ;;  %v1945_v1 = vsel %vm218_vm0, %v1925_v33, 0.0 }
 0xcc7   :  { %v1898_v21 = vpop.f32.mrf.mxu1 }
 0xcc8   :  { %v6487_v32 = vadd.f32 %v5633_v19, %v1898_v21  ;;  %v1939_v14 = vsel %vm218_vm0, %v1923_v5, 0.0  ;;  %v1926_v30 = vmul.f32 %v6484_v0, %v6484_v0 }
 0xcca   :  { %1940 = vadd.xlane.f32.xlu0 %v1939_v14  ;;  %v1924_v43 = vmul.f32 %v6487_v32, %v6487_v32  ;;  %v1948_v31 = vsel %vm218_vm0, %v1926_v30, 0.0 }
 0xccc   :  { %v1942_v46 = vsel %vm218_vm0, %v1924_v43, 0.0 }
 0xccd   :  { %1943 = vadd.xlane.f32.xlu1 %v1942_v46 }
 0xcce   :  { %1946 = vadd.xlane.f32.xlu0 %v1945_v1 }
 0xcd1   :  { %1949 = vadd.xlane.f32.xlu1 %v1948_v31 }
 0xcd2   :  { %2463 = vadd.xlane.f32.xlu0 %v2462_v34 }
 0xd47   :  { %v1929_v39 = vpop.xlane.xlu0 %1928 }
 0xd48   :  { %v1951_v51 = vmul.f32 0.03125, %v1929_v39 }
 0xd4a   :  { %v1959_v4 = vadd.f32 1e-06, %v1951_v51 }
 0xd4b   :  { %v1935_v48 = vpop.xlane.xlu0 %1934  ;;  %v1932_v53 = vpop.xlane.xlu1 %1931 }
 0xd4c   :  { %v1953_v42 = vmul.f32 0.03125, %v1935_v48  ;;  %v1952_v29 = vmul.f32 0.03125, %v1932_v53  ;;  %5530 = vrsqrt.f32 %v1959_v4 }
 0xd4e   :  { %v1961_v45 = vadd.f32 1e-06, %v1953_v42  ;;  %v1960_v26 = vadd.f32 1e-06, %v1952_v29 }
 0xd4f   :  { %v1938_v28 = vpop.xlane.xlu0 %1937 }
 0xd50   :  { %5532 = vrsqrt.f32 %v1961_v45  ;;  %v1954_v25 = vmul.f32 0.03125, %v1938_v28  ;;  %v4486_v45 = vld [vmem:[%s5778_s12] ss:$0 sm:$0xff]  ;;  %s7108_s12 = sld [smem:[#allocation11_spill]] }
 0xd51   :  { %5534 = vrsqrt.f32 %v1960_v26 }
 0xd52   :  { %v1962_v50 = vadd.f32 1e-06, %v1954_v25  ;;  %v5358_v25 = vld [vmem:[%s5788_s27 + $0x8] sm:$0xff]  }
 0xd53   :  { %v1941_v27 = vpop.xlane.xlu0 %1940 }
 0xd54   :  { %5536 = vrsqrt.f32 %v1962_v50  ;;  %v1955_v6 = vmul.f32 0.03125, %v1941_v27  ;;  %v5359_v50 = vld [vmem:[%s5788_s27] sm:$0xff]   ;;  %v5360_v27 = vld [vmem:[%s7102_s5 + $0x18] sm:$0xff]   ;;  %s7113_s27 = sld [smem:[#allocation16_spill]] }
 0xd55   :  { %4958 = vmatprep.subr.bf16.mxu0 %v5360_v27 }
 0xd56   :  { %v1963_v22 = vadd.f32 1e-06, %v1955_v6  ;;  %v1944_v55 = vpop.xlane.xlu1 %1943  ;;  %v5361_v6 = vld [vmem:[%s7102_s5 + $0x10] sm:$0xff]  }
 0xd57   :  { %v1956_v44 = vmul.f32 0.03125, %v1944_v55  ;;  %v1947_v40 = vpop.xlane.xlu0 %1946  ;;  %v5363_v55 = vld [vmem:[%s7102_s5] sm:$0xff]  }
 0xd58   :  { %5538 = vrsqrt.f32 %v1963_v22  ;;  %v1957_v54 = vmul.f32 0.03125, %v1947_v40  ;;  %v5362_v22 = vld [vmem:[%s7102_s5 + $0x8] sm:$0xff]  }
 0xd59   :  { %v1964_v49 = vadd.f32 1e-06, %v1956_v44  ;;  %v5531_v16 = vpop.eup %5530 }
 0xd5a   :  { %v1965_v36 = vadd.f32 1e-06, %v1957_v54  ;;  %v1950_v3 = vpop.xlane.xlu1 %1949  ;;  %v1975_v17 = vmul.f32 %v5531_v16, %v6455_v57 }
 0xd5b   :  { %5540 = vrsqrt.f32 %v1964_v49  ;;  %v1958_v9 = vmul.f32 0.03125, %v1950_v3  ;;  %v2464_v63 = vpop.xlane.xlu0 %2463 }
 0xd5c   :  { %5542 = vrsqrt.f32 %v1965_v36  ;;  %v2465_v20 = vmul.f32 0.03125, %v2464_v63  ;;  %v1989_v5 = vmul.f32 %v4464_v15, %v1975_v17 }
 0xd5d   :  { %v5533_v56 = vpop.eup %5532  ;;  %v1966_v58 = vadd.f32 1e-06, %v1958_v9 }
 0xd5e   :  { %v5535_v52 = vpop.eup %5534  ;;  %v2466_v2 = vadd.f32 1e-06, %v2465_v20  ;;  %v1977_v24 = vmul.f32 %v5533_v56, %v6452_v62 }
 0xd5f   :  { %5544 = vrsqrt.f32 %v1966_v58  ;;  %v1976_v10 = vmul.f32 %v5535_v52, %v6463_v35 }
 0xd60   :  { %5546 = vrsqrt.f32 %v2466_v2  ;;  %v1991_v14 = vmul.f32 %v4464_v15, %v1977_v24 }
 0xd61   :  { %v5537_v38 = vpop.eup %5536  ;;  %v1990_v21 = vmul.f32 %v4464_v15, %v1976_v10 }
 0xd62   :  { %v1978_v41 = vmul.f32 %v5537_v38, %v6460_v59 }
 0xd63   :  { %v1997_v19 = vpack.c.bf16 %v1990_v21, %v1989_v5 }
 0xd64   :  { %v1992_v33 = vmul.f32 %v4464_v15, %v1978_v41 }
 0xd65   :  { %v5539_v43 = vpop.eup %5538  ;;  %4938 = vmatprep.mubr.msk.bf16.mxu0 %vm218_vm0, %v1997_v19  ;;  %4950 = vmatprep.mubr.msk.bf16.mxu1 %vm218_vm0, %v1997_v19 }
 0xd66   :  { %v1998_v46 = vpack.c.bf16 %v1992_v33, %v1991_v14  ;;  %v1979_v30 = vmul.f32 %v5539_v43, %v6475_v12 }
 0xd68   :  { %v5541_v1 = vpop.eup %5540  ;;  %4939 = vmatmul.mubr.msk.bf16.vlgmr.msra.gmra.mxu0 %vm218_vm0, %v1998_v46  ;;  %4951 = vmatmul.mubr.msk.bf16.vlgmr.msra.gmra.mxu1 %vm218_vm0, %v1998_v46  ;;  %v1993_v11 = vmul.f32 %v4464_v15, %v1979_v30 }
 0xd69   :  { %v5543_v34 = vpop.eup %5542  ;;  %4975 = vmatpush3.bf16.msra.mxu1 %v5356_v47  ;;  %v1980_v31 = vmul.f32 %v5541_v1, %v6487_v32  ;;  %4959 = vmatpush3.bf16.msra.mxu0 %v5360_v27 }
 0xd6a   :  { %4976 = vmatprep.subr.bf16.mxu1 %v5697_v23  ;;  %v1981_v18 = vmul.f32 %v5543_v34, %v6478_v37  ;;  %4960 = vmatprep.subr.bf16.mxu0 %v5361_v6 }
 0xd6b   :  { %v1994_v8 = vmul.f32 %v4464_v15, %v1980_v31 }
 0xd6c   :  { %v5545_v39 = vpop.eup %5544  ;;  %v1995_v42 = vmul.f32 %v4464_v15, %v1981_v18 }
 0xd6d   :  { %v5547_v51 = vpop.eup %5546  ;;  %v1999_v4 = vpack.c.bf16 %v1994_v8, %v1993_v11  ;;  %v1982_v48 = vmul.f32 %v5545_v39, %v6484_v0  ;;  %4977 = vmatpush3.bf16.msra.mxu1 %v5357_v7  ;;  %4961 = vmatpush3.bf16.msra.mxu0 %v5361_v6 }
 0xd6e   :  { %4982 = vmatprep.subr.bf16.mxu1 %v5697_v23  ;;  %v2468_v53 = vmul.f32 %v5547_v51, %v6491_v13  ;;  %4962 = vmatprep.subr.bf16.mxu0 %v5362_v22 }
 0xd6f   :  { %4942 = vmatprep.mubr.msk.bf16.mxu0 %vm218_vm0, %v1999_v4  ;;  %4954 = vmatprep.mubr.msk.bf16.mxu1 %vm218_vm0, %v1999_v4  ;;  %v1996_v29 = vmul.f32 %v4464_v15, %v1982_v48 }
 0xd70   :  { %v2475_v28 = vmul.f32 %v4486_v45, %v2468_v53 }
 0xd71   :  { %v2000_v26 = vpack.c.bf16 %v1996_v29, %v1995_v42  ;;  %4963 = vmatpush3.bf16.msra.mxu0 %v5362_v22 }
 0xd72   :  { %v6535_v13 = vpack.c.bf16 %v2475_v28, %v2475_v28  ;;  %4964 = vmatprep.subr.bf16.mxu0 %v5363_v55 }
 0xd73   :  { %4943 = vmatmul.mubr.msk.bf16.gmra.mxu0 %vm218_vm0, %v2000_v26  ;;  %4955 = vmatmul.mubr.msk.bf16.gmra.mxu1 %vm218_vm0, %v2000_v26 }
 0xd74   :  { %4978 = vmatprep.mubr.msk.bf16.mxu1 %vm5698_vm9, %v5697_v23 }
 0xd75   :  { %4965 = vmatpush3.bf16.msra.mxu0 %v5363_v55 }
 0xd76   :  { %4990 = vmatprep.subr.bf16.mxu0 %v5697_v23 }
 0xd7b   :  { %4979 = vmatmul.mubr.msk.bf16.vlgmr.msra.gmra.mxu1 %vm218_vm0, %v6535_v13 }
 0xd7c   :  { %4983 = vmatpush3.bf16.msra.mxu1 %v5358_v25  ;;  %4986 = vmatprep.mubr.msk.bf16.mxu1 %vm5698_vm9, %v5697_v23 }
 0xd7d   :  { %4984 = vmatprep.subr.bf16.mxu1 %v5697_v23 }
 0xd80   :  { %4985 = vmatpush3.bf16.msra.mxu1 %v5359_v50 }
 0xd81   :  { %4998 = vmatprep.subr.bf16.mxu1 %v5697_v23 }
 0xd83   :  { %4987 = vmatmul.mubr.msk.bf16.vlgmr.msra.gmra.mxu1 %vm218_vm0, %v6535_v13 }
 0xd84   :  { %5000 = vmatprep.mubr.msk.bf16.mxu1 %vm5698_vm9, %v5697_v23 }
 0xe28   :  { %v6554_v44 = vpop.f32.mrf.mxu0  ;;  %v6556_v40 = vpop.f32.mrf.mxu1 }
 0xe29   :  { %v2096_v54 = vmul.f32 %v6554_v44, %v6554_v44 }
 0xe2a   :  { %v6560_v49 = vpop.f32.mrf.mxu0  ;;  %v6562_v16 = vpop.f32.mrf.mxu1 }
 0xe2b   :  { %v2104_v36 = vmul.f32 %v6554_v44, %v2096_v54  ;;  %v2094_v3 = vmul.f32 %v6560_v49, %v6560_v49 }
 0xe2c   :  { %v6567_v9 = vpop.f32.mrf.mxu0  ;;  %v6572_v58 = vpop.f32.mrf.mxu1 }
 0xe2d   :  { %v2112_v63 = vmul.f32 0.044715, %v2104_v36  ;;  %v2102_v20 = vmul.f32 %v2094_v3, %v6560_v49  ;;  %v2097_v56 = vmul.f32 %v6567_v9, %v6567_v9 }
 0xe2e   :  { %v6574_v17 = vpop.f32.mrf.mxu0  ;;  %v6582_v41 = vpop.f32.mrf.mxu1 }
 0xe2f   :  { %v2120_v52 = vadd.f32 %v6554_v44, %v2112_v63  ;;  %v2110_v15 = vmul.f32 0.044715, %v2102_v20  ;;  %v2105_v2 = vmul.f32 %v6567_v9, %v2097_v56  ;;  %v2095_v10 = vmul.f32 %v6574_v17, %v6574_v17 }
 0xe31   :  { %v2128_v24 = vmul.f32 0.7978846, %v2120_v52  ;;  %v2118_v38 = vadd.f32 %v2110_v15, %v6560_v49  ;;  %v2113_v5 = vmul.f32 0.044715, %v2105_v2  ;;  %v2103_v21 = vmul.f32 %v2095_v10, %v6574_v17 }
 0xe33   :  { %5548 = vtanh.f32 %v2128_v24  ;;  %v2126_v19 = vmul.f32 0.7978846, %v2118_v38  ;;  %v2121_v14 = vadd.f32 %v6567_v9, %v2113_v5  ;;  %v2111_v33 = vmul.f32 0.044715, %v2103_v21  ;;  %v6585_v43 = vpop.f32.mrf.mxu0  ;;  %v6587_v47 = vpop.f32.mrf.mxu1 }
 0xe34   :  { %v2100_v46 = vmul.f32 %v6585_v43, %v6585_v43 }
 0xe35   :  { %5550 = vtanh.f32 %v2126_v19  ;;  %v2129_v30 = vmul.f32 0.7978846, %v2121_v14  ;;  %v2119_v1 = vadd.f32 %v2111_v33, %v6574_v17  ;;  %v6592_v34 = vpop.f32.mrf.mxu0  ;;  %v6594_v31 = vpop.f32.mrf.mxu1 }
 0xe36   :  { %v2108_v7 = vmul.f32 %v6585_v43, %v2100_v46  ;;  %v2098_v11 = vmul.f32 %v6592_v34, %v6592_v34 }
 0xe37   :  { %5552 = vtanh.f32 %v2129_v30  ;;  %v2127_v8 = vmul.f32 0.7978846, %v2119_v1  ;;  %v6599_v18 = vpop.f32.mrf.mxu0  ;;  %v6601_v39 = vpop.f32.mrf.mxu1 }
 0xe38   :  { %v2116_v51 = vmul.f32 0.044715, %v2108_v7  ;;  %v2106_v4 = vmul.f32 %v2098_v11, %v6592_v34  ;;  %v2101_v48 = vmul.f32 %v6599_v18, %v6599_v18 }
 0xe39   :  { %5554 = vtanh.f32 %v2127_v8  ;;  %v6606_v53 = vpop.f32.mrf.mxu0  ;;  %v6608_v42 = vpop.f32.mrf.mxu1 }
 0xe3a   :  { %v2124_v29 = vadd.f32 %v6585_v43, %v2116_v51  ;;  %v2114_v45 = vmul.f32 0.044715, %v2106_v4  ;;  %v2109_v26 = vmul.f32 %v6599_v18, %v2101_v48  ;;  %v2099_v28 = vmul.f32 %v6606_v53, %v6606_v53 }
 0xe3b   :  { %v2530_v25 = vpop.f32.mrf.mxu1 }
 0xe3c   :  { %v2132_v50 = vmul.f32 0.7978846, %v2124_v29  ;;  %v2122_v27 = vadd.f32 %v2114_v45, %v6592_v34  ;;  %v2117_v6 = vmul.f32 0.044715, %v2109_v26  ;;  %v2107_v22 = vmul.f32 %v2099_v28, %v6606_v53 }
 0xe3d   :  { %v2648_v55 = vpack.c.bf16 %v2530_v25, %v2530_v25  ;;  %v4980_v54 = vpop.f32.mrf.mxu1 }
 0xe3e   :  { %5556 = vtanh.f32 %v2132_v50  ;;  %v2130_v36 = vmul.f32 0.7978846, %v2122_v27  ;;  %v2125_v3 = vadd.f32 %v6599_v18, %v2117_v6  ;;  %v2115_v63 = vmul.f32 0.044715, %v2107_v22 }
 0xe3f   :  { %2757 = vrot.lane.b32.xlu0 %v2648_v55, %s5691_s0  ;;  %v2533_v20 = vpop.f32.mrf.mxu1 }
 0xe40   :  { %v5549_v56 = vpop.eup %5548  ;;  %5558 = vtanh.f32 %v2130_v36  ;;  %v2133_v52 = vmul.f32 0.7978846, %v2125_v3  ;;  %v2123_v15 = vadd.f32 %v2115_v63, %v6606_v53  ;;  %v5364_v63 = vld [vmem:[%s7103_s8 + $0x8] sm:$0xff]  }
 0xe41   :  { %v4981_v2 = vpop.f32.mrf.mxu1  ;;  %v2144_v24 = vadd.f32 1.0, %v5549_v56 }
 0xe42   :  { %v5551_v10 = vpop.eup %5550  ;;  %5560 = vtanh.f32 %v2133_v52  ;;  %v2131_v38 = vmul.f32 0.7978846, %v2123_v15 }
 0xe43   :  { %v2142_v5 = vadd.f32 1.0, %v5551_v10  ;;  %2979 = vrot.lane.b32.xlu0 %v2648_v55, %s5693_s25  ;;  %v2586_v21 = vpop.f32.mrf.mxu1  ;;  %v2152_v7 = vmul.f32 0.5, %v2144_v24 }
 0xe44   :  { %v5553_v19 = vpop.eup %5552  ;;  %5562 = vtanh.f32 %v2131_v38  ;;  %v2649_v14 = vpack.c.bf16 %v2586_v21, %v2586_v21 }
 0xe45   :  { %v2150_v33 = vmul.f32 0.5, %v2142_v5  ;;  %v2145_v46 = vadd.f32 1.0, %v5553_v19  ;;  %v4988_v30 = vpop.f32.mrf.mxu1  ;;  %v2160_v28 = vmul.f32 %v6554_v44, %v2152_v7 }
 0xe46   :  { %v5555_v1 = vpop.eup %5554  ;;  %2760 = vrot.lane.b32.xlu1 %v2649_v14, %s5691_s0  ;;  %v2654_v11 = vsel %vm557_vm1, %v2649_v14, 0 }
 0xe47   :  { %v2153_v8 = vmul.f32 0.5, %v2145_v46  ;;  %v2143_v51 = vadd.f32 1.0, %v5555_v1  ;;  %v2589_v4 = vpop.f32.mrf.mxu1  ;;  %4999 = vmatpush3.bf16.xpose.msra.mxu1 %v2654_v11  ;;  %v2158_v48 = vmul.f32 %v2150_v33, %v6560_v49  ;;  %v7104_v46 = vmov -1e+09  }
 0xe48   :  { %5010 = vmatprep.subr.bf16.mxu1 %v5697_v23  ;;  %v2457_v30 = vsel %vm2456_vm10, 0.0, %v7104_v46 }
 0xe49   :  { %v2161_v29 = vmul.f32 %v6567_v9, %v2153_v8  ;;  %v2151_v45 = vmul.f32 0.5, %v2143_v51  ;;  %v4989_v26 = vpop.f32.mrf.mxu1  ;;  %v2247_v22 = vmul.f32 %v6562_v16, %v2158_v48  ;;  %v2249_v9 = vmul.f32 %v6556_v40, %v2160_v28 }
 0xe4a   :  { %2871 = vrot.lane.b32.xlu1 %v2649_v14, %s5692_s21 }
 0xe4b   :  { %v5557_v25 = vpop.eup %5556  ;;  %v2159_v50 = vmul.f32 %v2151_v45, %v6574_v17  ;;  %v2250_v27 = vmul.f32 %v6572_v58, %v2161_v29 }
 0xe4c   :  { %v2148_v49 = vadd.f32 1.0, %v5557_v25 }
 0xe4d   :  { %v5559_v6 = vpop.eup %5558  ;;  %v2248_v54 = vmul.f32 %v6582_v41, %v2159_v50  ;;  %v2256_v58 = vpack.c.bf16 %v2250_v27, %v2249_v9 }
 0xe4e   :  { %v2146_v36 = vadd.f32 1.0, %v5559_v6  ;;  %2869 = vrot.lane.b32.xlu1 %v2648_v55, %s5692_s21  ;;  %5001 = vmatmul.mubr.msk.bf16.vlgmr.msra.gmra.mxu1 %vm557_vm1, %v2648_v55  ;;  %v2156_v41 = vmul.f32 0.5, %v2148_v49  ;;  %v5365_v55 = vld [vmem:[%s7103_s8] sm:$0xff]  }
 0xe4f   :  { %v5561_v44 = vpop.eup %5560  ;;  %v2255_v3 = vpack.c.bf16 %v2248_v54, %v2247_v22  ;;  %5012 = vmatprep.mubr.msk.bf16.mxu1 %vm5698_vm9, %v5697_v23 }
 0xe50   :  { %v2154_v17 = vmul.f32 0.5, %v2146_v36  ;;  %v2149_v16 = vadd.f32 1.0, %v5561_v44  ;;  %v2164_v10 = vmul.f32 %v6585_v43, %v2156_v41 }
 0xe51   :  { %v5563_v20 = vpop.eup %5562  ;;  %4966 = vmatprep.mubr.msk.bf16.mxu0 %vm647_vm13, %v2255_v3 }
 0xe52   :  { %v2157_v40 = vmul.f32 0.5, %v2149_v16  ;;  %v2147_v56 = vadd.f32 1.0, %v5563_v20  ;;  %2981 = vrot.lane.b32.xlu1 %v2649_v14, %s5693_s25  ;;  %4967 = vmatmul.mubr.msk.bf16.vlgmr.msra.gmra.mxu0 %vm647_vm13, %v2256_v58  ;;  %v2162_v52 = vmul.f32 %v2154_v17, %v6592_v34  ;;  %v2253_v34 = vmul.f32 %v6587_v47, %v2164_v10 }
 0xe53   :  { %4991 = vmatpush3.bf16.msra.mxu0 %v5364_v63 }
 0xe54   :  { %v2165_v15 = vmul.f32 %v6599_v18, %v2157_v40  ;;  %v2155_v2 = vmul.f32 0.5, %v2147_v56  ;;  %4992 = vmatprep.subr.bf16.mxu0 %v5697_v23  ;;  %v2251_v5 = vmul.f32 %v6594_v31, %v2162_v52 }
 0xe56   :  { %v2163_v24 = vmul.f32 %v2155_v2, %v6606_v53  ;;  %v2254_v38 = vmul.f32 %v6601_v39, %v2165_v15 }
 0xe57   :  { %4993 = vmatpush3.bf16.msra.mxu0 %v5365_v55 }
 0xe58   :  { %v2252_v21 = vmul.f32 %v6608_v42, %v2163_v24  ;;  %5004 = vmatprep.subr.bf16.mxu0 %v5697_v23  ;;  %v2258_v18 = vpack.c.bf16 %v2254_v38, %v2253_v34 }
 0xe5a   :  { %v2257_v19 = vpack.c.bf16 %v2252_v21, %v2251_v5 }
 0xe5c   :  { %4970 = vmatprep.mubr.msk.bf16.mxu0 %vm647_vm13, %v2257_v19 }
 0xe5d   :  { %4971 = vmatmul.mubr.msk.bf16.gmra.mxu0 %vm647_vm13, %v2258_v18 }
 0xe5e   :  { %4994 = vmatprep.mubr.msk.bf16.mxu0 %vm5698_vm9, %v5697_v23 }
 0xe65   :  { %4995 = vmatmul.mubr.msk.bf16.vlgmr.msra.gmra.mxu0 %vm218_vm0, %v6535_v13 }
 0xe66   :  { %5006 = vmatprep.mubr.msk.bf16.mxu0 %vm5698_vm9, %v5697_v23 }
 0xeb1   :  { %v2758_v39 = vpop.permute.xlu0 %2757 }
 0xeb5   :  { %v2980_v33 = vpop.permute.xlu0 %2979 }
 0xeb8   :  { %v2761_v43 = vpop.permute.xlu1 %2760 }
 0xeb9   :  { %v2766_v31 = vsel %vm557_vm1, %v2761_v43, 0 }
 0xeba   :  { %5011 = vmatpush3.bf16.xpose.msra.mxu1 %v2766_v31 }
 0xebb   :  { %5022 = vmatprep.subr.bf16.mxu1 %v5697_v23 }
 0xebc   :  { %v2872_v47 = vpop.permute.xlu1 %2871 }
 0xebd   :  { %v2877_v42 = vsel %vm557_vm1, %v2872_v47, 0 }
 0xec0   :  { %v2870_v53 = vpop.permute.xlu1 %2869 }
 0xec1   :  { %5013 = vmatmul.mubr.msk.bf16.vlgmr.msra.gmra.mxu1 %vm557_vm1, %v2758_v39 }
 0xec2   :  { %5023 = vmatpush3.bf16.xpose.msra.mxu1 %v2877_v42  ;;  %5024 = vmatprep.mubr.msk.bf16.mxu1 %vm5698_vm9, %v5697_v23 }
 0xec3   :  { %5034 = vmatprep.subr.bf16.mxu1 %v5697_v23 }
 0xec4   :  { %v2982_v13 = vpop.permute.xlu1 %2981 }
 0xec5   :  { %v2987_v14 = vsel %vm557_vm1, %v2982_v13, 0 }
 0xec9   :  { %5025 = vmatmul.mubr.msk.bf16.vlgmr.msra.gmra.mxu1 %vm557_vm1, %v2870_v53 }
 0xeca   :  { %5035 = vmatpush3.bf16.xpose.msra.mxu1 %v2987_v14  ;;  %5036 = vmatprep.mubr.msk.bf16.mxu1 %vm5698_vm9, %v5697_v23 }
 0xecb   :  { %5046 = vmatprep.subr.bf16.mxu1 %v5697_v23 }
 0xed1   :  { %5037 = vmatmul.mubr.msk.bf16.vlgmr.msra.gmra.mxu1 %vm557_vm1, %v2980_v33 }
 0xed2   :  { %5050 = vmatprep.mubr.msk.bf16.mxu1 %vm5698_vm9, %v5697_v23 }
 0xf0e   :  { %v2690_v1 = vpop.f32.mrf.mxu1 }
 0xf0f   :  { %v2691_v7 = vadd.f32 %v2690_v1, %v2457_v30 }
 0xf10   :  { %v5002_v11 = vpop.f32.mrf.mxu1 }
 0xf11   :  { %v2696_v8 = vsel %vm557_vm1, %v2691_v7, -inf }
 0xf12   :  { %2697 = vmax.xlane.f32.xlu1 %v2696_v8  ;;  %v6678_v51 = vpop.f32.mrf.mxu0  ;;  %v2693_v4 = vpop.f32.mrf.mxu1 }
 0xf14   :  { %v6680_v48 = vpop.f32.mrf.mxu0  ;;  %v5003_v29 = vpop.f32.mrf.mxu1 }
 0xf16   :  { %v6682_v45 = vpop.f32.mrf.mxu0 }
 0xf18   :  { %v6684_v26 = vpop.f32.mrf.mxu0 }
 0xf1d   :  { %v6686_v28 = vpop.f32.mrf.mxu0 }
 0xf1f   :  { %v6688_v25 = vpop.f32.mrf.mxu0 }
 0xf21   :  { %v6690_v50 = vpop.f32.mrf.mxu0 }
 0xf23   :  { %v6692_v27 = vpop.f32.mrf.mxu0 }
 0xf25   :  { %v2642_v6 = vpop.f32.mrf.mxu0 }
 0xf26   :  { %v2708_v22 = vpack.c.bf16 %v2642_v6, %v2642_v6 }
 0xf27   :  { %v4996_v54 = vpop.f32.mrf.mxu0 }
 0xf28   :  { %v2714_v49 = vsel %vm2712_vm11, %v2708_v22, 0 }
 0xf29   :  { %v2645_v9 = vpop.f32.mrf.mxu0  ;;  %5005 = vmatpush3.bf16.msra.mxu0 %v2714_v49 }
 0xf2a   :  { %5016 = vmatprep.subr.bf16.mxu0 %v5697_v23 }
 0xf2b   :  { %v4997_v36 = vpop.f32.mrf.mxu0 }
 0xf81   :  { %v2802_v44 = vpop.f32.mrf.mxu1 }
 0xf82   :  { %v2803_v3 = vadd.f32 %v2802_v44, %v2457_v30 }
 0xf83   :  { %v5014_v63 = vpop.f32.mrf.mxu1 }
 0xf84   :  { %v2808_v58 = vsel %vm557_vm1, %v2803_v3, -inf }
 0xf85   :  { %2809 = vmax.xlane.f32.xlu0 %v2808_v58  ;;  %v2805_v17 = vpop.f32.mrf.mxu1 }
 0xf87   :  { %v5015_v16 = vpop.f32.mrf.mxu1 }
 0xf89   :  { %v2913_v20 = vpop.f32.mrf.mxu1 }
 0xf8a   :  { %v2914_v41 = vadd.f32 %v2913_v20, %v2457_v30 }
 0xf8b   :  { %v5026_v40 = vpop.f32.mrf.mxu1 }
 0xf8c   :  { %v2919_v56 = vsel %vm557_vm1, %v2914_v41, -inf }
 0xf8d   :  { %2920 = vmax.xlane.f32.xlu0 %v2919_v56  ;;  %v2916_v55 = vpop.f32.mrf.mxu1 }
 0xf8f   :  { %v5027_v52 = vpop.f32.mrf.mxu1 }
 0xf91   :  { %v3023_v15 = vpop.f32.mrf.mxu1 }
 0xf92   :  { %v3024_v2 = vadd.f32 %v3023_v15, %v2457_v30 }
 0xf93   :  { %v5038_v10 = vpop.f32.mrf.mxu1 }
 0xf94   :  { %v3029_v24 = vsel %vm557_vm1, %v3024_v2, -inf }
 0xf95   :  { %3030 = vmax.xlane.f32.xlu0 %v3029_v24  ;;  %v3026_v38 = vpop.f32.mrf.mxu1 }
 0xf97   :  { %v5039_v5 = vpop.f32.mrf.mxu1 }
 0xf9b   :  { %v2698_v21 = vpop.xlane.xlu1 %2697 }
 0xf9c   :  { %v2699_v34 = vsub.f32 %v2691_v7, %v2698_v21 }
 0xf9e   :  { %v2700_v19 = vmul.f32 1.442695, %v2699_v34  ;;  %v5366_v34 = vld [vmem:[%s7105_s14 + $0x8] sm:$0xff]  }
 0xf9f   :  { %5047 = vmatpush3.bf16.msra.mxu1 %v5366_v34 }
 0xfa0   :  { %5564 = vpow2.f32 %v2700_v19  ;;  %5048 = vmatprep.subr.bf16.mxu1 %v5697_v23 }
 0xfad   :  { %v5565_v18 = vpop.eup %5564 }
 0xfae   :  { %v2702_v43 = vsel %vm557_vm1, %v5565_v18, 0.0 }
 0xfaf   :  { %2703 = vadd.xlane.f32.xlu1 %v2702_v43  ;;  %v5367_v43 = vld [vmem:[%s7105_s14] sm:$0xff]  }
 0xfb0   :  { %5049 = vmatpush3.bf16.msra.mxu1 %v5367_v43 }
 0xfc0   :  { %2821 = vrot.lane.b32.xlu1 %v2708_v22, %s5691_s0 }
0x100e   :  { %v2810_v31 = vpop.xlane.xlu0 %2809 }
0x100f   :  { %v2811_v47 = vsub.f32 %v2803_v3, %v2810_v31 }
0x1011   :  { %v2812_v39 = vmul.f32 1.442695, %v2811_v47 }
0x1013   :  { %5566 = vpow2.f32 %v2812_v39 }
0x1016   :  { %v2921_v53 = vpop.xlane.xlu0 %2920 }
0x1017   :  { %v2922_v42 = vsub.f32 %v2914_v41, %v2921_v53 }
0x1019   :  { %v2923_v13 = vmul.f32 1.442695, %v2922_v42 }
0x101b   :  { %5568 = vpow2.f32 %v2923_v13 }
0x101e   :  { %v3031_v14 = vpop.xlane.xlu0 %3030 }
0x101f   :  { %v3032_v33 = vsub.f32 %v3024_v2, %v3031_v14 }
0x1020   :  { %v5567_v46 = vpop.eup %5566 }
0x1021   :  { %v3033_v30 = vmul.f32 1.442695, %v3032_v33  ;;  %v2814_v1 = vsel %vm557_vm1, %v5567_v46, 0.0 }
0x1022   :  { %2815 = vadd.xlane.f32.xlu0 %v2814_v1  ;;  %v6732_v1 = vadd.f32 %v6680_v48, %v6455_v57  ;;  %v6752_v57 = vadd.f32 %v6686_v28, %v6478_v37 }
0x1023   :  { %5570 = vpow2.f32 %v3033_v30 }
0x1028   :  { %v5569_v7 = vpop.eup %5568 }
0x1029   :  { %v2925_v11 = vsel %vm557_vm1, %v5569_v7, 0.0 }
0x102a   :  { %2926 = vadd.xlane.f32.xlu1 %v2925_v11  ;;  %v2377_v11 = vmul.f32 %v6732_v1, %v6732_v1 }
0x102c   :  { %v2385_v48 = vsel %vm218_vm0, %v2377_v11, 0.0 }
0x1030   :  { %v5571_v8 = vpop.eup %5570 }
0x1031   :  { %v3035_v4 = vsel %vm557_vm1, %v5571_v8, 0.0 }
0x1032   :  { %3036 = vadd.xlane.f32.xlu0 %v3035_v4  ;;  %v6746_v4 = vadd.f32 %v6678_v51, %v6452_v62  ;;  %v6761_v62 = vadd.f32 %v6682_v45, %v6460_v59 }
0x1034   :  { %v2380_v28 = vmul.f32 %v6761_v62, %v6761_v62 }
0x1038   :  { %v2704_v29 = vpop.xlane.xlu1 %2703 }
0x1039   :  { %5572 = vrcp.f32 %v2704_v29 }
0x103b   :  { %3041 = vrot.lane.b32.xlu1 %v2708_v22, %s5693_s25 }
0x103c   :  { %v2822_v49 = vpop.permute.xlu1 %2821 }
0x103d   :  { %v2827_v36 = vsel %vm2712_vm11, %v2822_v49, 0  ;;  %v2394_v49 = vsel %vm218_vm0, %v2380_v28, 0.0 }
0x1046   :  { %v5573_v6 = vpop.eup %5572 }
0x1047   :  { %v2706_v54 = vmul.f32 %v5573_v6, %v5565_v18  ;;  %v6777_v6 = vadd.f32 %v6690_v50, %v6484_v0 }
0x1048   :  { %2931 = vrot.lane.b32.xlu0 %v2708_v22, %s5692_s21 }
0x1049   :  { %v2707_v9 = vpack.c.bf16 %v2706_v54, %v2706_v54 }
0x104b   :  { %5007 = vmatmul.mubr.msk.bf16.vlgmr.msra.gmra.mxu0 %vm557_vm1, %v2707_v9 }
0x104c   :  { %5017 = vmatpush3.bf16.msra.mxu0 %v2827_v36  ;;  %5018 = vmatprep.mubr.msk.bf16.mxu0 %vm5698_vm9, %v5697_v23  ;;  %v5368_v36 = vld [vmem:[%s7106_s19 + $0x8] sm:$0xff]  }
0x104d   :  { %5028 = vmatprep.subr.bf16.mxu0 %v5697_v23  ;;  %5062 = vmatprep.subr.bf16.mxu1 %v5368_v36 }
0x10ab   :  { %v2816_v44 = vpop.xlane.xlu0 %2815 }
0x10ac   :  { %5574 = vrcp.f32 %v2816_v44 }
0x10b3   :  { %v2927_v3 = vpop.xlane.xlu1 %2926 }
0x10b4   :  { %5576 = vrcp.f32 %v2927_v3 }
0x10b7   :  { %v3042_v56 = vpop.permute.xlu1 %3041 }
0x10b8   :  { %v3047_v52 = vsel %vm2712_vm11, %v3042_v56, 0 }
0x10b9   :  { %v5575_v63 = vpop.eup %5574 }
0x10ba   :  { %v2818_v58 = vmul.f32 %v5575_v63, %v5567_v46 }
0x10bb   :  { %v3037_v17 = vpop.xlane.xlu0 %3036 }
0x10bc   :  { %5578 = vrcp.f32 %v3037_v17  ;;  %v2819_v22 = vpack.c.bf16 %v2818_v58, %v2818_v58 }
0x10be   :  { %5019 = vmatmul.mubr.msk.bf16.vlgmr.msra.gmra.mxu0 %vm557_vm1, %v2819_v22  ;;  %v5369_v22 = vld [vmem:[%s7106_s19] sm:$0xff]  }
0x10bf   :  { %v2932_v16 = vpop.permute.xlu0 %2931  ;;  %5030 = vmatprep.mubr.msk.bf16.mxu0 %vm5698_vm9, %v5697_v23 }
0x10c0   :  { %v2937_v20 = vsel %vm2712_vm11, %v2932_v16, 0 }
0x10c1   :  { %v5577_v41 = vpop.eup %5576  ;;  %5029 = vmatpush3.bf16.msra.mxu0 %v2937_v20 }
0x10c2   :  { %5040 = vmatprep.subr.bf16.mxu0 %v5697_v23  ;;  %v2929_v40 = vmul.f32 %v5577_v41, %v5569_v7  ;;  %v6736_v7 = vadd.f32 %v6684_v26, %v6463_v35  ;;  %v2383_v26 = vmul.f32 %v6752_v57, %v6752_v57 }
0x10c4   :  { %v2930_v55 = vpack.c.bf16 %v2929_v40, %v2929_v40  ;;  %v2378_v29 = vmul.f32 %v6736_v7, %v6736_v7  ;;  %v2403_v45 = vsel %vm218_vm0, %v2383_v26, 0.0 }
0x10c6   :  { %5031 = vmatmul.mubr.msk.bf16.vlgmr.msra.gmra.mxu0 %vm557_vm1, %v2930_v55  ;;  %v2388_v51 = vsel %vm218_vm0, %v2378_v29, 0.0 }
0x10c7   :  { %5041 = vmatpush3.bf16.msra.mxu0 %v3047_v52  ;;  %5042 = vmatprep.mubr.msk.bf16.mxu0 %vm5698_vm9, %v5697_v23 }
0x10c8   :  { %5054 = vmatprep.subr.bf16.mxu0 %v5697_v23 }
0x10c9   :  { %v5579_v15 = vpop.eup %5578 }
0x10ca   :  { %v3039_v2 = vmul.f32 %v5579_v15, %v5571_v8  ;;  %v6742_v8 = vadd.f32 %v6688_v25, %v6475_v12  ;;  %v2379_v12 = vmul.f32 %v6746_v4, %v6746_v4  ;;  %v6771_v25 = vadd.f32 %v6692_v27, %v6487_v32 }
0x10cb   :  { %v2384_v32 = vmul.f32 %v6777_v6, %v6777_v6 }
0x10cc   :  { %v3040_v10 = vpack.c.bf16 %v3039_v2, %v3039_v2  ;;  %v2381_v35 = vmul.f32 %v6742_v8, %v6742_v8  ;;  %v2391_v59 = vsel %vm218_vm0, %v2379_v12, 0.0  ;;  %v2382_v54 = vmul.f32 %v6771_v25, %v6771_v25 }
0x10cd   :  { %v2406_v9 = vsel %vm218_vm0, %v2384_v32, 0.0 }
0x10ce   :  { %5043 = vmatmul.mubr.msk.bf16.vlgmr.msra.gmra.mxu0 %vm557_vm1, %v3040_v10  ;;  %v2397_v37 = vsel %vm218_vm0, %v2381_v35, 0.0  ;;  %v2400_v27 = vsel %vm218_vm0, %v2382_v54, 0.0 }
0x10cf   :  { %5058 = vmatprep.mubr.msk.bf16.mxu0 %vm5698_vm9, %v5697_v23 }
0x110b   :  { %v2750_v24 = vpop.f32.mrf.mxu0 }
0x110d   :  { %v5008_v38 = vpop.f32.mrf.mxu0 }
0x110f   :  { %v2753_v5 = vpop.f32.mrf.mxu0 }
0x1111   :  { %v5009_v21 = vpop.f32.mrf.mxu0 }
0x117e   :  { %v2863_v19 = vpop.f32.mrf.mxu0 }
0x117f   :  { %3090 = vrot.lane.b32.xlu1 %v2863_v19, %s5694_s29 }
0x1180   :  { %v5020_v18 = vpop.f32.mrf.mxu0 }
0x1182   :  { %v2866_v31 = vpop.f32.mrf.mxu0 }
0x1184   :  { %v5021_v47 = vpop.f32.mrf.mxu0 }
0x1186   :  { %v2973_v39 = vpop.f32.mrf.mxu0 }
0x1187   :  { %3094 = vrot.lane.b32.xlu1 %v2973_v39, %s5695_s3 }
0x1188   :  { %v5032_v53 = vpop.f32.mrf.mxu0 }
0x118a   :  { %v2976_v42 = vpop.f32.mrf.mxu0 }
0x118c   :  { %v5033_v13 = vpop.f32.mrf.mxu0 }
0x118e   :  { %v3083_v14 = vpop.f32.mrf.mxu0 }
0x118f   :  { %3098 = vrot.lane.b32.xlu0 %v3083_v14, %s5696_s22 }
0x1190   :  { %v5044_v33 = vpop.f32.mrf.mxu0 }
0x1192   :  { %v3086_v46 = vpop.f32.mrf.mxu0 }
0x1193   :  { %v4485_v46 = vld [vmem:[%s7107_s24] ss:$0 sm:$0xff] }
0x1194   :  { %v5045_v30 = vpop.f32.mrf.mxu0 }
0x11ab   :  { %2386 = vadd.xlane.f32.xlu1 %v2385_v48 }
0x11ae   :  { %2389 = vadd.xlane.f32.xlu0 %v2388_v51 }
0x11af   :  { %2398 = vadd.xlane.f32.xlu1 %v2397_v37 }
0x11b2   :  { %2392 = vadd.xlane.f32.xlu0 %v2391_v59 }
0x11b3   :  { %2404 = vadd.xlane.f32.xlu1 %v2403_v45 }
0x11b6   :  { %2395 = vadd.xlane.f32.xlu0 %v2394_v49 }
0x11ba   :  { %2401 = vadd.xlane.f32.xlu0 %v2400_v27 }
0x11be   :  { %2407 = vadd.xlane.f32.xlu0 %v2406_v9 }
0x11f1   :  { %v3091_v0 = vpop.permute.xlu1 %3090 }
0x11f2   :  { %v3101_v44 = vsel %vm557_vm1, %v2750_v24, %v3091_v0 }
0x11f9   :  { %v3095_v50 = vpop.permute.xlu1 %3094 }
0x11fa   :  { %v3102_v3 = vsel %vm1795_vm4, %v3101_v44, %v3095_v50  ;;  %v5634_v44 = vld [vmem:[%s5718_s13] sm:$0xff]  ;;  %s7110_s13 = sld [smem:[#allocation10_spill]] }
0x1201   :  { %v3099_v63 = vpop.permute.xlu0 %3098 }
0x1202   :  { %v3103_v58 = vsel %vm1804_vm8, %v3102_v3, %v3099_v63 }
0x1203   :  { %v3104_v17 = vpack.c.bf16 %v3103_v58, %v3103_v58 }
0x1205   :  { %5051 = vmatmul.mubr.msk.bf16.vlgmr.msra.gmra.mxu1 %vm218_vm0, %v3104_v17 }
0x1206   :  { %5063 = vmatpush3.bf16.msra.mxu1 %v5368_v36 }
0x1207   :  { %5064 = vmatprep.subr.bf16.mxu1 %v5369_v22 }
0x120a   :  { %5065 = vmatpush3.bf16.msra.mxu1 %v5369_v22 }
0x120b   :  { %5086 = vmatprep.subr.bf16.mxu1 %v5697_v23 }
0x1234   :  { %v2387_v16 = vpop.xlane.xlu1 %2386 }
0x1235   :  { %v2409_v20 = vmul.f32 0.03125, %v2387_v16  ;;  %v5370_v16 = vld [vmem:[%s7108_s12 + $0x8] sm:$0xff]  }
0x1236   :  { %5055 = vmatpush3.bf16.msra.mxu0 %v5370_v16 }
0x1237   :  { %v2417_v41 = vadd.f32 1e-06, %v2409_v20  ;;  %v2390_v40 = vpop.xlane.xlu0 %2389  ;;  %v5371_v20 = vld [vmem:[%s7108_s12] sm:$0xff]   ;;  %5056 = vmatprep.subr.bf16.mxu0 %v5697_v23 }
0x1238   :  { %v2410_v56 = vmul.f32 0.03125, %v2390_v40  ;;  %v2399_v55 = vpop.xlane.xlu1 %2398 }
0x1239   :  { %5580 = vrsqrt.f32 %v2417_v41  ;;  %v2413_v15 = vmul.f32 0.03125, %v2399_v55  ;;  %v5372_v41 = vld [vmem:[%s7109_s20 + $0x8] sm:$0xff]  }
0x123a   :  { %v2418_v52 = vadd.f32 1e-06, %v2410_v56  ;;  %5057 = vmatpush3.bf16.msra.mxu0 %v5371_v20 }
0x123b   :  { %v2393_v2 = vpop.xlane.xlu0 %2392  ;;  %v2421_v5 = vadd.f32 1e-06, %v2413_v15  ;;  %5074 = vmatprep.subr.bf16.mxu0 %v5372_v41 }
0x123c   :  { %5582 = vrsqrt.f32 %v2418_v52  ;;  %v2411_v10 = vmul.f32 0.03125, %v2393_v2  ;;  %v2405_v24 = vpop.xlane.xlu1 %2404 }
0x123d   :  { %v2415_v21 = vmul.f32 0.03125, %v2405_v24 }
0x123e   :  { %v2419_v38 = vadd.f32 1e-06, %v2411_v10 }
0x123f   :  { %v2396_v34 = vpop.xlane.xlu0 %2395  ;;  %v2423_v43 = vadd.f32 1e-06, %v2415_v21 }
0x1240   :  { %5584 = vrsqrt.f32 %v2419_v38  ;;  %v2412_v19 = vmul.f32 0.03125, %v2396_v34 }
0x1241   :  { %5586 = vrsqrt.f32 %v2421_v5 }
0x1242   :  { %v2420_v18 = vadd.f32 1e-06, %v2412_v19 }
0x1243   :  { %v2402_v31 = vpop.xlane.xlu0 %2401 }
0x1244   :  { %5588 = vrsqrt.f32 %v2420_v18  ;;  %v2414_v47 = vmul.f32 0.03125, %v2402_v31 }
0x1245   :  { %5590 = vrsqrt.f32 %v2423_v43 }
0x1246   :  { %v5581_v39 = vpop.eup %5580  ;;  %v2422_v53 = vadd.f32 1e-06, %v2414_v47 }
0x1247   :  { %v2408_v42 = vpop.xlane.xlu0 %2407  ;;  %v2433_v14 = vmul.f32 %v5581_v39, %v6732_v1 }
0x1248   :  { %5592 = vrsqrt.f32 %v2422_v53  ;;  %v2416_v13 = vmul.f32 0.03125, %v2408_v42 }
0x1249   :  { %v5583_v33 = vpop.eup %5582  ;;  %v2447_v29 = vmul.f32 %v4485_v46, %v2433_v14 }
0x124a   :  { %v2424_v30 = vadd.f32 1e-06, %v2416_v13  ;;  %v2434_v11 = vmul.f32 %v5583_v33, %v6736_v7  ;;  %v4507_v13 = vld [vmem:[%s7110_s13] ss:$0 sm:$0xff] }
0x124c   :  { %5594 = vrsqrt.f32 %v2424_v30  ;;  %v2448_v35 = vmul.f32 %v4485_v46, %v2434_v11  ;;  %v5373_v30 = vld [vmem:[%s7109_s20] sm:$0xff]  }
0x124d   :  { %v5585_v48 = vpop.eup %5584 }
0x124e   :  { %v6796_v12 = vpack.c.bf16 %v2448_v35, %v2447_v29  ;;  %v5587_v51 = vpop.eup %5586  ;;  %v2435_v26 = vmul.f32 %v5585_v48, %v6746_v4 }
0x124f   :  { %v2437_v7 = vmul.f32 %v5587_v51, %v6742_v8 }
0x1250   :  { %5066 = vmatprep.mubr.msk.bf16.mxu1 %vm218_vm0, %v6796_v12  ;;  %v2449_v59 = vmul.f32 %v4485_v46, %v2435_v26 }
0x1251   :  { %v5589_v37 = vpop.eup %5588  ;;  %v2451_v4 = vmul.f32 %v4485_v46, %v2437_v7 }
0x1252   :  { %v2436_v1 = vmul.f32 %v5589_v37, %v6761_v62  ;;  %v5591_v28 = vpop.eup %5590 }
0x1253   :  { %v2439_v9 = vmul.f32 %v5591_v28, %v6752_v57 }
0x1254   :  { %v2450_v45 = vmul.f32 %v4485_v46, %v2436_v1 }
0x1255   :  { %v5593_v54 = vpop.eup %5592  ;;  %v2453_v8 = vmul.f32 %v4485_v46, %v2439_v9 }
0x1256   :  { %v6803_v49 = vpack.c.bf16 %v2450_v45, %v2449_v59  ;;  %v2438_v32 = vmul.f32 %v5593_v54, %v6771_v25 }
0x1258   :  { %5067 = vmatmul.mubr.msk.bf16.vlgmr.msra.gmra.mxu1 %vm218_vm0, %v6803_v49  ;;  %v2452_v27 = vmul.f32 %v4485_v46, %v2438_v32 }
0x1259   :  { %v5595_v36 = vpop.eup %5594 }
0x125a   :  { %v6809_v62 = vpack.c.bf16 %v2452_v27, %v2451_v4  ;;  %v2440_v0 = vmul.f32 %v5595_v36, %v6777_v6  ;;  %v5635_v27 = vld [vmem:[%s5713_s9] sm:$0x1]  ;;  %s7112_s9 = sld [smem:[#allocation14_spill]] }
0x125b   :  { %v2458_v9 = vsub.f32 1.0, %v5635_v27 }
0x125c   :  { %5070 = vmatprep.mubr.msk.bf16.mxu1 %vm218_vm0, %v6809_v62  ;;  %v2454_v50 = vmul.f32 %v4485_v46, %v2440_v0 }
0x125d   :  { %v2459_v36 = vmul.f32 -1e+09, %v2458_v9 }
0x125e   :  { %v3185_v25 = vpack.c.bf16 %v2454_v50, %v2453_v8 }
0x1260   :  { %5071 = vmatmul.mubr.msk.bf16.gmra.mxu1 %vm218_vm0, %v3185_v25 }
0x1261   :  { %5094 = vmatprep.mubr.msk.bf16.mxu1 %vm5698_vm9, %v5697_v23 }
0x12c5   :  { %v3158_v57 = vpop.f32.mrf.mxu1 }
0x12c6   :  { %v6818_v3 = vadd.f32 %v5634_v44, %v3158_v57 }
0x12c7   :  { %v5052_v63 = vpop.f32.mrf.mxu1 }
0x12c8   :  { %v3166_v6 = vmul.f32 %v6818_v3, %v6818_v3 }
0x12c9   :  { %v3161_v58 = vpop.f32.mrf.mxu1 }
0x12ca   :  { %v3167_v17 = vsel %vm218_vm0, %v3166_v6, 0.0 }
0x12cb   :  { %3168 = vadd.xlane.f32.xlu1 %v3167_v17  ;;  %v5053_v22 = vpop.f32.mrf.mxu1 }
0x1318   :  { %v5068_v40 = vpop.f32.mrf.mxu1 }
0x131a   :  { %v3307_v56 = vpop.f32.mrf.mxu1 }
0x131c   :  { %v5069_v55 = vpop.f32.mrf.mxu1 }
0x131d   :  { %v6837_v19 = vpack.c.bf16 %v5069_v55, %v5068_v40 }
0x131e   :  { %v3310_v52 = vpop.f32.mrf.mxu1 }
0x131f   :  { %v3437_v18 = vsel %vm557_vm1, %v6837_v19, 0  ;;  %v6842_v43 = vpack.c.bf16 %v3310_v52, %v3307_v56 }
0x1320   :  { %v5072_v15 = vpop.f32.mrf.mxu1 }
0x1321   :  { %v3434_v31 = vsel %vm557_vm1, %v6842_v43, 0 }
0x1322   :  { %v3323_v2 = vpop.f32.mrf.mxu1 }
0x1324   :  { %v5073_v10 = vpop.f32.mrf.mxu1 }
0x1325   :  { %v6827_v24 = vpack.c.bf16 %v5073_v10, %v5072_v15 }
0x1326   :  { %v3326_v5 = vpop.f32.mrf.mxu1 }
0x1327   :  { %v3443_v38 = vsel %vm557_vm1, %v6827_v24, 0  ;;  %v6832_v21 = vpack.c.bf16 %v3326_v5, %v3323_v2 }
0x1328   :  { %5087 = vmatpush3.bf16.xpose.msra.mxu1 %v3443_v38 }
0x1329   :  { %5088 = vmatprep.subr.bf16.mxu1 %v5697_v23  ;;  %v3440_v34 = vsel %vm557_vm1, %v6832_v21, 0 }
0x1330   :  { %5089 = vmatpush3.bf16.xpose.msra.mxu1 %v3440_v34 }
0x1331   :  { %5090 = vmatprep.subr.bf16.mxu1 %v5697_v23 }
0x1338   :  { %5091 = vmatpush3.bf16.xpose.msra.mxu1 %v3437_v18 }
0x1339   :  { %5092 = vmatprep.subr.bf16.mxu1 %v5697_v23 }
0x1340   :  { %5093 = vmatpush3.bf16.xpose.msra.mxu1 %v3434_v31 }
0x1341   :  { %5122 = vmatprep.subr.bf16.mxu1 %v5697_v23 }
0x1354   :  { %v3169_v47 = vpop.xlane.xlu1 %3168 }
0x1355   :  { %v3170_v39 = vmul.f32 0.03125, %v3169_v47 }
0x1357   :  { %v3171_v53 = vadd.f32 1e-06, %v3170_v39 }
0x1359   :  { %5596 = vrsqrt.f32 %v3171_v53 }
0x1366   :  { %v5597_v42 = vpop.eup %5596 }
0x1367   :  { %v3173_v14 = vmul.f32 %v5597_v42, %v6818_v3 }
0x1369   :  { %v3180_v33 = vmul.f32 %v4507_v13, %v3173_v14 }
0x136b   :  { %v3181_v46 = vpack.c.bf16 %v3180_v33, %v3180_v33 }
0x136d   :  { %5059 = vmatmul.mubr.msk.bf16.vlgmr.msra.gmra.mxu0 %vm218_vm0, %v3181_v46 }
0x136e   :  { %5075 = vmatpush3.bf16.msra.mxu0 %v5372_v41  ;;  %5078 = vmatprep.mubr.msk.bf16.mxu0 %vm218_vm0, %v6796_v12 }
0x136f   :  { %5076 = vmatprep.subr.bf16.mxu0 %v5373_v30 }
0x1372   :  { %5077 = vmatpush3.bf16.msra.mxu0 %v5373_v30 }
0x1373   :  { %5098 = vmatprep.subr.bf16.mxu0 %v5697_v23 }
0x1375   :  { %5079 = vmatmul.mubr.msk.bf16.vlgmr.msra.gmra.mxu0 %vm218_vm0, %v6803_v49 }
0x1376   :  { %5082 = vmatprep.mubr.msk.bf16.mxu0 %vm218_vm0, %v6809_v62  ;;  %v7111_v62 = vsub.s32 0, %v6000_v60 }
0x1378   :  { %v6886_v0 = vrot.slane %v2459_v36, %v7111_v62 }
0x137d   :  { %5083 = vmatmul.mubr.msk.bf16.gmra.mxu0 %vm218_vm0, %v3185_v25 }
0x137e   :  { %5106 = vmatprep.mubr.msk.bf16.mxu0 %vm5698_vm9, %v5697_v23 }
0x142d   :  { %v3239_v11 = vpop.f32.mrf.mxu0 }
0x142e   :  { %v6861_v29 = vpack.c.bf16 %v3239_v11, %v3239_v11 }
0x142f   :  { %v5060_v35 = vpop.f32.mrf.mxu0 }
0x1430   :  { %5095 = vmatmul.mubr.msk.bf16.vlgmr.msra.gmra.mxu1 %vm557_vm1, %v6861_v29 }
0x1431   :  { %v3242_v48 = vpop.f32.mrf.mxu0  ;;  %5130 = vmatprep.mubr.msk.bf16.mxu1 %vm5698_vm9, %v5697_v23 }
0x1433   :  { %v5061_v12 = vpop.f32.mrf.mxu0 }
0x1435   :  { %v5080_v51 = vpop.f32.mrf.mxu0 }
0x1437   :  { %v3388_v26 = vpop.f32.mrf.mxu0 }
0x1439   :  { %v5081_v37 = vpop.f32.mrf.mxu0 }
0x143a   :  { %v6875_v32 = vpack.c.bf16 %v5081_v37, %v5080_v51 }
0x143b   :  { %v3391_v1 = vpop.f32.mrf.mxu0 }
0x143c   :  { %v6879_v4 = vpack.c.bf16 %v3391_v1, %v3388_v26 }
0x143d   :  { %v5084_v28 = vpop.f32.mrf.mxu0 }
0x143f   :  { %v3404_v59 = vpop.f32.mrf.mxu0 }
0x1441   :  { %v5085_v45 = vpop.f32.mrf.mxu0 }
0x1442   :  { %v6867_v7 = vpack.c.bf16 %v5085_v45, %v5084_v28 }
0x1443   :  { %v3407_v54 = vpop.f32.mrf.mxu0 }
0x1444   :  { %5099 = vmatpush3.bf16.msra.mxu0 %v6867_v7  ;;  %v6871_v49 = vpack.c.bf16 %v3407_v54, %v3404_v59 }
0x1445   :  { %5100 = vmatprep.subr.bf16.mxu0 %v5697_v23 }
0x1448   :  { %5101 = vmatpush3.bf16.msra.mxu0 %v6871_v49 }
0x1449   :  { %5102 = vmatprep.subr.bf16.mxu0 %v5697_v23 }
0x144c   :  { %5103 = vmatpush3.bf16.msra.mxu0 %v6875_v32 }
0x144d   :  { %5104 = vmatprep.subr.bf16.mxu0 %v5697_v23 }
0x1450   :  { %5105 = vmatpush3.bf16.msra.mxu0 %v6879_v4 }
0x1451   :  { %5110 = vmatprep.subr.bf16.mxu0 %v5697_v23 }
0x14f0   :  { %v3479_v8 = vpop.f32.mrf.mxu1 }
0x14f1   :  { %v3480_v50 = vadd.f32 %v3479_v8, %v6886_v0 }
0x14f2   :  { %v5096_v25 = vpop.f32.mrf.mxu1 }
0x14f3   :  { %v3485_v57 = vsel %vm647_vm13, %v3480_v50, -inf }
0x14f4   :  { %3486 = vmax.xlane.f32.xlu0 %v3485_v57  ;;  %v3482_v44 = vpop.f32.mrf.mxu1 }
0x14f6   :  { %v5097_v63 = vpop.f32.mrf.mxu1 }
0x150a   :  { %3557 = vrot.lane.b32.xlu0 %v6827_v24, %s5691_s0 }
0x150e   :  { %3545 = vrot.lane.b32.xlu0 %v6861_v29, %s5691_s0 }
0x1512   :  { %3636 = vrot.lane.b32.xlu0 %v6867_v7, %s5691_s0 }
0x157d   :  { %v3487_v60 = vpop.xlane.xlu0 %3486 }
0x157e   :  { %v3488_v6 = vsub.f32 %v3480_v50, %v3487_v60 }
0x1580   :  { %v3489_v58 = vmul.f32 1.442695, %v3488_v6 }
0x1581   :  { %v3558_v17 = vpop.permute.xlu0 %3557 }
0x1582   :  { %5598 = vpow2.f32 %v3489_v58  ;;  %v3572_v15 = vsel %vm557_vm1, %v3558_v17, 0 }
0x1585   :  { %v3546_v22 = vpop.permute.xlu0 %3545 }
0x1589   :  { %v3637_v16 = vpop.permute.xlu0 %3636 }
0x158a   :  { %5123 = vmatpush3.bf16.msra.mxu1 %v3637_v16 }
0x158b   :  { %5124 = vmatprep.subr.bf16.mxu1 %v5697_v23 }
0x158f   :  { %v5599_v20 = vpop.eup %5598 }
0x1590   :  { %v3491_v41 = vsel %vm647_vm13, %v5599_v20, 0.0 }
0x1591   :  { %3492 = vadd.xlane.f32.xlu1 %v3491_v41 }
0x15a2   :  { %3555 = vrot.lane.b32.xlu1 %v6832_v21, %s5691_s0 }
0x15a6   :  { %3553 = vrot.lane.b32.xlu1 %v6837_v19, %s5691_s0 }
0x15aa   :  { %3551 = vrot.lane.b32.xlu1 %v6842_v43, %s5691_s0 }
0x161a   :  { %v3493_v40 = vpop.xlane.xlu1 %3492 }
0x161b   :  { %5600 = vrcp.f32 %v3493_v40 }
0x161e   :  { %v3556_v2 = vpop.permute.xlu1 %3555 }
0x161f   :  { %v3569_v10 = vsel %vm557_vm1, %v3556_v2, 0 }
0x1622   :  { %v3554_v38 = vpop.permute.xlu1 %3553 }
0x1623   :  { %v3566_v5 = vsel %vm557_vm1, %v3554_v38, 0 }
0x1626   :  { %v3552_v34 = vpop.permute.xlu1 %3551 }
0x1627   :  { %v3563_v18 = vsel %vm557_vm1, %v3552_v34, 0 }
0x1628   :  { %v5601_v56 = vpop.eup %5600 }
0x1629   :  { %v3495_v55 = vmul.f32 %v5601_v56, %v5599_v20 }
0x162b   :  { %v3496_v52 = vpack.c.bf16 %v3495_v55, %v3495_v55 }
0x162d   :  { %5107 = vmatmul.mubr.msk.bf16.vlgmr.msra.gmra.mxu0 %vm647_vm13, %v3496_v52 }
0x162e   :  { %5111 = vmatpush3.bf16.xpose.msra.mxu0 %v3572_v15  ;;  %5118 = vmatprep.mubr.msk.bf16.mxu0 %vm5698_vm9, %v5697_v23 }
0x162f   :  { %5112 = vmatprep.subr.bf16.mxu0 %v5697_v23 }
0x1636   :  { %5113 = vmatpush3.bf16.xpose.msra.mxu0 %v3569_v10 }
0x1637   :  { %5114 = vmatprep.subr.bf16.mxu0 %v5697_v23 }
0x163e   :  { %5115 = vmatpush3.bf16.xpose.msra.mxu0 %v3566_v5 }
0x163f   :  { %5116 = vmatprep.subr.bf16.mxu0 %v5697_v23 }
0x1646   :  { %5117 = vmatpush3.bf16.xpose.msra.mxu0 %v3563_v18 }
0x1647   :  { %5146 = vmatprep.subr.bf16.mxu0 %v5697_v23 }
0x164d   :  { %5119 = vmatmul.mubr.msk.bf16.vlgmr.msra.gmra.mxu0 %vm557_vm1, %v3546_v22 }
0x164e   :  { %5154 = vmatprep.mubr.msk.bf16.mxu0 %vm5698_vm9, %v5697_v23 }
0x16ed   :  { %v6918_v31 = vpop.f32.mrf.mxu0 }
0x16ef   :  { %v5108_v47 = vpop.f32.mrf.mxu0 }
0x16f1   :  { %v3541_v39 = vpop.f32.mrf.mxu0 }
0x16f3   :  { %v5109_v53 = vpop.f32.mrf.mxu0 }
0x170d   :  { %v3608_v42 = vpop.f32.mrf.mxu0 }
0x170e   :  { %v3609_v13 = vadd.f32 %v3608_v42, %v6886_v0 }
0x170f   :  { %v5120_v14 = vpop.f32.mrf.mxu0 }
0x1710   :  { %v3614_v33 = vsel %vm647_vm13, %v3609_v13, -inf }
0x1711   :  { %3615 = vmax.xlane.f32.xlu1 %v3614_v33  ;;  %v3611_v46 = vpop.f32.mrf.mxu0 }
0x1713   :  { %v5121_v30 = vpop.f32.mrf.mxu0 }
0x1722   :  { %3634 = vrot.lane.b32.xlu1 %v6871_v49, %s5691_s0 }
0x1726   :  { %3632 = vrot.lane.b32.xlu1 %v6875_v32, %s5691_s0 }
0x172a   :  { %3693 = vrot.lane.b32.xlu1 %v6827_v24, %s5692_s21 }
0x172e   :  { %3689 = vrot.lane.b32.xlu1 %v6837_v19, %s5692_s21 }
0x1732   :  { %3685 = vrot.lane.b32.xlu1 %v6861_v29, %s5692_s21 }
0x1736   :  { %3766 = vrot.lane.b32.xlu1 %v6871_v49, %s5692_s21 }
0x179a   :  { %v3616_v11 = vpop.xlane.xlu1 %3615 }
0x179b   :  { %v3617_v35 = vsub.f32 %v3609_v13, %v3616_v11 }
0x179d   :  { %v3618_v48 = vmul.f32 1.442695, %v3617_v35 }
0x179e   :  { %v3635_v12 = vpop.permute.xlu1 %3634 }
0x179f   :  { %5602 = vpow2.f32 %v3618_v48  ;;  %5125 = vmatpush3.bf16.msra.mxu1 %v3635_v12 }
0x17a0   :  { %5126 = vmatprep.subr.bf16.mxu1 %v5697_v23 }
0x17a2   :  { %v3633_v51 = vpop.permute.xlu1 %3632 }
0x17a3   :  { %5127 = vmatpush3.bf16.msra.mxu1 %v3633_v51 }
0x17a4   :  { %5128 = vmatprep.subr.bf16.mxu1 %v5697_v23 }
0x17a6   :  { %v3694_v54 = vpop.permute.xlu1 %3693 }
0x17a7   :  { %v3708_v9 = vsel %vm557_vm1, %v3694_v54, 0 }
0x17aa   :  { %v3690_v8 = vpop.permute.xlu1 %3689 }
0x17ab   :  { %v3702_v50 = vsel %vm557_vm1, %v3690_v8, 0 }
0x17ac   :  { %v5603_v26 = vpop.eup %5602 }
0x17ad   :  { %v3620_v37 = vsel %vm647_vm13, %v5603_v26, 0.0 }
0x17ae   :  { %3621 = vadd.xlane.f32.xlu0 %v3620_v37  ;;  %v3686_v44 = vpop.permute.xlu1 %3685 }
0x17b2   :  { %v3767_v2 = vpop.permute.xlu1 %3766 }
0x17c4   :  { %3630 = vrot.lane.b32.xlu0 %v6879_v4, %s5691_s0 }
0x17c8   :  { %3691 = vrot.lane.b32.xlu0 %v6832_v21, %s5692_s21 }
0x17cc   :  { %3687 = vrot.lane.b32.xlu0 %v6842_v43, %s5692_s21 }
0x1837   :  { %v3622_v1 = vpop.xlane.xlu0 %3621 }
0x1838   :  { %5604 = vrcp.f32 %v3622_v1 }
0x183b   :  { %v3631_v28 = vpop.permute.xlu0 %3630 }
0x183c   :  { %5129 = vmatpush3.bf16.msra.mxu1 %v3631_v28 }
0x183d   :  { %5134 = vmatprep.subr.bf16.mxu1 %v5697_v23 }
0x183f   :  { %v3692_v36 = vpop.permute.xlu0 %3691 }
0x1840   :  { %v3705_v62 = vsel %vm557_vm1, %v3692_v36, 0 }
0x1843   :  { %v3688_v25 = vpop.permute.xlu0 %3687 }
0x1844   :  { %v3699_v57 = vsel %vm557_vm1, %v3688_v25, 0 }
0x1845   :  { %v5605_v59 = vpop.eup %5604 }
0x1846   :  { %v3624_v45 = vmul.f32 %v5605_v59, %v5603_v26 }
0x1848   :  { %v3625_v27 = vpack.c.bf16 %v3624_v45, %v3624_v45 }
0x184a   :  { %5131 = vmatmul.mubr.msk.bf16.vlgmr.msra.gmra.mxu1 %vm647_vm13, %v3625_v27 }
0x184b   :  { %5135 = vmatpush3.bf16.xpose.msra.mxu1 %v3708_v9  ;;  %5142 = vmatprep.mubr.msk.bf16.mxu1 %vm5698_vm9, %v5697_v23 }
0x184c   :  { %5136 = vmatprep.subr.bf16.mxu1 %v5697_v23 }
0x1853   :  { %5137 = vmatpush3.bf16.xpose.msra.mxu1 %v3705_v62 }
0x1854   :  { %5138 = vmatprep.subr.bf16.mxu1 %v5697_v23 }
0x185b   :  { %5139 = vmatpush3.bf16.xpose.msra.mxu1 %v3702_v50  ;;  %v5374_v50 = vld [vmem:[%s7112_s9 + $0x8] sm:$0xff]  }
0x185c   :  { %5140 = vmatprep.subr.bf16.mxu1 %v5697_v23 }
0x1863   :  { %5141 = vmatpush3.bf16.xpose.msra.mxu1 %v3699_v57 }
0x1864   :  { %5170 = vmatprep.subr.bf16.mxu1 %v5697_v23 }
0x186a   :  { %5143 = vmatmul.mubr.msk.bf16.vlgmr.msra.gmra.mxu1 %vm557_vm1, %v3686_v44 }
0x186b   :  { %5178 = vmatprep.mubr.msk.bf16.mxu1 %vm5698_vm9, %v5697_v23 }
0x190a   :  { %v6958_v63 = vpop.f32.mrf.mxu1 }
0x190c   :  { %v5132_v60 = vpop.f32.mrf.mxu1 }
0x190e   :  { %v3682_v6 = vpop.f32.mrf.mxu1 }
0x1910   :  { %v5133_v58 = vpop.f32.mrf.mxu1 }
0x192a   :  { %v3744_v17 = vpop.f32.mrf.mxu1 }
0x192b   :  { %v3745_v22 = vadd.f32 %v3744_v17, %v6886_v0 }
0x192c   :  { %v5144_v16 = vpop.f32.mrf.mxu1 }
0x192d   :  { %v3750_v20 = vsel %vm647_vm13, %v3745_v22, -inf }
0x192e   :  { %3751 = vmax.xlane.f32.xlu0 %v3750_v20  ;;  %v3747_v41 = vpop.f32.mrf.mxu1 }
0x1930   :  { %v5145_v40 = vpop.f32.mrf.mxu1 }
0x1944   :  { %3768 = vrot.lane.b32.xlu0 %v6867_v7, %s5692_s21 }
0x1948   :  { %3764 = vrot.lane.b32.xlu0 %v6875_v32, %s5692_s21 }
0x194c   :  { %3825 = vrot.lane.b32.xlu0 %v6827_v24, %s5693_s25 }
0x1950   :  { %3821 = vrot.lane.b32.xlu0 %v6837_v19, %s5693_s25 }
0x1954   :  { %3817 = vrot.lane.b32.xlu0 %v6861_v29, %s5693_s25 }
0x1958   :  { %3900 = vrot.lane.b32.xlu0 %v6867_v7, %s5693_s25 }
0x19b7   :  { %v3752_v56 = vpop.xlane.xlu0 %3751 }
0x19b8   :  { %v3753_v55 = vsub.f32 %v3745_v22, %v3752_v56 }
0x19ba   :  { %v3754_v52 = vmul.f32 1.442695, %v3753_v55 }
0x19bb   :  { %v3769_v15 = vpop.permute.xlu0 %3768 }
0x19bc   :  { %5606 = vpow2.f32 %v3754_v52  ;;  %5147 = vmatpush3.bf16.msra.mxu0 %v3769_v15 }
0x19bd   :  { %5148 = vmatprep.subr.bf16.mxu0 %v5697_v23 }
0x19bf   :  { %v3765_v10 = vpop.permute.xlu0 %3764 }
0x19c0   :  { %5149 = vmatpush3.bf16.msra.mxu0 %v3767_v2  ;;  %v5376_v2 = vld [vmem:[%s7113_s27 + $0x8] sm:$0xff]  }
0x19c1   :  { %5150 = vmatprep.subr.bf16.mxu0 %v5697_v23 }
0x19c3   :  { %v3826_v24 = vpop.permute.xlu0 %3825 }
0x19c4   :  { %5151 = vmatpush3.bf16.msra.mxu0 %v3765_v10  ;;  %v3840_v42 = vsel %vm557_vm1, %v3826_v24, 0  ;;  %v5377_v10 = vld [vmem:[%s7114_s23 + $0x8] sm:$0xff]   ;;  %v5379_v24 = vld [vmem:[%s7114_s23] sm:$0xff]  }
0x19c5   :  { %5152 = vmatprep.subr.bf16.mxu0 %v5697_v23 }
0x19c7   :  { %v3822_v19 = vpop.permute.xlu0 %3821 }
0x19c8   :  { %v3834_v13 = vsel %vm557_vm1, %v3822_v19, 0 }
0x19c9   :  { %v5607_v29 = vpop.eup %5606 }
0x19ca   :  { %v3756_v7 = vsel %vm647_vm13, %v5607_v29, 0.0 }
0x19cb   :  { %3757 = vadd.xlane.f32.xlu1 %v3756_v7  ;;  %v3818_v38 = vpop.permute.xlu0 %3817 }
0x19cf   :  { %v3901_v5 = vpop.permute.xlu0 %3900 }
0x19d0   :  { %5171 = vmatpush3.bf16.msra.mxu1 %v3901_v5  ;;  %v4534_v5 = vld [vmem:[%s7115_s26] ss:$0 sm:$0xff] }
0x19d1   :  { %5172 = vmatprep.subr.bf16.mxu1 %v5697_v23 }
0x19dc   :  { %3762 = vrot.lane.b32.xlu1 %v6879_v4, %s5692_s21 }
0x19e0   :  { %3823 = vrot.lane.b32.xlu1 %v6832_v21, %s5693_s25 }
0x19e4   :  { %3819 = vrot.lane.b32.xlu1 %v6842_v43, %s5693_s25 }
0x1a54   :  { %v3758_v34 = vpop.xlane.xlu1 %3757 }
0x1a55   :  { %5608 = vrcp.f32 %v3758_v34 }
0x1a58   :  { %v3763_v18 = vpop.permute.xlu1 %3762 }
0x1a59   :  { %5153 = vmatpush3.bf16.msra.mxu0 %v3763_v18 }
0x1a5a   :  { %5158 = vmatprep.subr.bf16.mxu0 %v5697_v23 }
0x1a5c   :  { %v3824_v21 = vpop.permute.xlu1 %3823 }
0x1a5d   :  { %v3837_v43 = vsel %vm557_vm1, %v3824_v21, 0  ;;  %v5383_v21 = vld [vmem:[%s7116_s28] sm:$0xff]  }
0x1a60   :  { %v3820_v14 = vpop.permute.xlu1 %3819 }
0x1a61   :  { %v3831_v33 = vsel %vm557_vm1, %v3820_v14, 0 }
0x1a62   :  { %v5609_v47 = vpop.eup %5608 }
0x1a63   :  { %v3760_v39 = vmul.f32 %v5609_v47, %v5607_v29 }
0x1a65   :  { %v3761_v53 = vpack.c.bf16 %v3760_v39, %v3760_v39  ;;  %v5380_v39 = vld [vmem:[%s7116_s28 + $0x18] sm:$0xff]  }
0x1a67   :  { %5155 = vmatmul.mubr.msk.bf16.vlgmr.msra.gmra.mxu0 %vm647_vm13, %v3761_v53  ;;  %v5381_v53 = vld [vmem:[%s7116_s28 + $0x10] sm:$0xff]  }
0x1a68   :  { %5159 = vmatpush3.bf16.xpose.msra.mxu0 %v3840_v42  ;;  %5166 = vmatprep.mubr.msk.bf16.mxu0 %vm5698_vm9, %v5697_v23  ;;  %v5382_v42 = vld [vmem:[%s7116_s28 + $0x8] sm:$0xff]  }
0x1a69   :  { %5160 = vmatprep.subr.bf16.mxu0 %v5697_v23 }
0x1a70   :  { %5161 = vmatpush3.bf16.xpose.msra.mxu0 %v3837_v43 }
0x1a71   :  { %5162 = vmatprep.subr.bf16.mxu0 %v5697_v23 }
0x1a78   :  { %5163 = vmatpush3.bf16.xpose.msra.mxu0 %v3834_v13 }
0x1a79   :  { %5164 = vmatprep.subr.bf16.mxu0 %v5697_v23 }
0x1a80   :  { %5165 = vmatpush3.bf16.xpose.msra.mxu0 %v3831_v33 }
0x1a81   :  { %5190 = vmatprep.subr.bf16.mxu0 %v5697_v23 }
0x1a87   :  { %5167 = vmatmul.mubr.msk.bf16.vlgmr.msra.gmra.mxu0 %vm557_vm1, %v3818_v38 }
0x1a88   :  { %5194 = vmatprep.mubr.msk.bf16.mxu0 %vm5698_vm9, %v5697_v23  ;;  %5191 = vmatpush3.bf16.msra.mxu0 %v5376_v2 }
0x1a89   :  { %5192 = vmatprep.subr.bf16.mxu0 %v5697_v23 }
0x1b27   :  { %v3811_v46 = vpop.f32.mrf.mxu0 }
0x1b29   :  { %v5156_v30 = vpop.f32.mrf.mxu0 }
0x1b2b   :  { %v3814_v11 = vpop.f32.mrf.mxu0 }
0x1b2d   :  { %v5157_v35 = vpop.f32.mrf.mxu0 }
0x1b47   :  { %v3876_v48 = vpop.f32.mrf.mxu0 }
0x1b48   :  { %v3877_v12 = vadd.f32 %v3876_v48, %v6886_v0 }
0x1b49   :  { %v5168_v51 = vpop.f32.mrf.mxu0 }
0x1b4a   :  { %v3882_v26 = vsel %vm647_vm13, %v3877_v12, -inf }
0x1b4b   :  { %3883 = vmax.xlane.f32.xlu1 %v3882_v26  ;;  %v3879_v37 = vpop.f32.mrf.mxu0 }
0x1b4d   :  { %v5169_v1 = vpop.f32.mrf.mxu0 }
0x1b5c   :  { %3898 = vrot.lane.b32.xlu1 %v6871_v49, %s5693_s25 }
0x1b60   :  { %3896 = vrot.lane.b32.xlu1 %v6875_v32, %s5693_s25 }
0x1b64   :  { %3950 = vrot.lane.b32.xlu1 %v6958_v63, %s5694_s29 }
0x1bd4   :  { %v3884_v28 = vpop.xlane.xlu1 %3883 }
0x1bd5   :  { %v3885_v59 = vsub.f32 %v3877_v12, %v3884_v28 }
0x1bd7   :  { %v3886_v45 = vmul.f32 1.442695, %v3885_v59 }
0x1bd8   :  { %v3899_v54 = vpop.permute.xlu1 %3898 }
0x1bd9   :  { %5610 = vpow2.f32 %v3886_v45  ;;  %5173 = vmatpush3.bf16.msra.mxu1 %v3899_v54 }
0x1bda   :  { %5174 = vmatprep.subr.bf16.mxu1 %v5697_v23 }
0x1bdc   :  { %v3897_v0 = vpop.permute.xlu1 %3896 }
0x1bdd   :  { %5175 = vmatpush3.bf16.msra.mxu1 %v3897_v0 }
0x1bde   :  { %5176 = vmatprep.subr.bf16.mxu1 %v5697_v23 }
0x1be0   :  { %v3951_v60 = vpop.permute.xlu1 %3950 }
0x1be1   :  { %v3961_v58 = vsel %vm557_vm1, %v6918_v31, %v3951_v60  ;;  %v4546_v60 = vld [vmem:[%s5848_s30] ss:$0 sm:$0xff]  ;;  %vm4321_vm1 = vcmp.lt.s32.totalorder %v6002_v61, 64 }
0x1be6   :  { %v5611_v49 = vpop.eup %5610 }
0x1be7   :  { %v3888_v27 = vsel %vm647_vm13, %v5611_v49, 0.0 }
0x1be8   :  { %3889 = vadd.xlane.f32.xlu0 %v3888_v27 }
0x1bfe   :  { %3894 = vrot.lane.b32.xlu0 %v6879_v4, %s5693_s25  ;;  %v5375_v4 = vld [vmem:[%s7112_s9] sm:$0xff]  }
0x1c02   :  { %3954 = vrot.lane.b32.xlu0 %v3811_v46, %s5695_s3 }
0x1c71   :  { %v3890_v32 = vpop.xlane.xlu0 %3889 }
0x1c72   :  { %5612 = vrcp.f32 %v3890_v32 }
0x1c75   :  { %v3895_v9 = vpop.permute.xlu0 %3894 }
0x1c76   :  { %5177 = vmatpush3.bf16.msra.mxu1 %v3895_v9 }
0x1c77   :  { %5182 = vmatprep.subr.bf16.mxu1 %v5697_v23 }
0x1c79   :  { %v3955_v6 = vpop.permute.xlu0 %3954 }
0x1c7a   :  { %v3962_v17 = vsel %vm1795_vm4, %v3961_v58, %v3955_v6 }
0x1c7f   :  { %v5613_v36 = vpop.eup %5612 }
0x1c80   :  { %v3892_v62 = vmul.f32 %v5613_v36, %v5611_v49 }
0x1c82   :  { %v3893_v8 = vpack.c.bf16 %v3892_v62, %v3892_v62 }
0x1c84   :  { %5179 = vmatmul.mubr.msk.bf16.vlgmr.msra.gmra.mxu1 %vm647_vm13, %v3893_v8 }
0x1c85   :  { %5186 = vmatprep.mubr.msk.bf16.mxu1 %vm5698_vm9, %v5697_v23  ;;  %5183 = vmatpush3.bf16.msra.mxu1 %v5374_v50  ;;  %v5384_v50 = vld [vmem:[%s5853_s4 + $0x8] sm:$0xff]  }
0x1c86   :  { %5184 = vmatprep.subr.bf16.mxu1 %v5697_v23 }
0x1c89   :  { %5185 = vmatpush3.bf16.msra.mxu1 %v5375_v4  ;;  %v5385_v4 = vld [vmem:[%s5853_s4] sm:$0xff]  }
0x1c8a   :  { %5198 = vmatprep.subr.bf16.mxu1 %v5697_v23 }
0x1d44   :  { %v3943_v25 = vpop.f32.mrf.mxu1 }
0x1d45   :  { %3958 = vrot.lane.b32.xlu1 %v3943_v25, %s5696_s22 }
0x1d46   :  { %v5180_v57 = vpop.f32.mrf.mxu1 }
0x1d48   :  { %v3946_v44 = vpop.f32.mrf.mxu1 }
0x1d4a   :  { %v5181_v63 = vpop.f32.mrf.mxu1 }
0x1db7   :  { %v3959_v22 = vpop.permute.xlu1 %3958 }
0x1db8   :  { %v3963_v16 = vsel %vm1804_vm8, %v3962_v17, %v3959_v22  ;;  %v4333_v22 = vld [vmem:[%s7117_s1] sm:$0xff] }
0x1db9   :  { %v3964_v20 = vpack.c.bf16 %v3963_v16, %v3963_v16 }
0x1dbb   :  { %5187 = vmatmul.mubr.msk.bf16.vlgmr.msra.gmra.mxu1 %vm218_vm0, %v3964_v20 }
0x1dbc   :  { %5202 = vmatprep.mubr.msk.bf16.mxu1 %vm5698_vm9, %v5697_v23  ;;  %5199 = vmatpush3.bf16.msra.mxu1 %v5377_v10 }
0x1dbd   :  { %5200 = vmatprep.subr.bf16.mxu1 %v5697_v23 }
0x1dc0   :  { %5201 = vmatpush3.bf16.msra.mxu1 %v5379_v24 }
0x1dc1   :  { %5218 = vmatprep.subr.bf16.mxu1 %v5697_v23 }
0x1e7b   :  { %v4018_v41 = vpop.f32.mrf.mxu1 }
0x1e7c   :  { %v7031_v40 = vadd.f32 %v4018_v41, %v6818_v3  ;;  %v5378_v3 = vld [vmem:[%s7113_s27] sm:$0xff]  }
0x1e7d   :  { %v5188_v56 = vpop.f32.mrf.mxu1  ;;  %5193 = vmatpush3.bf16.msra.mxu0 %v5378_v3 }
0x1e7e   :  { %v4026_v31 = vmul.f32 %v7031_v40, %v7031_v40  ;;  %5206 = vmatprep.subr.bf16.mxu0 %v5697_v23 }
0x1e7f   :  { %v4021_v55 = vpop.f32.mrf.mxu1 }
0x1e80   :  { %v4027_v52 = vsel %vm218_vm0, %v4026_v31, 0.0 }
0x1e81   :  { %4028 = vadd.xlane.f32.xlu0 %v4027_v52  ;;  %v5189_v15 = vpop.f32.mrf.mxu1 }
0x1f0a   :  { %v4029_v19 = vpop.xlane.xlu0 %4028 }
0x1f0b   :  { %v4030_v29 = vmul.f32 0.03125, %v4029_v19 }
0x1f0d   :  { %v4031_v7 = vadd.f32 1e-06, %v4030_v29 }
0x1f0f   :  { %5614 = vrsqrt.f32 %v4031_v7 }
0x1f1c   :  { %v5615_v38 = vpop.eup %5614 }
0x1f1d   :  { %v4033_v34 = vmul.f32 %v5615_v38, %v7031_v40 }
0x1f1f   :  { %v4040_v18 = vmul.f32 %v4534_v5, %v4033_v34 }
0x1f21   :  { %v4041_v47 = vpack.c.bf16 %v4040_v18, %v4040_v18 }
0x1f23   :  { %5195 = vmatmul.mubr.msk.bf16.vlgmr.msra.gmra.mxu0 %vm218_vm0, %v4041_v47  ;;  %5203 = vmatmul.mubr.msk.bf16.vlgmr.msra.gmra.mxu1 %vm218_vm0, %v4041_v47 }
0x1f24   :  { %5214 = vmatprep.mubr.msk.bf16.mxu0 %vm5698_vm9, %v5697_v23  ;;  %5222 = vmatprep.mubr.msk.bf16.mxu1 %vm5698_vm9, %v5697_v23 }
0x1f25   :  { %5207 = vmatpush3.bf16.msra.mxu0 %v5380_v39  ;;  %5219 = vmatpush3.bf16.msra.mxu1 %v5384_v50 }
0x1f26   :  { %5208 = vmatprep.subr.bf16.mxu0 %v5697_v23  ;;  %5220 = vmatprep.subr.bf16.mxu1 %v5697_v23 }
0x1f29   :  { %5209 = vmatpush3.bf16.msra.mxu0 %v5381_v53  ;;  %5221 = vmatpush3.bf16.msra.mxu1 %v5385_v4 }
0x1f2a   :  { %5210 = vmatprep.subr.bf16.mxu0 %v5697_v23 }
0x1f2d   :  { %5211 = vmatpush3.bf16.msra.mxu0 %v5382_v42 }
0x1f2e   :  { %5212 = vmatprep.subr.bf16.mxu0 %v5697_v23 }
0x1f31   :  { %5213 = vmatpush3.bf16.msra.mxu0 %v5383_v21 }
0x1fe3   :  { %v4095_v43 = vpop.f32.mrf.mxu0  ;;  %v4160_v13 = vpop.f32.mrf.mxu1 }
0x1fe4   :  { %v4101_v14 = vmul.f32 %v4095_v43, %v4095_v43 }
0x1fe5   :  { %v5196_v33 = vpop.f32.mrf.mxu0  ;;  %v5204_v46 = vpop.f32.mrf.mxu1 }
0x1fe6   :  { %v4102_v30 = vmul.f32 %v4101_v14, %v4095_v43 }
0x1fe7   :  { %v4098_v11 = vpop.f32.mrf.mxu0  ;;  %v4163_v35 = vpop.f32.mrf.mxu1 }
0x1fe8   :  { %v4103_v48 = vmul.f32 0.044715, %v4102_v30 }
0x1fe9   :  { %v5197_v12 = vpop.f32.mrf.mxu0  ;;  %v5205_v51 = vpop.f32.mrf.mxu1 }
0x1fea   :  { %v4104_v26 = vadd.f32 %v4103_v48, %v4095_v43 }
0x1fec   :  { %v4105_v37 = vmul.f32 0.7978846, %v4104_v26 }
0x1fee   :  { %5616 = vtanh.f32 %v4105_v37 }
0x1ffb   :  { %v5617_v1 = vpop.eup %5616 }
0x1ffc   :  { %v4107_v28 = vadd.f32 1.0, %v5617_v1 }
0x1ffe   :  { %v4108_v59 = vmul.f32 0.5, %v4107_v28 }
0x2000   :  { %v4109_v45 = vmul.f32 %v4108_v59, %v4095_v43 }
0x2002   :  { %v4166_v54 = vmul.f32 %v4160_v13, %v4109_v45 }
0x2004   :  { %v4167_v0 = vpack.c.bf16 %v4166_v54, %v4166_v54 }
0x2006   :  { %5215 = vmatmul.mubr.msk.bf16.vlgmr.msra.gmra.mxu0 %vm647_vm13, %v4167_v0 }
0x20c6   :  { %v4237_v49 = vpop.f32.mrf.mxu0 }
0x20c7   :  { %v4243_v27 = vadd.f32 %v4237_v49, %v7031_v40 }
0x20c8   :  { %v5216_v32 = vpop.f32.mrf.mxu0 }
0x20c9   :  { %v4245_v9 = vmul.f32 %v4243_v27, %v4243_v27 }
0x20ca   :  { %v4240_v36 = vpop.f32.mrf.mxu0 }
0x20cb   :  { %v4246_v62 = vsel %vm218_vm0, %v4245_v9, 0.0 }
0x20cc   :  { %4247 = vadd.xlane.f32.xlu1 %v4246_v62  ;;  %v5217_v8 = vpop.f32.mrf.mxu0 }
0x2155   :  { %v4248_v25 = vpop.xlane.xlu1 %4247 }
0x2156   :  { %v4249_v57 = vmul.f32 0.03125, %v4248_v25 }
0x2158   :  { %v4250_v44 = vadd.f32 1e-06, %v4249_v57 }
0x215a   :  { %5618 = vrsqrt.f32 %v4250_v44 }
0x2167   :  { %v5619_v63 = vpop.eup %5618 }
0x2168   :  { %v4252_v6 = vmul.f32 %v5619_v63, %v4243_v27 }
0x216a   :  { %v4259_v58 = vmul.f32 %v4546_v60, %v4252_v6 }
0x216c   :  { %v4260_v17 = vpack.c.bf16 %v4259_v58, %v4259_v58 }
0x216e   :  { %5223 = vmatmul.mubr.msk.bf16.vlgmr.msra.gmra.mxu1 %vm218_vm0, %v4260_v17  ;;  %vm4356_vm0 = vcmask 0  }
0x222e   :  { %v4314_v16 = vpop.f32.mrf.mxu1 }
0x222f   :  { %4320 = vst [vmem:[%s5858_s17] sm:$0xff] %v4314_v16  ;;  %v4334_v23 = vmul.f32 %v4333_v22, %v4314_v16  ;;  %v4322_v20 = vsel %vm4321_vm1, %v4314_v16, -1e+09  ;;  %s5699_s17 = smov [#allocation2]  }
0x2230   :  { %4323 = vmax.xlane.f32.xlu0 %v4322_v20  ;;  %v5224_v41 = vpop.f32.mrf.mxu1  ;;  %s4366_s30 = sshll.u32 %s5699_s17, 4  ;;  %s4367_s30 = int_to_ptr.vmem [resolvable:$true] %s4366_s30 }
0x2231   :  { %4335 = vadd.xlane.f32.xlu1 %v4334_v23  ;;  %s5636_s4 = scalar_lea.vmem %s4367_s30, 16  ;;  %s5640_s2 = scalar_lea.vmem %s4367_s30, 32 }
0x2232   :  { %v4317_v40 = vpop.f32.mrf.mxu1  ;;  %p5637_p0 = scmp.ne.s32.totalorder %s4367_s30, %s5636_s4  ;;  %p5641_p1 = scmp.lt.s32.totalorder %s4367_s30, %s4367_s30 }
0x2233   :  { %p5642_p2 = scmp.lt.s32.totalorder %s5640_s2, %s5636_s4 }
0x2234   :  { %v5225_v56 = vpop.f32.mrf.mxu1 }
0x2235   :  { %p5643_p3 = por %p5642_p2, %p5641_p1 }
0x2237   :  { %p5644_p4 = pnand %p5643_p3, %p5637_p0 }
0x22b9   :  { %v4324_v31 = vpop.xlane.xlu0 %4323 }
0x22ba   :  { %v4325_v55 = vsub.f32 %v4322_v20, %v4324_v31  ;;  %v4336_v47 = vpop.xlane.xlu1 %4335 }
0x22bc   :  { %v4326_v52 = vmul.f32 1.442695, %v4325_v55 }
0x22be   :  { %5620 = vpow2.f32 %v4326_v52 }
0x22cb   :  { %v5621_v15 = vpop.eup %5620 }
0x22cc   :  { %4328 = vadd.xlane.f32.xlu0 %v5621_v15 }
0x22d0   :  { %4337 = vadd.xlane.f32.xlu0 %v4333_v22 }
0x2355   :  { %v4329_v2 = vpop.xlane.xlu0 %4328 }
0x2356   :  { %5622 = vlog2.f32 %v4329_v2 }
0x2359   :  { %v4338_v10 = vpop.xlane.xlu0 %4337 }
0x235a   :  { %v4347_v61 = vrot.slane %v4338_v10, 4 }
0x235c   :  { %v4348_v3 = vadd.f32 %v4347_v61, %v4338_v10 }
0x235e   :  { %v4349_v24 = vrot.slane %v4348_v3, 2 }
0x2360   :  { %v4350_v19 = vadd.f32 %v4349_v24, %v4348_v3 }
0x2362   :  { %v4351_v29 = vrot.slane %v4350_v19, 1 }
0x2363   :  { %v5623_v7 = vpop.eup %5622 }
0x2364   :  { %v4331_v38 = vmul.f32 0.6931472, %v5623_v7  ;;  %v4352_v5 = vadd.f32 %v4351_v29, %v4350_v19 }
0x2366   :  { %v4332_v34 = vadd.f32 %v4331_v38, %v4324_v31  ;;  %v4353_v18 = vmax.f32 %v4352_v5, 1.0 }
0x2368   :  { %v4339_v39 = vsub.f32 %v4332_v34, %v4336_v47  ;;  %5624 = vrcp.f32 %v4353_v18 }
0x236a   :  { %v4340_v53 = vmul.f32 %v4339_v39, %v4338_v10 }
0x236c   :  { %v4341_v42 = vrot.slane %v4340_v53, 4 }
0x236e   :  { %v4342_v21 = vadd.f32 %v4341_v42, %v4340_v53 }
0x2370   :  { %v4343_v43 = vrot.slane %v4342_v21, 2 }
0x2372   :  { %v4344_v13 = vadd.f32 %v4343_v43, %v4342_v21 }
0x2374   :  { %v4345_v14 = vrot.slane %v4344_v13, 1 }
0x2375   :  { %v5625_v46 = vpop.eup %5624 }
0x2376   :  { %v4346_v33 = vadd.f32 %v4345_v14, %v4344_v13 }
0x2378   :  { %v4355_v30 = vmul.f32 %v5625_v46, %v4346_v33 }
0x237a   :  { %4357 = vst.msk [vmem:[#allocation2] sm:$0x1] %vm4356_vm0, %v4355_v30 }
0x237b   :  { %5647 = shalt.err (!%p5644_p4)
}
0x237c   :  { %4369 = dma.vmem_to_hbm [thread:$0]  %s4367_s30, 16, %s5863_s6, [#allocation3]  }
0x237d   :  { %5656 = dma.done.wait [#allocation3], 16  }
0x237e   :  { %5657 = vsyncadd [#allocation3], 4294967280 }
0x237f   :  { %4375 = vsyncpa [#allocation3], 1 }

</bundles_post_ra>
